<compile_context>
chip_gen: v7x
topology: tpu7x:2x2x1
jax: 0.10.0
libtpu: 0.0.40
codegen_flags: <defaults>
</compile_context>

<pallas_src>
import functools
import math

import numpy as np
import jax
import jax.numpy as jnp
from jax import lax
from jax.experimental import pallas as pl
from jax.experimental.pallas import tpu as pltpu

# ---- model hyper-parameters (small, consistent with the module) -------------
D_MODEL = 32
N_HEAD = 4
D_FF = 64
OBS_LEN = 8            # obs_len
PRED_STEPS = 12        # predictions_steps
SAMPLE_BATCH = 4       # sample_batch (small for the demo)
DT = 0.4

_HEAD_DIM = D_MODEL // N_HEAD
_INV_SQRT_DH = 1.0 / math.sqrt(_HEAD_DIM)
_NEG = -1e9
_BF = jnp.bfloat16


# ========================= packed parameter layout ============================
# Weight slab (bf16): matrices stacked along sublanes, each block 8-row aligned,
# all starting at lane 0.  Bias/LN slab (f32): one row per vector parameter.

_W_SPECS = (
    ('e_emb_w', 2, D_MODEL),
    ('e_wqkv', D_MODEL, 3 * D_MODEL),
    ('e_wo', D_MODEL, D_MODEL),
    ('e_w1', D_MODEL, D_FF),
    ('e_w2', D_FF, D_MODEL),
    ('d_wqkv', D_MODEL, 3 * D_MODEL),
    ('d_wo', D_MODEL, D_MODEL),
    ('d_cwq', D_MODEL, D_MODEL),
    ('d_cwkv', D_MODEL, 2 * D_MODEL),
    ('d_cwo', D_MODEL, D_MODEL),
    ('d_w1', D_MODEL, D_FF),
    ('d_w2', D_FF, D_MODEL),
    ('head_w', D_MODEL, 4),
)
_W_OFF, _W_SHAPE = {}, {}
_off = 0
for _n, _r, _c in _W_SPECS:
    _W_OFF[_n] = _off
    _W_SHAPE[_n] = (_r, _c)
    _off += ((_r + 7) // 8) * 8
_W_ROWS = _off
_W_COLS = 3 * D_MODEL

_V_SPECS = (
    ('e_emb_b', D_MODEL), ('e_bqkv', 3 * D_MODEL), ('e_bo', D_MODEL),
    ('e_ln1g', D_MODEL), ('e_ln1b', D_MODEL),
    ('e_b1', D_FF), ('e_b2', D_MODEL), ('e_ln2g', D_MODEL), ('e_ln2b', D_MODEL),
    ('d_emb_b', D_MODEL),
    ('d_bqkv', 3 * D_MODEL), ('d_bo', D_MODEL),
    ('d_ln1g', D_MODEL), ('d_ln1b', D_MODEL),
    ('d_cbq', D_MODEL), ('d_cbkv', 2 * D_MODEL), ('d_cbo', D_MODEL),
    ('d_ln2g', D_MODEL), ('d_ln2b', D_MODEL),
    ('d_b1', D_FF), ('d_b2', D_MODEL), ('d_ln3g', D_MODEL), ('d_ln3b', D_MODEL),
    ('head_b', 4),
)
_V_ROW = {n: i for i, (n, _) in enumerate(_V_SPECS)}
_V_WIDTH = {n: c for n, c in _V_SPECS}
_V_ROWS = len(_V_SPECS)


def pack_params(params):
    """Pack the per-tensor parameter dict into (bf16 weight slab, f32 bias slab)."""
    w = np.zeros((_W_ROWS, _W_COLS), np.float32)
    for n, r, c in _W_SPECS:
        w[_W_OFF[n]:_W_OFF[n] + r, :c] = np.asarray(params[n], np.float32).reshape(r, c)
    v = np.zeros((_V_ROWS, _W_COLS), np.float32)
    for n, c in _V_SPECS:
        v[_V_ROW[n], :c] = np.asarray(params[n], np.float32).reshape(-1)
    return jnp.asarray(w, _BF), jnp.asarray(v, jnp.float32)


# ======================= in-kernel building blocks ============================

def _w(w_ref, name):
    r, c = _W_SHAPE[name]
    o = _W_OFF[name]
    return w_ref[o:o + r, 0:c]


def _v(v_ref, name):
    c = _V_WIDTH[name]
    i = _V_ROW[name]
    return v_ref[i:i + 1, 0:c]


def _iota(shape, dim):
    return lax.broadcasted_iota(jnp.int32, shape, dim).astype(jnp.float32)


def _fdiv(x, n):
    # floor(x / n) for small non-negative integers carried in f32 (+0.5 guard
    # makes it robust to reciprocal rounding).
    return jnp.floor((x + 0.5) * (1.0 / float(n)))


def _fmod(x, n):
    return x - float(n) * _fdiv(x, n)


def _mm(a, b):
    """bf16 x bf16 -> f32 MXU matmul."""
    return jnp.dot(a.astype(_BF), b.astype(_BF), preferred_element_type=jnp.float32)


def _layer_norm(x, g, b):
    m = jnp.mean(x, axis=-1, keepdims=True)
    var = jnp.mean(jnp.square(x - m), axis=-1, keepdims=True)
    return (x - m) * lax.rsqrt(var + 1e-5) * g + b


def _mha(q, k, v, B, Tk, causal, wo, bo):
    """Multi-head attention on 2-D time-major tiles (block-diagonal heads).

    Rows of q are (t, agent) pairs (m = t*B + agent).  Keys/values are
    replicated once per head by a sublane concatenate (r = h*Mk + m_k) and
    feature-masked so a single (Mq, D) x (D, R) matmul yields every per-head
    score.  All masks are generated in-kernel from iotas (zero DMA).
    """
    Mq = q.shape[0]
    Mk = B * Tk
    R = N_HEAD * Mk

    # head feature mask (R, D)
    r_i = _iota((R, D_MODEL), 0)
    c_i = _iota((R, D_MODEL), 1)
    hm = jnp.where(_fdiv(r_i, Mk) == _fdiv(c_i, _HEAD_DIM), 1.0, 0.0)
    # per-(head, agent) block-equality matrix (R, R) for softmax denominators
    i_i = _iota((R, R), 0)
    j_i = _iota((R, R), 1)
    seg = jnp.where((_fdiv(i_i, Mk) == _fdiv(j_i, Mk))
                    & (_fmod(i_i, B) == _fmod(j_i, B)), 1.0, 0.0)
    # additive bias (Mq, R): cross-agent (and optional causal) masking
    q_i = _iota((Mq, R), 0)
    k_i = _iota((Mq, R), 1)
    keep = _fmod(q_i, B) == _fmod(k_i, B)
    if causal:
        keep = keep & (_fdiv(_fmod(k_i, Mk), B) <= _fdiv(q_i, B))
    bias = jnp.where(keep, 0.0, _NEG)

    # per-head replicated, feature-masked keys/values (sublane copy, no matmul)
    kx = jnp.concatenate([k] * N_HEAD, axis=0) * hm          # (R, D)
    vx = jnp.concatenate([v] * N_HEAD, axis=0) * hm          # (R, D)

    s = lax.dot_general(q.astype(_BF), kx.astype(_BF),
                        (((1,), (1,)), ((), ())),
                        preferred_element_type=jnp.float32)   # (Mq, R)
    s = s * _INV_SQRT_DH + bias
    s = s - jnp.max(s, axis=-1, keepdims=True)
    e = jnp.exp(s)
    denom = jnp.dot(e, seg, preferred_element_type=jnp.float32)
    p = e * pl.reciprocal(denom + 1e-30, approx=False)
    o = _mm(p, vx)                                            # (Mq, D)
    return _mm(o, wo) + bo


# ============================ fused forward kernel ============================

def _forward_kernel(rid_ref, traj_ref, noise_ref, w_ref, v_ref, pe_ref,
                    out_ref, nll_ref):
    D = D_MODEL
    Me = traj_ref.shape[0]                 # num_h * OBS_LEN   (encoder rows)
    num_h = Me // OBS_LEN
    Mo = noise_ref.shape[0]                # batch * PRED_STEPS (output rows)
    batch = Mo // PRED_STEPS
    Md = num_h * PRED_STEPS                # decoder rows

    w = lambda n: _w(w_ref, n)
    v = lambda n: _v(v_ref, n)

    # ------------------------------ Hist_Encoder ------------------------------
    # rows are time-major: m = t*num_h + agent
    x = _mm(traj_ref[...], w('e_emb_w')) + v('e_emb_b') + pe_ref[0:Me, :]
    qkv = _mm(x, w('e_wqkv')) + v('e_bqkv')
    a = _mha(qkv[:, 0:D], qkv[:, D:2 * D], qkv[:, 2 * D:3 * D],
             num_h, OBS_LEN, False, w('e_wo'), v('e_bo'))
    x = _layer_norm(x + a, v('e_ln1g'), v('e_ln1b'))
    h = jnp.maximum(_mm(x, w('e_w1')) + v('e_b1'), 0.0)
    f = _mm(h, w('e_w2')) + v('e_b2')
    mem = _layer_norm(x + f, v('e_ln2g'), v('e_ln2b'))

    # ------------------------------- Decoder_TF -------------------------------
    # decoder input is identically zero in this forward -> embedding bias + PE
    y = v('d_emb_b') + pe_ref[Me:Me + Md, :]
    qkv = _mm(y, w('d_wqkv')) + v('d_bqkv')
    a = _mha(qkv[:, 0:D], qkv[:, D:2 * D], qkv[:, 2 * D:3 * D],
             num_h, PRED_STEPS, True, w('d_wo'), v('d_bo'))
    y = _layer_norm(y + a, v('d_ln1g'), v('d_ln1b'))

    qc = _mm(y, w('d_cwq')) + v('d_cbq')
    kvc = _mm(mem, w('d_cwkv')) + v('d_cbkv')
    c = _mha(qc, kvc[:, 0:D], kvc[:, D:2 * D],
             num_h, OBS_LEN, False, w('d_cwo'), v('d_cbo'))
    y = _layer_norm(y + c, v('d_ln2g'), v('d_ln2b'))

    h = jnp.maximum(_mm(y, w('d_w1')) + v('d_b1'), 0.0)
    f = _mm(h, w('d_w2')) + v('d_b2')
    y = _layer_norm(y + f, v('d_ln3g'), v('d_ln3b'))

    # fused mu | log-scale head; clamp only the log-scale columns
    ms = _mm(y, w('head_w')) + v('head_b')                    # (Md, 4)
    col = lax.broadcasted_iota(jnp.int32, ms.shape, 1)
    ms = jnp.where(col >= 2, jnp.clip(ms, -9.0, 4.0), ms)

    # ------- repeat(1, sample_batch, 1) + reorder to time-major full batch ----
    # final row rr = t*batch + s*num_h + b   <-   source row m = t*num_h + b
    rr_i = _iota((Mo, Md), 0)
    m_i = _iota((Mo, Md), 1)
    P = jnp.where((_fdiv(rr_i, batch) == _fdiv(m_i, num_h))
                  & (_fmod(rr_i, num_h) == _fmod(m_i, num_h)), 1.0, 0.0)
    musc = jnp.dot(P, ms, preferred_element_type=jnp.float32)  # (Mo, 4) selection
    mu_rep = musc[:, 0:2]
    sc_rep = musc[:, 2:4]
    dev = jnp.exp(sc_rep) * noise_ref[...]
    out = mu_rep + dev

    # single lane-packed output slab: cols [mu_x, mu_y, sc_x, sc_y, out_x, out_y]
    out_ref[:, 0:4] = musc
    out_ref[:, 4:6] = out

    # nll = sum_t ||out[t, robotID] - mu[t, robotID]||^2   (robotID is dynamic)
    rid = rid_ref[0].astype(jnp.float32)
    row = _iota((Mo, 1), 0)
    is_robot = _fmod(row, batch) == rid
    ssq = jnp.sum(dev * dev, axis=1, keepdims=True)
    ssq = jnp.where(is_robot, ssq, 0.0)
    nll_ref[...] = jnp.sum(ssq, axis=0, keepdims=True)


# =============================== constant setup ===============================

def _positional_encoding(max_len, d):
    pos = np.arange(max_len)[:, None].astype(np.float64)
    i = np.arange(d)[None, :].astype(np.float64)
    angle = pos / np.power(10000.0, (2.0 * (i // 2)) / d)
    pe = np.where(i % 2 == 0, np.sin(angle), np.cos(angle))
    return pe.astype(np.float32)


@functools.lru_cache(maxsize=None)
def _pe_constants(num_h):
    pe = _positional_encoding(max(OBS_LEN, PRED_STEPS), D_MODEL)
    pe_enc = np.repeat(pe[:OBS_LEN], num_h, axis=0)      # rows t*num_h + b
    pe_dec = np.repeat(pe[:PRED_STEPS], num_h, axis=0)
    return jnp.asarray(np.concatenate([pe_enc, pe_dec], axis=0), jnp.float32)


# ======================== TrajectoryGenerator.forward =========================

def trajectory_generator_forward(w_slab, v_slab, traj_rel, robot_state, z,
                                 robotID, mean_pred=True):
    # TODO(synk): robot_state is only consumed by the use_robot_model &&
    # ar_step_or_DWA branch (actionXYtoROT + dynamic_window), which is defined
    # outside the provided module source; that branch is skipped, so
    # clamped_action stays empty (as in torch with the robot model disabled).
    del robot_state
    batch = traj_rel.shape[1]
    num_h = batch // SAMPLE_BATCH
    rid = jnp.asarray(robotID, jnp.int32)

    if mean_pred:
        noise = jnp.zeros((PRED_STEPS, batch, 2), jnp.float32)
    else:
        # TODO(synk): torch draws fresh randn each call; a fixed key is used here.
        noise = jax.random.normal(jax.random.PRNGKey(1),
                                  (PRED_STEPS, batch, 2), jnp.float32)
    noise = noise.at[:, rid].set(z)

    # natural (time-major) flattened layouts — no transposes needed
    traj_tm = traj_rel[:OBS_LEN, :num_h].reshape(num_h * OBS_LEN, 2)
    noise_tm = noise.reshape(batch * PRED_STEPS, 2)
    pe_slab = _pe_constants(num_h)
    rid_arr = rid.reshape(1)

    out_shape = (
        jax.ShapeDtypeStruct((batch * PRED_STEPS, 6), jnp.float32),  # mu|sc|out
        jax.ShapeDtypeStruct((1, 1), jnp.float32),                   # nll
    )
    out_slab, nll = pl.pallas_call(
        _forward_kernel,
        out_shape=out_shape,
        in_specs=[
            pl.BlockSpec(memory_space=pltpu.MemorySpace.SMEM),   # robotID scalar
            pl.BlockSpec(memory_space=pltpu.MemorySpace.VMEM),   # traj  (time-major)
            pl.BlockSpec(memory_space=pltpu.MemorySpace.VMEM),   # noise (time-major)
            pl.BlockSpec(memory_space=pltpu.MemorySpace.VMEM),   # weight slab (bf16)
            pl.BlockSpec(memory_space=pltpu.MemorySpace.VMEM),   # bias/LN slab (f32)
            pl.BlockSpec(memory_space=pltpu.MemorySpace.VMEM),   # positional enc.
        ],
        out_specs=(
            pl.BlockSpec(memory_space=pltpu.MemorySpace.VMEM),
            pl.BlockSpec(memory_space=pltpu.MemorySpace.VMEM),
        ),
    )(rid_arr, traj_tm, noise_tm, w_slab, v_slab, pe_slab)

    slab = out_slab.reshape(PRED_STEPS, batch, 6)
    mu_rep = slab[..., 0:2]
    scale_rep = slab[..., 2:4]
    out = slab[..., 4:6]
    clamped_action = jnp.zeros((0, 1, 2), jnp.float32)
    return out, mu_rep, scale_rep, clamped_action, nll[0, 0]


# ============================== parameter init ================================

def _dense(key, fan_in, fan_out):
    kw, kb = jax.random.split(key)
    w = jax.random.normal(kw, (fan_in, fan_out), jnp.float32) / math.sqrt(fan_in)
    b = (jax.random.normal(kb, (fan_out,), jnp.float32) * 0.01).reshape(1, fan_out)
    return w, b


def init_params(key):
    d, f = D_MODEL, D_FF
    ks = jax.random.split(key, 14)
    ones = jnp.ones((1, d), jnp.float32)
    zeros = jnp.zeros((1, d), jnp.float32)
    p = {}
    p['e_emb_w'], p['e_emb_b'] = _dense(ks[0], 2, d)
    p['e_wqkv'], p['e_bqkv'] = _dense(ks[1], d, 3 * d)     # fused Q|K|V
    p['e_wo'], p['e_bo'] = _dense(ks[2], d, d)
    p['e_ln1g'], p['e_ln1b'] = ones, zeros
    p['e_w1'], p['e_b1'] = _dense(ks[3], d, f)
    p['e_w2'], p['e_b2'] = _dense(ks[4], f, d)
    p['e_ln2g'], p['e_ln2b'] = ones, zeros
    # decoder embedding weight omitted: the decoder input is identically zero
    # in this forward, so only the embedding bias contributes.
    _, p['d_emb_b'] = _dense(ks[5], 2, d)
    p['d_wqkv'], p['d_bqkv'] = _dense(ks[6], d, 3 * d)     # fused Q|K|V
    p['d_wo'], p['d_bo'] = _dense(ks[7], d, d)
    p['d_ln1g'], p['d_ln1b'] = ones, zeros
    p['d_cwq'], p['d_cbq'] = _dense(ks[8], d, d)
    p['d_cwkv'], p['d_cbkv'] = _dense(ks[9], d, 2 * d)     # fused K|V
    p['d_cwo'], p['d_cbo'] = _dense(ks[10], d, d)
    p['d_ln2g'], p['d_ln2b'] = ones, zeros
    p['d_w1'], p['d_b1'] = _dense(ks[11], d, f)
    p['d_w2'], p['d_b2'] = _dense(ks[12], f, d)
    p['d_ln3g'], p['d_ln3b'] = ones, zeros
    p['head_w'], p['head_b'] = _dense(ks[13], d, 4)        # fused mu|scale
    return p


# ===================== pure-JAX reference (for self-check) ====================

_HI = jax.lax.Precision.HIGHEST


def _ref_ln(x, g, b):
    m = x.mean(-1, keepdims=True)
    v = ((x - m) ** 2).mean(-1, keepdims=True)
    return (x - m) * jax.lax.rsqrt(v + 1e-5) * g + b


def _ref_attn(q, k, v, wo, bo, causal):
    B, Tq, D = q.shape
    Tk = k.shape[1]
    H, dh = N_HEAD, _HEAD_DIM
    qh = q.reshape(B, Tq, H, dh).transpose(0, 2, 1, 3)
    kh = k.reshape(B, Tk, H, dh).transpose(0, 2, 1, 3)
    vh = v.reshape(B, Tk, H, dh).transpose(0, 2, 1, 3)
    s = jnp.einsum('bhqd,bhkd->bhqk', qh, kh, precision=_HI) / math.sqrt(dh)
    if causal:
        s = s + jnp.where(jnp.arange(Tk)[None, :] > jnp.arange(Tq)[:, None],
                          _NEG, 0.0)
    p = jax.nn.softmax(s, axis=-1)
    o = jnp.einsum('bhqk,bhkd->bhqd', p, vh, precision=_HI)
    o = o.transpose(0, 2, 1, 3).reshape(B, Tq, D)
    return jnp.matmul(o, wo, precision=_HI) + bo


def _reference_forward(params, traj_rel, z, robotID, mean_pred=True):
    p = params
    D = D_MODEL
    batch = traj_rel.shape[1]
    num_h = batch // SAMPLE_BATCH
    pe = jnp.asarray(_positional_encoding(max(OBS_LEN, PRED_STEPS), D))
    mm = functools.partial(jnp.matmul, precision=_HI)

    if mean_pred:
        noise = jnp.zeros((PRED_STEPS, batch, 2), jnp.float32)
    else:
        noise = jax.random.normal(jax.random.PRNGKey(1),
                                  (PRED_STEPS, batch, 2), jnp.float32)
    noise = noise.at[:, robotID].set(z)

    x = jnp.transpose(traj_rel[:OBS_LEN, :num_h], (1, 0, 2))
    x = mm(x, p['e_emb_w']) + p['e_emb_b'] + pe[:OBS_LEN][None]
    q = mm(x, p['e_wqkv'][:, :D]) + p['e_bqkv'][:, :D]
    k = mm(x, p['e_wqkv'][:, D:2 * D]) + p['e_bqkv'][:, D:2 * D]
    v = mm(x, p['e_wqkv'][:, 2 * D:]) + p['e_bqkv'][:, 2 * D:]
    a = _ref_attn(q, k, v, p['e_wo'], p['e_bo'], causal=False)
    x = _ref_ln(x + a, p['e_ln1g'], p['e_ln1b'])
    f = mm(jnp.maximum(mm(x, p['e_w1']) + p['e_b1'], 0.0), p['e_w2']) + p['e_b2']
    mem = _ref_ln(x + f, p['e_ln2g'], p['e_ln2b'])

    y = jnp.broadcast_to((pe[:PRED_STEPS] + p['d_emb_b'])[None],
                         (num_h, PRED_STEPS, D))
    q = mm(y, p['d_wqkv'][:, :D]) + p['d_bqkv'][:, :D]
    k = mm(y, p['d_wqkv'][:, D:2 * D]) + p['d_bqkv'][:, D:2 * D]
    v = mm(y, p['d_wqkv'][:, 2 * D:]) + p['d_bqkv'][:, 2 * D:]
    a = _ref_attn(q, k, v, p['d_wo'], p['d_bo'], causal=True)
    y = _ref_ln(y + a, p['d_ln1g'], p['d_ln1b'])
    qc = mm(y, p['d_cwq']) + p['d_cbq']
    kc = mm(mem, p['d_cwkv'][:, :D]) + p['d_cbkv'][:, :D]
    vc = mm(mem, p['d_cwkv'][:, D:]) + p['d_cbkv'][:, D:]
    c = _ref_attn(qc, kc, vc, p['d_cwo'], p['d_cbo'], causal=False)
    y = _ref_ln(y + c, p['d_ln2g'], p['d_ln2b'])
    f = mm(jnp.maximum(mm(y, p['d_w1']) + p['d_b1'], 0.0), p['d_w2']) + p['d_b2']
    y = _ref_ln(y + f, p['d_ln3g'], p['d_ln3b'])

    ms = mm(y, p['head_w']) + p['head_b']
    mu = jnp.transpose(ms[..., 0:2], (1, 0, 2))                     # (T, num_h, 2)
    sc = jnp.transpose(jnp.clip(ms[..., 2:4], -9.0, 4.0), (1, 0, 2))
    mu_rep = jnp.tile(mu, (1, SAMPLE_BATCH, 1))
    sc_rep = jnp.tile(sc, (1, SAMPLE_BATCH, 1))
    out = mu_rep + jnp.exp(sc_rep) * noise
    nll = jnp.sum((out[:, robotID] - mu_rep[:, robotID]) ** 2)
    return out, mu_rep, sc_rep, nll


# ==================================== main ====================================

if __name__ == "__main__":
    key = jax.random.PRNGKey(0)
    kp, kt, kz, kr = jax.random.split(key, 4)
    params = init_params(kp)
    w_slab, v_slab = pack_params(params)

    num_h = 2
    batch = num_h * SAMPLE_BATCH                     # total sampled batch = 8
    traj_rel = jax.random.normal(kt, (OBS_LEN, batch, 2), jnp.float32) * 0.1
    z = jax.random.normal(kz, (PRED_STEPS, 2), jnp.float32) * 0.1
    robot_state = jax.random.normal(kr, (batch, 5), jnp.float32)
    robotID = 0

    fwd = jax.jit(trajectory_generator_forward)
    out, mu, scale, clamped, nll = fwd(w_slab, v_slab, traj_rel, robot_state, z,
                                       jnp.int32(robotID))
    jax.block_until_ready((out, mu, scale, nll))

    assert out.shape == (PRED_STEPS, batch, 2)
    assert mu.shape == (PRED_STEPS, batch, 2)
    assert scale.shape == (PRED_STEPS, batch, 2)
    assert clamped.shape == (0, 1, 2)
    assert nll.shape == ()

    # correctness self-check against a pure-JAX f32 reference of the same forward
    ref_out, ref_mu, ref_sc, ref_nll = _reference_forward(params, traj_rel, z, robotID)
    np.testing.assert_allclose(np.asarray(out), np.asarray(ref_out),
                               rtol=5e-2, atol=5e-2)
    np.testing.assert_allclose(np.asarray(mu), np.asarray(ref_mu),
                               rtol=5e-2, atol=5e-2)
    np.testing.assert_allclose(np.asarray(scale), np.asarray(ref_sc),
                               rtol=5e-2, atol=5e-2)
    np.testing.assert_allclose(float(nll), float(ref_nll), rtol=1e-1, atol=2e-2)

    print("KERNEL_OK")
</pallas_src>

<mosaic_0001>
module attributes {stable_mosaic.version = 11 : i64} {
  func.func @_forward_kernel(%arg0: memref<1xi32, #tpu.memory_space<smem>>, %arg1: memref<16x2xf32, #tpu.memory_space<vmem>>, %arg2: memref<96x2xf32, #tpu.memory_space<vmem>>, %arg3: memref<456x96xbf16, #tpu.memory_space<vmem>>, %arg4: memref<24x96xf32, #tpu.memory_space<vmem>>, %arg5: memref<40x32xf32, #tpu.memory_space<vmem>>, %arg6: memref<96x6xf32, #tpu.memory_space<vmem>>, %arg7: memref<1x1xf32, #tpu.memory_space<vmem>>) attributes {dimension_semantics = [], scalar_prefetch = 0 : i64, scratch_operands = 0 : i64, tpu.core_type = #tpu.core_type<tc>} {
    %c0 = arith.constant 0 : index
    %c0_0 = arith.constant 0 : index
    %0 = vector.load %arg1[%c0, %c0_0] : memref<16x2xf32, #tpu.memory_space<vmem>>, vector<16x2xf32>
    %c0_1 = arith.constant 0 : index
    %c0_2 = arith.constant 0 : index
    %1 = vector.load %arg3[%c0_1, %c0_2] : memref<456x96xbf16, #tpu.memory_space<vmem>>, vector<2x32xbf16>
    %2 = arith.truncf %0 : vector<16x2xf32> to vector<16x2xbf16>
    %cst = arith.constant dense<0.000000e+00> : vector<16x32xf32>
    %3 = tpu.matmul %2, %1, %cst {dimension_numbers = #tpu.dot_dimension_numbers<[1], [0], [0], [1], [0, 0, 1, 1], [], []>} : vector<16x2xbf16>, vector<2x32xbf16>, vector<16x32xf32> -> vector<16x32xf32>
    %c0_3 = arith.constant 0 : index
    %c0_4 = arith.constant 0 : index
    %4 = vector.load %arg4[%c0_3, %c0_4] : memref<24x96xf32, #tpu.memory_space<vmem>>, vector<1x32xf32>
    %5 = vector.broadcast %4 : vector<1x32xf32> to vector<16x32xf32>
    %6 = arith.addf %3, %5 : vector<16x32xf32>
    %c0_5 = arith.constant 0 : index
    %c0_6 = arith.constant 0 : index
    %7 = vector.load %arg5[%c0_5, %c0_6] : memref<40x32xf32, #tpu.memory_space<vmem>>, vector<16x32xf32>
    %8 = arith.addf %6, %7 : vector<16x32xf32>
    %c8 = arith.constant 8 : index
    %c0_7 = arith.constant 0 : index
    %9 = vector.load %arg3[%c8, %c0_7] : memref<456x96xbf16, #tpu.memory_space<vmem>>, vector<32x96xbf16>
    %10 = arith.truncf %8 : vector<16x32xf32> to vector<16x32xbf16>
    %cst_8 = arith.constant dense<0.000000e+00> : vector<16x96xf32>
    %11 = tpu.matmul %10, %9, %cst_8 {dimension_numbers = #tpu.dot_dimension_numbers<[1], [0], [0], [1], [0, 0, 1, 1], [], []>} : vector<16x32xbf16>, vector<32x96xbf16>, vector<16x96xf32> -> vector<16x96xf32>
    %c1 = arith.constant 1 : index
    %c0_9 = arith.constant 0 : index
    %12 = vector.load %arg4[%c1, %c0_9] : memref<24x96xf32, #tpu.memory_space<vmem>>, vector<1x96xf32>
    %13 = vector.broadcast %12 : vector<1x96xf32> to vector<16x96xf32>
    %14 = arith.addf %11, %13 : vector<16x96xf32>
    %15 = vector.extract_strided_slice %14 {offsets = [0, 0], sizes = [16, 32], strides = [1, 1]} : vector<16x96xf32> to vector<16x32xf32>
    %16 = vector.extract_strided_slice %14 {offsets = [0, 32], sizes = [16, 32], strides = [1, 1]} : vector<16x96xf32> to vector<16x32xf32>
    %17 = vector.extract_strided_slice %14 {offsets = [0, 64], sizes = [16, 32], strides = [1, 1]} : vector<16x96xf32> to vector<16x32xf32>
    %c40 = arith.constant 40 : index
    %c0_10 = arith.constant 0 : index
    %18 = vector.load %arg3[%c40, %c0_10] : memref<456x96xbf16, #tpu.memory_space<vmem>>, vector<32x32xbf16>
    %c2 = arith.constant 2 : index
    %c0_11 = arith.constant 0 : index
    %19 = vector.load %arg4[%c2, %c0_11] : memref<24x96xf32, #tpu.memory_space<vmem>>, vector<1x32xf32>
    %20 = tpu.iota {dimensions = array<i32: 0>} : vector<64x32xi32>
    %21 = arith.sitofp %20 : vector<64x32xi32> to vector<64x32xf32>
    %22 = tpu.iota {dimensions = array<i32: 1>} : vector<64x32xi32>
    %23 = arith.sitofp %22 : vector<64x32xi32> to vector<64x32xf32>
    %cst_12 = arith.constant 5.000000e-01 : f32
    %24 = vector.broadcast %cst_12 : f32 to vector<64x32xf32>
    %25 = arith.addf %21, %24 : vector<64x32xf32>
    %cst_13 = arith.constant 6.250000e-02 : f32
    %26 = vector.broadcast %cst_13 : f32 to vector<64x32xf32>
    %27 = arith.mulf %25, %26 : vector<64x32xf32>
    %28 = math.floor %27 : vector<64x32xf32>
    %cst_14 = arith.constant 5.000000e-01 : f32
    %29 = vector.broadcast %cst_14 : f32 to vector<64x32xf32>
    %30 = arith.addf %23, %29 : vector<64x32xf32>
    %cst_15 = arith.constant 1.250000e-01 : f32
    %31 = vector.broadcast %cst_15 : f32 to vector<64x32xf32>
    %32 = arith.mulf %30, %31 : vector<64x32xf32>
    %33 = math.floor %32 : vector<64x32xf32>
    %34 = arith.cmpf oeq, %28, %33 : vector<64x32xf32>
    %cst_16 = arith.constant 1.000000e+00 : f32
    %cst_17 = arith.constant 0.000000e+00 : f32
    %35 = vector.broadcast %cst_16 : f32 to vector<64x32xf32>
    %36 = vector.broadcast %cst_17 : f32 to vector<64x32xf32>
    %37 = arith.select %34, %35, %36 : vector<64x32xi1>, vector<64x32xf32>
    %38 = tpu.iota {dimensions = array<i32: 0>} : vector<64x64xi32>
    %39 = arith.sitofp %38 : vector<64x64xi32> to vector<64x64xf32>
    %40 = tpu.iota {dimensions = array<i32: 1>} : vector<64x64xi32>
    %41 = arith.sitofp %40 : vector<64x64xi32> to vector<64x64xf32>
    %cst_18 = arith.constant 5.000000e-01 : f32
    %42 = vector.broadcast %cst_18 : f32 to vector<64x64xf32>
    %43 = arith.addf %39, %42 : vector<64x64xf32>
    %cst_19 = arith.constant 6.250000e-02 : f32
    %44 = vector.broadcast %cst_19 : f32 to vector<64x64xf32>
    %45 = arith.mulf %43, %44 : vector<64x64xf32>
    %46 = math.floor %45 : vector<64x64xf32>
    %cst_20 = arith.constant 5.000000e-01 : f32
    %47 = vector.broadcast %cst_20 : f32 to vector<64x64xf32>
    %48 = arith.addf %41, %47 : vector<64x64xf32>
    %cst_21 = arith.constant 6.250000e-02 : f32
    %49 = vector.broadcast %cst_21 : f32 to vector<64x64xf32>
    %50 = arith.mulf %48, %49 : vector<64x64xf32>
    %51 = math.floor %50 : vector<64x64xf32>
    %52 = arith.cmpf oeq, %46, %51 : vector<64x64xf32>
    %cst_22 = arith.constant 5.000000e-01 : f32
    %53 = vector.broadcast %cst_22 : f32 to vector<64x64xf32>
    %54 = arith.addf %39, %53 : vector<64x64xf32>
    %cst_23 = arith.constant 5.000000e-01 : f32
    %55 = vector.broadcast %cst_23 : f32 to vector<64x64xf32>
    %56 = arith.mulf %54, %55 : vector<64x64xf32>
    %57 = math.floor %56 : vector<64x64xf32>
    %cst_24 = arith.constant 2.000000e+00 : f32
    %58 = vector.broadcast %cst_24 : f32 to vector<64x64xf32>
    %59 = arith.mulf %58, %57 : vector<64x64xf32>
    %60 = arith.subf %39, %59 : vector<64x64xf32>
    %cst_25 = arith.constant 5.000000e-01 : f32
    %61 = vector.broadcast %cst_25 : f32 to vector<64x64xf32>
    %62 = arith.addf %41, %61 : vector<64x64xf32>
    %cst_26 = arith.constant 5.000000e-01 : f32
    %63 = vector.broadcast %cst_26 : f32 to vector<64x64xf32>
    %64 = arith.mulf %62, %63 : vector<64x64xf32>
    %65 = math.floor %64 : vector<64x64xf32>
    %cst_27 = arith.constant 2.000000e+00 : f32
    %66 = vector.broadcast %cst_27 : f32 to vector<64x64xf32>
    %67 = arith.mulf %66, %65 : vector<64x64xf32>
    %68 = arith.subf %41, %67 : vector<64x64xf32>
    %69 = arith.cmpf oeq, %60, %68 : vector<64x64xf32>
    %70 = arith.andi %52, %69 : vector<64x64xi1>
    %cst_28 = arith.constant 1.000000e+00 : f32
    %cst_29 = arith.constant 0.000000e+00 : f32
    %71 = vector.broadcast %cst_28 : f32 to vector<64x64xf32>
    %72 = vector.broadcast %cst_29 : f32 to vector<64x64xf32>
    %73 = arith.select %70, %71, %72 : vector<64x64xi1>, vector<64x64xf32>
    %74 = tpu.iota {dimensions = array<i32: 0>} : vector<16x64xi32>
    %75 = arith.sitofp %74 : vector<16x64xi32> to vector<16x64xf32>
    %76 = tpu.iota {dimensions = array<i32: 1>} : vector<16x64xi32>
    %77 = arith.sitofp %76 : vector<16x64xi32> to vector<16x64xf32>
    %cst_30 = arith.constant 5.000000e-01 : f32
    %78 = vector.broadcast %cst_30 : f32 to vector<16x64xf32>
    %79 = arith.addf %75, %78 : vector<16x64xf32>
    %cst_31 = arith.constant 5.000000e-01 : f32
    %80 = vector.broadcast %cst_31 : f32 to vector<16x64xf32>
    %81 = arith.mulf %79, %80 : vector<16x64xf32>
    %82 = math.floor %81 : vector<16x64xf32>
    %cst_32 = arith.constant 2.000000e+00 : f32
    %83 = vector.broadcast %cst_32 : f32 to vector<16x64xf32>
    %84 = arith.mulf %83, %82 : vector<16x64xf32>
    %85 = arith.subf %75, %84 : vector<16x64xf32>
    %cst_33 = arith.constant 5.000000e-01 : f32
    %86 = vector.broadcast %cst_33 : f32 to vector<16x64xf32>
    %87 = arith.addf %77, %86 : vector<16x64xf32>
    %cst_34 = arith.constant 5.000000e-01 : f32
    %88 = vector.broadcast %cst_34 : f32 to vector<16x64xf32>
    %89 = arith.mulf %87, %88 : vector<16x64xf32>
    %90 = math.floor %89 : vector<16x64xf32>
    %cst_35 = arith.constant 2.000000e+00 : f32
    %91 = vector.broadcast %cst_35 : f32 to vector<16x64xf32>
    %92 = arith.mulf %91, %90 : vector<16x64xf32>
    %93 = arith.subf %77, %92 : vector<16x64xf32>
    %94 = arith.cmpf oeq, %85, %93 : vector<16x64xf32>
    %cst_36 = arith.constant 0.000000e+00 : f32
    %cst_37 = arith.constant -1.000000e+09 : f32
    %95 = vector.broadcast %cst_36 : f32 to vector<16x64xf32>
    %96 = vector.broadcast %cst_37 : f32 to vector<16x64xf32>
    %97 = arith.select %94, %95, %96 : vector<16x64xi1>, vector<16x64xf32>
    %98 = tpu.concatenate %16, %16, %16, %16 in 0 : vector<16x32xf32>, vector<16x32xf32>, vector<16x32xf32>, vector<16x32xf32> -> vector<64x32xf32>
    %99 = arith.mulf %98, %37 : vector<64x32xf32>
    %100 = tpu.concatenate %17, %17, %17, %17 in 0 : vector<16x32xf32>, vector<16x32xf32>, vector<16x32xf32>, vector<16x32xf32> -> vector<64x32xf32>
    %101 = arith.mulf %100, %37 : vector<64x32xf32>
    %102 = arith.truncf %15 : vector<16x32xf32> to vector<16x32xbf16>
    %103 = arith.truncf %99 : vector<64x32xf32> to vector<64x32xbf16>
    %cst_38 = arith.constant dense<0.000000e+00> : vector<16x64xf32>
    %104 = tpu.matmul %102, %103, %cst_38 {dimension_numbers = #tpu.dot_dimension_numbers<[1], [1], [0], [0], [0, 0, 1, 0], [], []>} : vector<16x32xbf16>, vector<64x32xbf16>, vector<16x64xf32> -> vector<16x64xf32>
    %cst_39 = arith.constant 0.353553385 : f32
    %105 = vector.broadcast %cst_39 : f32 to vector<16x64xf32>
    %106 = arith.mulf %104, %105 : vector<16x64xf32>
    %107 = arith.addf %106, %97 : vector<16x64xf32>
    %cst_40 = arith.constant dense<0xFF800000> : vector<16xf32>
    %108 = vector.multi_reduction <maximumf>, %107, %cst_40 [1] : vector<16x64xf32> to vector<16xf32>
    %109 = vector.shape_cast %108 : vector<16xf32> to vector<16x1xf32>
    %110 = vector.broadcast %109 : vector<16x1xf32> to vector<16x64xf32>
    %111 = arith.subf %107, %110 : vector<16x64xf32>
    %112 = math.exp %111 : vector<16x64xf32>
    %cst_41 = arith.constant dense<0.000000e+00> : vector<16x64xf32>
    %113 = tpu.matmul %112, %73, %cst_41 {dimension_numbers = #tpu.dot_dimension_numbers<[1], [0], [0], [1], [0, 0, 1, 1], [], []>} : vector<16x64xf32>, vector<64x64xf32>, vector<16x64xf32> -> vector<16x64xf32>
    %cst_42 = arith.constant 1.000000e-30 : f32
    %114 = vector.broadcast %cst_42 : f32 to vector<16x64xf32>
    %115 = arith.addf %113, %114 : vector<16x64xf32>
    %116 = tpu.reciprocal %115 : vector<16x64xf32> -> vector<16x64xf32>
    %117 = arith.mulf %112, %116 : vector<16x64xf32>
    %118 = arith.truncf %117 : vector<16x64xf32> to vector<16x64xbf16>
    %119 = arith.truncf %101 : vector<64x32xf32> to vector<64x32xbf16>
    %cst_43 = arith.constant dense<0.000000e+00> : vector<16x32xf32>
    %120 = tpu.matmul %118, %119, %cst_43 {dimension_numbers = #tpu.dot_dimension_numbers<[1], [0], [0], [1], [0, 0, 1, 1], [], []>} : vector<16x64xbf16>, vector<64x32xbf16>, vector<16x32xf32> -> vector<16x32xf32>
    %121 = arith.truncf %120 : vector<16x32xf32> to vector<16x32xbf16>
    %cst_44 = arith.constant dense<0.000000e+00> : vector<16x32xf32>
    %122 = tpu.matmul %121, %18, %cst_44 {dimension_numbers = #tpu.dot_dimension_numbers<[1], [0], [0], [1], [0, 0, 1, 1], [], []>} : vector<16x32xbf16>, vector<32x32xbf16>, vector<16x32xf32> -> vector<16x32xf32>
    %123 = vector.broadcast %19 : vector<1x32xf32> to vector<16x32xf32>
    %124 = arith.addf %122, %123 : vector<16x32xf32>
    %125 = arith.addf %8, %124 : vector<16x32xf32>
    %c3 = arith.constant 3 : index
    %c0_45 = arith.constant 0 : index
    %126 = vector.load %arg4[%c3, %c0_45] : memref<24x96xf32, #tpu.memory_space<vmem>>, vector<1x32xf32>
    %c4 = arith.constant 4 : index
    %c0_46 = arith.constant 0 : index
    %127 = vector.load %arg4[%c4, %c0_46] : memref<24x96xf32, #tpu.memory_space<vmem>>, vector<1x32xf32>
    %cst_47 = arith.constant dense<0.000000e+00> : vector<16xf32>
    %128 = vector.multi_reduction <add>, %125, %cst_47 [1] : vector<16x32xf32> to vector<16xf32>
    %129 = vector.shape_cast %128 : vector<16xf32> to vector<16x1xf32>
    %cst_48 = arith.constant 3.200000e+01 : f32
    %130 = vector.broadcast %cst_48 : f32 to vector<16x1xf32>
    %131 = arith.divf %129, %130 : vector<16x1xf32>
    %132 = vector.broadcast %131 : vector<16x1xf32> to vector<16x32xf32>
    %133 = arith.subf %125, %132 : vector<16x32xf32>
    %134 = arith.mulf %133, %133 : vector<16x32xf32>
    %cst_49 = arith.constant dense<0.000000e+00> : vector<16xf32>
    %135 = vector.multi_reduction <add>, %134, %cst_49 [1] : vector<16x32xf32> to vector<16xf32>
    %136 = vector.shape_cast %135 : vector<16xf32> to vector<16x1xf32>
    %cst_50 = arith.constant 3.200000e+01 : f32
    %137 = vector.broadcast %cst_50 : f32 to vector<16x1xf32>
    %138 = arith.divf %136, %137 : vector<16x1xf32>
    %139 = vector.broadcast %131 : vector<16x1xf32> to vector<16x32xf32>
    %140 = arith.subf %125, %139 : vector<16x32xf32>
    %cst_51 = arith.constant 9.99999974E-6 : f32
    %141 = vector.broadcast %cst_51 : f32 to vector<16x1xf32>
    %142 = arith.addf %138, %141 : vector<16x1xf32>
    %143 = math.rsqrt %142 : vector<16x1xf32>
    %144 = vector.broadcast %143 : vector<16x1xf32> to vector<16x32xf32>
    %145 = arith.mulf %140, %144 : vector<16x32xf32>
    %146 = vector.broadcast %126 : vector<1x32xf32> to vector<16x32xf32>
    %147 = arith.mulf %145, %146 : vector<16x32xf32>
    %148 = vector.broadcast %127 : vector<1x32xf32> to vector<16x32xf32>
    %149 = arith.addf %147, %148 : vector<16x32xf32>
    %c72 = arith.constant 72 : index
    %c0_52 = arith.constant 0 : index
    %150 = vector.load %arg3[%c72, %c0_52] : memref<456x96xbf16, #tpu.memory_space<vmem>>, vector<32x64xbf16>
    %151 = arith.truncf %149 : vector<16x32xf32> to vector<16x32xbf16>
    %cst_53 = arith.constant dense<0.000000e+00> : vector<16x64xf32>
    %152 = tpu.matmul %151, %150, %cst_53 {dimension_numbers = #tpu.dot_dimension_numbers<[1], [0], [0], [1], [0, 0, 1, 1], [], []>} : vector<16x32xbf16>, vector<32x64xbf16>, vector<16x64xf32> -> vector<16x64xf32>
    %c5 = arith.constant 5 : index
    %c0_54 = arith.constant 0 : index
    %153 = vector.load %arg4[%c5, %c0_54] : memref<24x96xf32, #tpu.memory_space<vmem>>, vector<1x64xf32>
    %154 = vector.broadcast %153 : vector<1x64xf32> to vector<16x64xf32>
    %155 = arith.addf %152, %154 : vector<16x64xf32>
    %cst_55 = arith.constant 0.000000e+00 : f32
    %156 = vector.broadcast %cst_55 : f32 to vector<16x64xf32>
    %157 = arith.maximumf %155, %156 : vector<16x64xf32>
    %c104 = arith.constant 104 : index
    %c0_56 = arith.constant 0 : index
    %158 = vector.load %arg3[%c104, %c0_56] : memref<456x96xbf16, #tpu.memory_space<vmem>>, vector<64x32xbf16>
    %159 = arith.truncf %157 : vector<16x64xf32> to vector<16x64xbf16>
    %cst_57 = arith.constant dense<0.000000e+00> : vector<16x32xf32>
    %160 = tpu.matmul %159, %158, %cst_57 {dimension_numbers = #tpu.dot_dimension_numbers<[1], [0], [0], [1], [0, 0, 1, 1], [], []>} : vector<16x64xbf16>, vector<64x32xbf16>, vector<16x32xf32> -> vector<16x32xf32>
    %c6 = arith.constant 6 : index
    %c0_58 = arith.constant 0 : index
    %161 = vector.load %arg4[%c6, %c0_58] : memref<24x96xf32, #tpu.memory_space<vmem>>, vector<1x32xf32>
    %162 = vector.broadcast %161 : vector<1x32xf32> to vector<16x32xf32>
    %163 = arith.addf %160, %162 : vector<16x32xf32>
    %164 = arith.addf %149, %163 : vector<16x32xf32>
    %c7 = arith.constant 7 : index
    %c0_59 = arith.constant 0 : index
    %165 = vector.load %arg4[%c7, %c0_59] : memref<24x96xf32, #tpu.memory_space<vmem>>, vector<1x32xf32>
    %c8_60 = arith.constant 8 : index
    %c0_61 = arith.constant 0 : index
    %166 = vector.load %arg4[%c8_60, %c0_61] : memref<24x96xf32, #tpu.memory_space<vmem>>, vector<1x32xf32>
    %cst_62 = arith.constant dense<0.000000e+00> : vector<16xf32>
    %167 = vector.multi_reduction <add>, %164, %cst_62 [1] : vector<16x32xf32> to vector<16xf32>
    %168 = vector.shape_cast %167 : vector<16xf32> to vector<16x1xf32>
    %cst_63 = arith.constant 3.200000e+01 : f32
    %169 = vector.broadcast %cst_63 : f32 to vector<16x1xf32>
    %170 = arith.divf %168, %169 : vector<16x1xf32>
    %171 = vector.broadcast %170 : vector<16x1xf32> to vector<16x32xf32>
    %172 = arith.subf %164, %171 : vector<16x32xf32>
    %173 = arith.mulf %172, %172 : vector<16x32xf32>
    %cst_64 = arith.constant dense<0.000000e+00> : vector<16xf32>
    %174 = vector.multi_reduction <add>, %173, %cst_64 [1] : vector<16x32xf32> to vector<16xf32>
    %175 = vector.shape_cast %174 : vector<16xf32> to vector<16x1xf32>
    %cst_65 = arith.constant 3.200000e+01 : f32
    %176 = vector.broadcast %cst_65 : f32 to vector<16x1xf32>
    %177 = arith.divf %175, %176 : vector<16x1xf32>
    %178 = vector.broadcast %170 : vector<16x1xf32> to vector<16x32xf32>
    %179 = arith.subf %164, %178 : vector<16x32xf32>
    %cst_66 = arith.constant 9.99999974E-6 : f32
    %180 = vector.broadcast %cst_66 : f32 to vector<16x1xf32>
    %181 = arith.addf %177, %180 : vector<16x1xf32>
    %182 = math.rsqrt %181 : vector<16x1xf32>
    %183 = vector.broadcast %182 : vector<16x1xf32> to vector<16x32xf32>
    %184 = arith.mulf %179, %183 : vector<16x32xf32>
    %185 = vector.broadcast %165 : vector<1x32xf32> to vector<16x32xf32>
    %186 = arith.mulf %184, %185 : vector<16x32xf32>
    %187 = vector.broadcast %166 : vector<1x32xf32> to vector<16x32xf32>
    %188 = arith.addf %186, %187 : vector<16x32xf32>
    %c9 = arith.constant 9 : index
    %c0_67 = arith.constant 0 : index
    %189 = vector.load %arg4[%c9, %c0_67] : memref<24x96xf32, #tpu.memory_space<vmem>>, vector<1x32xf32>
    %c16 = arith.constant 16 : index
    %c0_68 = arith.constant 0 : index
    %190 = vector.load %arg5[%c16, %c0_68] : memref<40x32xf32, #tpu.memory_space<vmem>>, vector<24x32xf32>
    %191 = vector.broadcast %189 : vector<1x32xf32> to vector<24x32xf32>
    %192 = arith.addf %191, %190 : vector<24x32xf32>
    %c168 = arith.constant 168 : index
    %c0_69 = arith.constant 0 : index
    %193 = vector.load %arg3[%c168, %c0_69] : memref<456x96xbf16, #tpu.memory_space<vmem>>, vector<32x96xbf16>
    %194 = arith.truncf %192 : vector<24x32xf32> to vector<24x32xbf16>
    %cst_70 = arith.constant dense<0.000000e+00> : vector<24x96xf32>
    %195 = tpu.matmul %194, %193, %cst_70 {dimension_numbers = #tpu.dot_dimension_numbers<[1], [0], [0], [1], [0, 0, 1, 1], [], []>} : vector<24x32xbf16>, vector<32x96xbf16>, vector<24x96xf32> -> vector<24x96xf32>
    %c10 = arith.constant 10 : index
    %c0_71 = arith.constant 0 : index
    %196 = vector.load %arg4[%c10, %c0_71] : memref<24x96xf32, #tpu.memory_space<vmem>>, vector<1x96xf32>
    %197 = vector.broadcast %196 : vector<1x96xf32> to vector<24x96xf32>
    %198 = arith.addf %195, %197 : vector<24x96xf32>
    %199 = vector.extract_strided_slice %198 {offsets = [0, 0], sizes = [24, 32], strides = [1, 1]} : vector<24x96xf32> to vector<24x32xf32>
    %200 = vector.extract_strided_slice %198 {offsets = [0, 32], sizes = [24, 32], strides = [1, 1]} : vector<24x96xf32> to vector<24x32xf32>
    %201 = vector.extract_strided_slice %198 {offsets = [0, 64], sizes = [24, 32], strides = [1, 1]} : vector<24x96xf32> to vector<24x32xf32>
    %c200 = arith.constant 200 : index
    %c0_72 = arith.constant 0 : index
    %202 = vector.load %arg3[%c200, %c0_72] : memref<456x96xbf16, #tpu.memory_space<vmem>>, vector<32x32xbf16>
    %c11 = arith.constant 11 : index
    %c0_73 = arith.constant 0 : index
    %203 = vector.load %arg4[%c11, %c0_73] : memref<24x96xf32, #tpu.memory_space<vmem>>, vector<1x32xf32>
    %204 = tpu.iota {dimensions = array<i32: 0>} : vector<96x32xi32>
    %205 = arith.sitofp %204 : vector<96x32xi32> to vector<96x32xf32>
    %206 = tpu.iota {dimensions = array<i32: 1>} : vector<96x32xi32>
    %207 = arith.sitofp %206 : vector<96x32xi32> to vector<96x32xf32>
    %cst_74 = arith.constant 5.000000e-01 : f32
    %208 = vector.broadcast %cst_74 : f32 to vector<96x32xf32>
    %209 = arith.addf %205, %208 : vector<96x32xf32>
    %cst_75 = arith.constant 0.0416666679 : f32
    %210 = vector.broadcast %cst_75 : f32 to vector<96x32xf32>
    %211 = arith.mulf %209, %210 : vector<96x32xf32>
    %212 = math.floor %211 : vector<96x32xf32>
    %cst_76 = arith.constant 5.000000e-01 : f32
    %213 = vector.broadcast %cst_76 : f32 to vector<96x32xf32>
    %214 = arith.addf %207, %213 : vector<96x32xf32>
    %cst_77 = arith.constant 1.250000e-01 : f32
    %215 = vector.broadcast %cst_77 : f32 to vector<96x32xf32>
    %216 = arith.mulf %214, %215 : vector<96x32xf32>
    %217 = math.floor %216 : vector<96x32xf32>
    %218 = arith.cmpf oeq, %212, %217 : vector<96x32xf32>
    %cst_78 = arith.constant 1.000000e+00 : f32
    %cst_79 = arith.constant 0.000000e+00 : f32
    %219 = vector.broadcast %cst_78 : f32 to vector<96x32xf32>
    %220 = vector.broadcast %cst_79 : f32 to vector<96x32xf32>
    %221 = arith.select %218, %219, %220 : vector<96x32xi1>, vector<96x32xf32>
    %222 = tpu.iota {dimensions = array<i32: 0>} : vector<96x96xi32>
    %223 = arith.sitofp %222 : vector<96x96xi32> to vector<96x96xf32>
    %224 = tpu.iota {dimensions = array<i32: 1>} : vector<96x96xi32>
    %225 = arith.sitofp %224 : vector<96x96xi32> to vector<96x96xf32>
    %cst_80 = arith.constant 5.000000e-01 : f32
    %226 = vector.broadcast %cst_80 : f32 to vector<96x96xf32>
    %227 = arith.addf %223, %226 : vector<96x96xf32>
    %cst_81 = arith.constant 0.0416666679 : f32
    %228 = vector.broadcast %cst_81 : f32 to vector<96x96xf32>
    %229 = arith.mulf %227, %228 : vector<96x96xf32>
    %230 = math.floor %229 : vector<96x96xf32>
    %cst_82 = arith.constant 5.000000e-01 : f32
    %231 = vector.broadcast %cst_82 : f32 to vector<96x96xf32>
    %232 = arith.addf %225, %231 : vector<96x96xf32>
    %cst_83 = arith.constant 0.0416666679 : f32
    %233 = vector.broadcast %cst_83 : f32 to vector<96x96xf32>
    %234 = arith.mulf %232, %233 : vector<96x96xf32>
    %235 = math.floor %234 : vector<96x96xf32>
    %236 = arith.cmpf oeq, %230, %235 : vector<96x96xf32>
    %cst_84 = arith.constant 5.000000e-01 : f32
    %237 = vector.broadcast %cst_84 : f32 to vector<96x96xf32>
    %238 = arith.addf %223, %237 : vector<96x96xf32>
    %cst_85 = arith.constant 5.000000e-01 : f32
    %239 = vector.broadcast %cst_85 : f32 to vector<96x96xf32>
    %240 = arith.mulf %238, %239 : vector<96x96xf32>
    %241 = math.floor %240 : vector<96x96xf32>
    %cst_86 = arith.constant 2.000000e+00 : f32
    %242 = vector.broadcast %cst_86 : f32 to vector<96x96xf32>
    %243 = arith.mulf %242, %241 : vector<96x96xf32>
    %244 = arith.subf %223, %243 : vector<96x96xf32>
    %cst_87 = arith.constant 5.000000e-01 : f32
    %245 = vector.broadcast %cst_87 : f32 to vector<96x96xf32>
    %246 = arith.addf %225, %245 : vector<96x96xf32>
    %cst_88 = arith.constant 5.000000e-01 : f32
    %247 = vector.broadcast %cst_88 : f32 to vector<96x96xf32>
    %248 = arith.mulf %246, %247 : vector<96x96xf32>
    %249 = math.floor %248 : vector<96x96xf32>
    %cst_89 = arith.constant 2.000000e+00 : f32
    %250 = vector.broadcast %cst_89 : f32 to vector<96x96xf32>
    %251 = arith.mulf %250, %249 : vector<96x96xf32>
    %252 = arith.subf %225, %251 : vector<96x96xf32>
    %253 = arith.cmpf oeq, %244, %252 : vector<96x96xf32>
    %254 = arith.andi %236, %253 : vector<96x96xi1>
    %cst_90 = arith.constant 1.000000e+00 : f32
    %cst_91 = arith.constant 0.000000e+00 : f32
    %255 = vector.broadcast %cst_90 : f32 to vector<96x96xf32>
    %256 = vector.broadcast %cst_91 : f32 to vector<96x96xf32>
    %257 = arith.select %254, %255, %256 : vector<96x96xi1>, vector<96x96xf32>
    %258 = tpu.iota {dimensions = array<i32: 0>} : vector<24x96xi32>
    %259 = arith.sitofp %258 : vector<24x96xi32> to vector<24x96xf32>
    %260 = tpu.iota {dimensions = array<i32: 1>} : vector<24x96xi32>
    %261 = arith.sitofp %260 : vector<24x96xi32> to vector<24x96xf32>
    %cst_92 = arith.constant 5.000000e-01 : f32
    %262 = vector.broadcast %cst_92 : f32 to vector<24x96xf32>
    %263 = arith.addf %259, %262 : vector<24x96xf32>
    %cst_93 = arith.constant 5.000000e-01 : f32
    %264 = vector.broadcast %cst_93 : f32 to vector<24x96xf32>
    %265 = arith.mulf %263, %264 : vector<24x96xf32>
    %266 = math.floor %265 : vector<24x96xf32>
    %cst_94 = arith.constant 2.000000e+00 : f32
    %267 = vector.broadcast %cst_94 : f32 to vector<24x96xf32>
    %268 = arith.mulf %267, %266 : vector<24x96xf32>
    %269 = arith.subf %259, %268 : vector<24x96xf32>
    %cst_95 = arith.constant 5.000000e-01 : f32
    %270 = vector.broadcast %cst_95 : f32 to vector<24x96xf32>
    %271 = arith.addf %261, %270 : vector<24x96xf32>
    %cst_96 = arith.constant 5.000000e-01 : f32
    %272 = vector.broadcast %cst_96 : f32 to vector<24x96xf32>
    %273 = arith.mulf %271, %272 : vector<24x96xf32>
    %274 = math.floor %273 : vector<24x96xf32>
    %cst_97 = arith.constant 2.000000e+00 : f32
    %275 = vector.broadcast %cst_97 : f32 to vector<24x96xf32>
    %276 = arith.mulf %275, %274 : vector<24x96xf32>
    %277 = arith.subf %261, %276 : vector<24x96xf32>
    %278 = arith.cmpf oeq, %269, %277 : vector<24x96xf32>
    %cst_98 = arith.constant 5.000000e-01 : f32
    %279 = vector.broadcast %cst_98 : f32 to vector<24x96xf32>
    %280 = arith.addf %261, %279 : vector<24x96xf32>
    %cst_99 = arith.constant 0.0416666679 : f32
    %281 = vector.broadcast %cst_99 : f32 to vector<24x96xf32>
    %282 = arith.mulf %280, %281 : vector<24x96xf32>
    %283 = math.floor %282 : vector<24x96xf32>
    %cst_100 = arith.constant 2.400000e+01 : f32
    %284 = vector.broadcast %cst_100 : f32 to vector<24x96xf32>
    %285 = arith.mulf %284, %283 : vector<24x96xf32>
    %286 = arith.subf %261, %285 : vector<24x96xf32>
    %cst_101 = arith.constant 5.000000e-01 : f32
    %287 = vector.broadcast %cst_101 : f32 to vector<24x96xf32>
    %288 = arith.addf %286, %287 : vector<24x96xf32>
    %cst_102 = arith.constant 5.000000e-01 : f32
    %289 = vector.broadcast %cst_102 : f32 to vector<24x96xf32>
    %290 = arith.mulf %288, %289 : vector<24x96xf32>
    %291 = math.floor %290 : vector<24x96xf32>
    %cst_103 = arith.constant 5.000000e-01 : f32
    %292 = vector.broadcast %cst_103 : f32 to vector<24x96xf32>
    %293 = arith.addf %259, %292 : vector<24x96xf32>
    %cst_104 = arith.constant 5.000000e-01 : f32
    %294 = vector.broadcast %cst_104 : f32 to vector<24x96xf32>
    %295 = arith.mulf %293, %294 : vector<24x96xf32>
    %296 = math.floor %295 : vector<24x96xf32>
    %297 = arith.cmpf ole, %291, %296 : vector<24x96xf32>
    %298 = arith.andi %278, %297 : vector<24x96xi1>
    %cst_105 = arith.constant 0.000000e+00 : f32
    %cst_106 = arith.constant -1.000000e+09 : f32
    %299 = vector.broadcast %cst_105 : f32 to vector<24x96xf32>
    %300 = vector.broadcast %cst_106 : f32 to vector<24x96xf32>
    %301 = arith.select %298, %299, %300 : vector<24x96xi1>, vector<24x96xf32>
    %302 = tpu.concatenate %200, %200, %200, %200 in 0 : vector<24x32xf32>, vector<24x32xf32>, vector<24x32xf32>, vector<24x32xf32> -> vector<96x32xf32>
    %303 = arith.mulf %302, %221 : vector<96x32xf32>
    %304 = tpu.concatenate %201, %201, %201, %201 in 0 : vector<24x32xf32>, vector<24x32xf32>, vector<24x32xf32>, vector<24x32xf32> -> vector<96x32xf32>
    %305 = arith.mulf %304, %221 : vector<96x32xf32>
    %306 = arith.truncf %199 : vector<24x32xf32> to vector<24x32xbf16>
    %307 = arith.truncf %303 : vector<96x32xf32> to vector<96x32xbf16>
    %cst_107 = arith.constant dense<0.000000e+00> : vector<24x96xf32>
    %308 = tpu.matmul %306, %307, %cst_107 {dimension_numbers = #tpu.dot_dimension_numbers<[1], [1], [0], [0], [0, 0, 1, 0], [], []>} : vector<24x32xbf16>, vector<96x32xbf16>, vector<24x96xf32> -> vector<24x96xf32>
    %cst_108 = arith.constant 0.353553385 : f32
    %309 = vector.broadcast %cst_108 : f32 to vector<24x96xf32>
    %310 = arith.mulf %308, %309 : vector<24x96xf32>
    %311 = arith.addf %310, %301 : vector<24x96xf32>
    %cst_109 = arith.constant dense<0xFF800000> : vector<24xf32>
    %312 = vector.multi_reduction <maximumf>, %311, %cst_109 [1] : vector<24x96xf32> to vector<24xf32>
    %313 = vector.shape_cast %312 : vector<24xf32> to vector<24x1xf32>
    %314 = vector.broadcast %313 : vector<24x1xf32> to vector<24x96xf32>
    %315 = arith.subf %311, %314 : vector<24x96xf32>
    %316 = math.exp %315 : vector<24x96xf32>
    %cst_110 = arith.constant dense<0.000000e+00> : vector<24x96xf32>
    %317 = tpu.matmul %316, %257, %cst_110 {dimension_numbers = #tpu.dot_dimension_numbers<[1], [0], [0], [1], [0, 0, 1, 1], [], []>} : vector<24x96xf32>, vector<96x96xf32>, vector<24x96xf32> -> vector<24x96xf32>
    %cst_111 = arith.constant 1.000000e-30 : f32
    %318 = vector.broadcast %cst_111 : f32 to vector<24x96xf32>
    %319 = arith.addf %317, %318 : vector<24x96xf32>
    %320 = tpu.reciprocal %319 : vector<24x96xf32> -> vector<24x96xf32>
    %321 = arith.mulf %316, %320 : vector<24x96xf32>
    %322 = arith.truncf %321 : vector<24x96xf32> to vector<24x96xbf16>
    %323 = arith.truncf %305 : vector<96x32xf32> to vector<96x32xbf16>
    %cst_112 = arith.constant dense<0.000000e+00> : vector<24x32xf32>
    %324 = tpu.matmul %322, %323, %cst_112 {dimension_numbers = #tpu.dot_dimension_numbers<[1], [0], [0], [1], [0, 0, 1, 1], [], []>} : vector<24x96xbf16>, vector<96x32xbf16>, vector<24x32xf32> -> vector<24x32xf32>
    %325 = arith.truncf %324 : vector<24x32xf32> to vector<24x32xbf16>
    %cst_113 = arith.constant dense<0.000000e+00> : vector<24x32xf32>
    %326 = tpu.matmul %325, %202, %cst_113 {dimension_numbers = #tpu.dot_dimension_numbers<[1], [0], [0], [1], [0, 0, 1, 1], [], []>} : vector<24x32xbf16>, vector<32x32xbf16>, vector<24x32xf32> -> vector<24x32xf32>
    %327 = vector.broadcast %203 : vector<1x32xf32> to vector<24x32xf32>
    %328 = arith.addf %326, %327 : vector<24x32xf32>
    %329 = arith.addf %192, %328 : vector<24x32xf32>
    %c12 = arith.constant 12 : index
    %c0_114 = arith.constant 0 : index
    %330 = vector.load %arg4[%c12, %c0_114] : memref<24x96xf32, #tpu.memory_space<vmem>>, vector<1x32xf32>
    %c13 = arith.constant 13 : index
    %c0_115 = arith.constant 0 : index
    %331 = vector.load %arg4[%c13, %c0_115] : memref<24x96xf32, #tpu.memory_space<vmem>>, vector<1x32xf32>
    %cst_116 = arith.constant dense<0.000000e+00> : vector<24xf32>
    %332 = vector.multi_reduction <add>, %329, %cst_116 [1] : vector<24x32xf32> to vector<24xf32>
    %333 = vector.shape_cast %332 : vector<24xf32> to vector<24x1xf32>
    %cst_117 = arith.constant 3.200000e+01 : f32
    %334 = vector.broadcast %cst_117 : f32 to vector<24x1xf32>
    %335 = arith.divf %333, %334 : vector<24x1xf32>
    %336 = vector.broadcast %335 : vector<24x1xf32> to vector<24x32xf32>
    %337 = arith.subf %329, %336 : vector<24x32xf32>
    %338 = arith.mulf %337, %337 : vector<24x32xf32>
    %cst_118 = arith.constant dense<0.000000e+00> : vector<24xf32>
    %339 = vector.multi_reduction <add>, %338, %cst_118 [1] : vector<24x32xf32> to vector<24xf32>
    %340 = vector.shape_cast %339 : vector<24xf32> to vector<24x1xf32>
    %cst_119 = arith.constant 3.200000e+01 : f32
    %341 = vector.broadcast %cst_119 : f32 to vector<24x1xf32>
    %342 = arith.divf %340, %341 : vector<24x1xf32>
    %343 = vector.broadcast %335 : vector<24x1xf32> to vector<24x32xf32>
    %344 = arith.subf %329, %343 : vector<24x32xf32>
    %cst_120 = arith.constant 9.99999974E-6 : f32
    %345 = vector.broadcast %cst_120 : f32 to vector<24x1xf32>
    %346 = arith.addf %342, %345 : vector<24x1xf32>
    %347 = math.rsqrt %346 : vector<24x1xf32>
    %348 = vector.broadcast %347 : vector<24x1xf32> to vector<24x32xf32>
    %349 = arith.mulf %344, %348 : vector<24x32xf32>
    %350 = vector.broadcast %330 : vector<1x32xf32> to vector<24x32xf32>
    %351 = arith.mulf %349, %350 : vector<24x32xf32>
    %352 = vector.broadcast %331 : vector<1x32xf32> to vector<24x32xf32>
    %353 = arith.addf %351, %352 : vector<24x32xf32>
    %c232 = arith.constant 232 : index
    %c0_121 = arith.constant 0 : index
    %354 = vector.load %arg3[%c232, %c0_121] : memref<456x96xbf16, #tpu.memory_space<vmem>>, vector<32x32xbf16>
    %355 = arith.truncf %353 : vector<24x32xf32> to vector<24x32xbf16>
    %cst_122 = arith.constant dense<0.000000e+00> : vector<24x32xf32>
    %356 = tpu.matmul %355, %354, %cst_122 {dimension_numbers = #tpu.dot_dimension_numbers<[1], [0], [0], [1], [0, 0, 1, 1], [], []>} : vector<24x32xbf16>, vector<32x32xbf16>, vector<24x32xf32> -> vector<24x32xf32>
    %c14 = arith.constant 14 : index
    %c0_123 = arith.constant 0 : index
    %357 = vector.load %arg4[%c14, %c0_123] : memref<24x96xf32, #tpu.memory_space<vmem>>, vector<1x32xf32>
    %358 = vector.broadcast %357 : vector<1x32xf32> to vector<24x32xf32>
    %359 = arith.addf %356, %358 : vector<24x32xf32>
    %c264 = arith.constant 264 : index
    %c0_124 = arith.constant 0 : index
    %360 = vector.load %arg3[%c264, %c0_124] : memref<456x96xbf16, #tpu.memory_space<vmem>>, vector<32x64xbf16>
    %361 = arith.truncf %188 : vector<16x32xf32> to vector<16x32xbf16>
    %cst_125 = arith.constant dense<0.000000e+00> : vector<16x64xf32>
    %362 = tpu.matmul %361, %360, %cst_125 {dimension_numbers = #tpu.dot_dimension_numbers<[1], [0], [0], [1], [0, 0, 1, 1], [], []>} : vector<16x32xbf16>, vector<32x64xbf16>, vector<16x64xf32> -> vector<16x64xf32>
    %c15 = arith.constant 15 : index
    %c0_126 = arith.constant 0 : index
    %363 = vector.load %arg4[%c15, %c0_126] : memref<24x96xf32, #tpu.memory_space<vmem>>, vector<1x64xf32>
    %364 = vector.broadcast %363 : vector<1x64xf32> to vector<16x64xf32>
    %365 = arith.addf %362, %364 : vector<16x64xf32>
    %366 = vector.extract_strided_slice %365 {offsets = [0, 0], sizes = [16, 32], strides = [1, 1]} : vector<16x64xf32> to vector<16x32xf32>
    %367 = vector.extract_strided_slice %365 {offsets = [0, 32], sizes = [16, 32], strides = [1, 1]} : vector<16x64xf32> to vector<16x32xf32>
    %c296 = arith.constant 296 : index
    %c0_127 = arith.constant 0 : index
    %368 = vector.load %arg3[%c296, %c0_127] : memref<456x96xbf16, #tpu.memory_space<vmem>>, vector<32x32xbf16>
    %c16_128 = arith.constant 16 : index
    %c0_129 = arith.constant 0 : index
    %369 = vector.load %arg4[%c16_128, %c0_129] : memref<24x96xf32, #tpu.memory_space<vmem>>, vector<1x32xf32>
    %370 = tpu.iota {dimensions = array<i32: 0>} : vector<64x32xi32>
    %371 = arith.sitofp %370 : vector<64x32xi32> to vector<64x32xf32>
    %372 = tpu.iota {dimensions = array<i32: 1>} : vector<64x32xi32>
    %373 = arith.sitofp %372 : vector<64x32xi32> to vector<64x32xf32>
    %cst_130 = arith.constant 5.000000e-01 : f32
    %374 = vector.broadcast %cst_130 : f32 to vector<64x32xf32>
    %375 = arith.addf %371, %374 : vector<64x32xf32>
    %cst_131 = arith.constant 6.250000e-02 : f32
    %376 = vector.broadcast %cst_131 : f32 to vector<64x32xf32>
    %377 = arith.mulf %375, %376 : vector<64x32xf32>
    %378 = math.floor %377 : vector<64x32xf32>
    %cst_132 = arith.constant 5.000000e-01 : f32
    %379 = vector.broadcast %cst_132 : f32 to vector<64x32xf32>
    %380 = arith.addf %373, %379 : vector<64x32xf32>
    %cst_133 = arith.constant 1.250000e-01 : f32
    %381 = vector.broadcast %cst_133 : f32 to vector<64x32xf32>
    %382 = arith.mulf %380, %381 : vector<64x32xf32>
    %383 = math.floor %382 : vector<64x32xf32>
    %384 = arith.cmpf oeq, %378, %383 : vector<64x32xf32>
    %cst_134 = arith.constant 1.000000e+00 : f32
    %cst_135 = arith.constant 0.000000e+00 : f32
    %385 = vector.broadcast %cst_134 : f32 to vector<64x32xf32>
    %386 = vector.broadcast %cst_135 : f32 to vector<64x32xf32>
    %387 = arith.select %384, %385, %386 : vector<64x32xi1>, vector<64x32xf32>
    %388 = tpu.iota {dimensions = array<i32: 0>} : vector<64x64xi32>
    %389 = arith.sitofp %388 : vector<64x64xi32> to vector<64x64xf32>
    %390 = tpu.iota {dimensions = array<i32: 1>} : vector<64x64xi32>
    %391 = arith.sitofp %390 : vector<64x64xi32> to vector<64x64xf32>
    %cst_136 = arith.constant 5.000000e-01 : f32
    %392 = vector.broadcast %cst_136 : f32 to vector<64x64xf32>
    %393 = arith.addf %389, %392 : vector<64x64xf32>
    %cst_137 = arith.constant 6.250000e-02 : f32
    %394 = vector.broadcast %cst_137 : f32 to vector<64x64xf32>
    %395 = arith.mulf %393, %394 : vector<64x64xf32>
    %396 = math.floor %395 : vector<64x64xf32>
    %cst_138 = arith.constant 5.000000e-01 : f32
    %397 = vector.broadcast %cst_138 : f32 to vector<64x64xf32>
    %398 = arith.addf %391, %397 : vector<64x64xf32>
    %cst_139 = arith.constant 6.250000e-02 : f32
    %399 = vector.broadcast %cst_139 : f32 to vector<64x64xf32>
    %400 = arith.mulf %398, %399 : vector<64x64xf32>
    %401 = math.floor %400 : vector<64x64xf32>
    %402 = arith.cmpf oeq, %396, %401 : vector<64x64xf32>
    %cst_140 = arith.constant 5.000000e-01 : f32
    %403 = vector.broadcast %cst_140 : f32 to vector<64x64xf32>
    %404 = arith.addf %389, %403 : vector<64x64xf32>
    %cst_141 = arith.constant 5.000000e-01 : f32
    %405 = vector.broadcast %cst_141 : f32 to vector<64x64xf32>
    %406 = arith.mulf %404, %405 : vector<64x64xf32>
    %407 = math.floor %406 : vector<64x64xf32>
    %cst_142 = arith.constant 2.000000e+00 : f32
    %408 = vector.broadcast %cst_142 : f32 to vector<64x64xf32>
    %409 = arith.mulf %408, %407 : vector<64x64xf32>
    %410 = arith.subf %389, %409 : vector<64x64xf32>
    %cst_143 = arith.constant 5.000000e-01 : f32
    %411 = vector.broadcast %cst_143 : f32 to vector<64x64xf32>
    %412 = arith.addf %391, %411 : vector<64x64xf32>
    %cst_144 = arith.constant 5.000000e-01 : f32
    %413 = vector.broadcast %cst_144 : f32 to vector<64x64xf32>
    %414 = arith.mulf %412, %413 : vector<64x64xf32>
    %415 = math.floor %414 : vector<64x64xf32>
    %cst_145 = arith.constant 2.000000e+00 : f32
    %416 = vector.broadcast %cst_145 : f32 to vector<64x64xf32>
    %417 = arith.mulf %416, %415 : vector<64x64xf32>
    %418 = arith.subf %391, %417 : vector<64x64xf32>
    %419 = arith.cmpf oeq, %410, %418 : vector<64x64xf32>
    %420 = arith.andi %402, %419 : vector<64x64xi1>
    %cst_146 = arith.constant 1.000000e+00 : f32
    %cst_147 = arith.constant 0.000000e+00 : f32
    %421 = vector.broadcast %cst_146 : f32 to vector<64x64xf32>
    %422 = vector.broadcast %cst_147 : f32 to vector<64x64xf32>
    %423 = arith.select %420, %421, %422 : vector<64x64xi1>, vector<64x64xf32>
    %424 = tpu.iota {dimensions = array<i32: 0>} : vector<24x64xi32>
    %425 = arith.sitofp %424 : vector<24x64xi32> to vector<24x64xf32>
    %426 = tpu.iota {dimensions = array<i32: 1>} : vector<24x64xi32>
    %427 = arith.sitofp %426 : vector<24x64xi32> to vector<24x64xf32>
    %cst_148 = arith.constant 5.000000e-01 : f32
    %428 = vector.broadcast %cst_148 : f32 to vector<24x64xf32>
    %429 = arith.addf %425, %428 : vector<24x64xf32>
    %cst_149 = arith.constant 5.000000e-01 : f32
    %430 = vector.broadcast %cst_149 : f32 to vector<24x64xf32>
    %431 = arith.mulf %429, %430 : vector<24x64xf32>
    %432 = math.floor %431 : vector<24x64xf32>
    %cst_150 = arith.constant 2.000000e+00 : f32
    %433 = vector.broadcast %cst_150 : f32 to vector<24x64xf32>
    %434 = arith.mulf %433, %432 : vector<24x64xf32>
    %435 = arith.subf %425, %434 : vector<24x64xf32>
    %cst_151 = arith.constant 5.000000e-01 : f32
    %436 = vector.broadcast %cst_151 : f32 to vector<24x64xf32>
    %437 = arith.addf %427, %436 : vector<24x64xf32>
    %cst_152 = arith.constant 5.000000e-01 : f32
    %438 = vector.broadcast %cst_152 : f32 to vector<24x64xf32>
    %439 = arith.mulf %437, %438 : vector<24x64xf32>
    %440 = math.floor %439 : vector<24x64xf32>
    %cst_153 = arith.constant 2.000000e+00 : f32
    %441 = vector.broadcast %cst_153 : f32 to vector<24x64xf32>
    %442 = arith.mulf %441, %440 : vector<24x64xf32>
    %443 = arith.subf %427, %442 : vector<24x64xf32>
    %444 = arith.cmpf oeq, %435, %443 : vector<24x64xf32>
    %cst_154 = arith.constant 0.000000e+00 : f32
    %cst_155 = arith.constant -1.000000e+09 : f32
    %445 = vector.broadcast %cst_154 : f32 to vector<24x64xf32>
    %446 = vector.broadcast %cst_155 : f32 to vector<24x64xf32>
    %447 = arith.select %444, %445, %446 : vector<24x64xi1>, vector<24x64xf32>
    %448 = tpu.concatenate %366, %366, %366, %366 in 0 : vector<16x32xf32>, vector<16x32xf32>, vector<16x32xf32>, vector<16x32xf32> -> vector<64x32xf32>
    %449 = arith.mulf %448, %387 : vector<64x32xf32>
    %450 = tpu.concatenate %367, %367, %367, %367 in 0 : vector<16x32xf32>, vector<16x32xf32>, vector<16x32xf32>, vector<16x32xf32> -> vector<64x32xf32>
    %451 = arith.mulf %450, %387 : vector<64x32xf32>
    %452 = arith.truncf %359 : vector<24x32xf32> to vector<24x32xbf16>
    %453 = arith.truncf %449 : vector<64x32xf32> to vector<64x32xbf16>
    %cst_156 = arith.constant dense<0.000000e+00> : vector<24x64xf32>
    %454 = tpu.matmul %452, %453, %cst_156 {dimension_numbers = #tpu.dot_dimension_numbers<[1], [1], [0], [0], [0, 0, 1, 0], [], []>} : vector<24x32xbf16>, vector<64x32xbf16>, vector<24x64xf32> -> vector<24x64xf32>
    %cst_157 = arith.constant 0.353553385 : f32
    %455 = vector.broadcast %cst_157 : f32 to vector<24x64xf32>
    %456 = arith.mulf %454, %455 : vector<24x64xf32>
    %457 = arith.addf %456, %447 : vector<24x64xf32>
    %cst_158 = arith.constant dense<0xFF800000> : vector<24xf32>
    %458 = vector.multi_reduction <maximumf>, %457, %cst_158 [1] : vector<24x64xf32> to vector<24xf32>
    %459 = vector.shape_cast %458 : vector<24xf32> to vector<24x1xf32>
    %460 = vector.broadcast %459 : vector<24x1xf32> to vector<24x64xf32>
    %461 = arith.subf %457, %460 : vector<24x64xf32>
    %462 = math.exp %461 : vector<24x64xf32>
    %cst_159 = arith.constant dense<0.000000e+00> : vector<24x64xf32>
    %463 = tpu.matmul %462, %423, %cst_159 {dimension_numbers = #tpu.dot_dimension_numbers<[1], [0], [0], [1], [0, 0, 1, 1], [], []>} : vector<24x64xf32>, vector<64x64xf32>, vector<24x64xf32> -> vector<24x64xf32>
    %cst_160 = arith.constant 1.000000e-30 : f32
    %464 = vector.broadcast %cst_160 : f32 to vector<24x64xf32>
    %465 = arith.addf %463, %464 : vector<24x64xf32>
    %466 = tpu.reciprocal %465 : vector<24x64xf32> -> vector<24x64xf32>
    %467 = arith.mulf %462, %466 : vector<24x64xf32>
    %468 = arith.truncf %467 : vector<24x64xf32> to vector<24x64xbf16>
    %469 = arith.truncf %451 : vector<64x32xf32> to vector<64x32xbf16>
    %cst_161 = arith.constant dense<0.000000e+00> : vector<24x32xf32>
    %470 = tpu.matmul %468, %469, %cst_161 {dimension_numbers = #tpu.dot_dimension_numbers<[1], [0], [0], [1], [0, 0, 1, 1], [], []>} : vector<24x64xbf16>, vector<64x32xbf16>, vector<24x32xf32> -> vector<24x32xf32>
    %471 = arith.truncf %470 : vector<24x32xf32> to vector<24x32xbf16>
    %cst_162 = arith.constant dense<0.000000e+00> : vector<24x32xf32>
    %472 = tpu.matmul %471, %368, %cst_162 {dimension_numbers = #tpu.dot_dimension_numbers<[1], [0], [0], [1], [0, 0, 1, 1], [], []>} : vector<24x32xbf16>, vector<32x32xbf16>, vector<24x32xf32> -> vector<24x32xf32>
    %473 = vector.broadcast %369 : vector<1x32xf32> to vector<24x32xf32>
    %474 = arith.addf %472, %473 : vector<24x32xf32>
    %475 = arith.addf %353, %474 : vector<24x32xf32>
    %c17 = arith.constant 17 : index
    %c0_163 = arith.constant 0 : index
    %476 = vector.load %arg4[%c17, %c0_163] : memref<24x96xf32, #tpu.memory_space<vmem>>, vector<1x32xf32>
    %c18 = arith.constant 18 : index
    %c0_164 = arith.constant 0 : index
    %477 = vector.load %arg4[%c18, %c0_164] : memref<24x96xf32, #tpu.memory_space<vmem>>, vector<1x32xf32>
    %cst_165 = arith.constant dense<0.000000e+00> : vector<24xf32>
    %478 = vector.multi_reduction <add>, %475, %cst_165 [1] : vector<24x32xf32> to vector<24xf32>
    %479 = vector.shape_cast %478 : vector<24xf32> to vector<24x1xf32>
    %cst_166 = arith.constant 3.200000e+01 : f32
    %480 = vector.broadcast %cst_166 : f32 to vector<24x1xf32>
    %481 = arith.divf %479, %480 : vector<24x1xf32>
    %482 = vector.broadcast %481 : vector<24x1xf32> to vector<24x32xf32>
    %483 = arith.subf %475, %482 : vector<24x32xf32>
    %484 = arith.mulf %483, %483 : vector<24x32xf32>
    %cst_167 = arith.constant dense<0.000000e+00> : vector<24xf32>
    %485 = vector.multi_reduction <add>, %484, %cst_167 [1] : vector<24x32xf32> to vector<24xf32>
    %486 = vector.shape_cast %485 : vector<24xf32> to vector<24x1xf32>
    %cst_168 = arith.constant 3.200000e+01 : f32
    %487 = vector.broadcast %cst_168 : f32 to vector<24x1xf32>
    %488 = arith.divf %486, %487 : vector<24x1xf32>
    %489 = vector.broadcast %481 : vector<24x1xf32> to vector<24x32xf32>
    %490 = arith.subf %475, %489 : vector<24x32xf32>
    %cst_169 = arith.constant 9.99999974E-6 : f32
    %491 = vector.broadcast %cst_169 : f32 to vector<24x1xf32>
    %492 = arith.addf %488, %491 : vector<24x1xf32>
    %493 = math.rsqrt %492 : vector<24x1xf32>
    %494 = vector.broadcast %493 : vector<24x1xf32> to vector<24x32xf32>
    %495 = arith.mulf %490, %494 : vector<24x32xf32>
    %496 = vector.broadcast %476 : vector<1x32xf32> to vector<24x32xf32>
    %497 = arith.mulf %495, %496 : vector<24x32xf32>
    %498 = vector.broadcast %477 : vector<1x32xf32> to vector<24x32xf32>
    %499 = arith.addf %497, %498 : vector<24x32xf32>
    %c328 = arith.constant 328 : index
    %c0_170 = arith.constant 0 : index
    %500 = vector.load %arg3[%c328, %c0_170] : memref<456x96xbf16, #tpu.memory_space<vmem>>, vector<32x64xbf16>
    %501 = arith.truncf %499 : vector<24x32xf32> to vector<24x32xbf16>
    %cst_171 = arith.constant dense<0.000000e+00> : vector<24x64xf32>
    %502 = tpu.matmul %501, %500, %cst_171 {dimension_numbers = #tpu.dot_dimension_numbers<[1], [0], [0], [1], [0, 0, 1, 1], [], []>} : vector<24x32xbf16>, vector<32x64xbf16>, vector<24x64xf32> -> vector<24x64xf32>
    %c19 = arith.constant 19 : index
    %c0_172 = arith.constant 0 : index
    %503 = vector.load %arg4[%c19, %c0_172] : memref<24x96xf32, #tpu.memory_space<vmem>>, vector<1x64xf32>
    %504 = vector.broadcast %503 : vector<1x64xf32> to vector<24x64xf32>
    %505 = arith.addf %502, %504 : vector<24x64xf32>
    %cst_173 = arith.constant 0.000000e+00 : f32
    %506 = vector.broadcast %cst_173 : f32 to vector<24x64xf32>
    %507 = arith.maximumf %505, %506 : vector<24x64xf32>
    %c360 = arith.constant 360 : index
    %c0_174 = arith.constant 0 : index
    %508 = vector.load %arg3[%c360, %c0_174] : memref<456x96xbf16, #tpu.memory_space<vmem>>, vector<64x32xbf16>
    %509 = arith.truncf %507 : vector<24x64xf32> to vector<24x64xbf16>
    %cst_175 = arith.constant dense<0.000000e+00> : vector<24x32xf32>
    %510 = tpu.matmul %509, %508, %cst_175 {dimension_numbers = #tpu.dot_dimension_numbers<[1], [0], [0], [1], [0, 0, 1, 1], [], []>} : vector<24x64xbf16>, vector<64x32xbf16>, vector<24x32xf32> -> vector<24x32xf32>
    %c20 = arith.constant 20 : index
    %c0_176 = arith.constant 0 : index
    %511 = vector.load %arg4[%c20, %c0_176] : memref<24x96xf32, #tpu.memory_space<vmem>>, vector<1x32xf32>
    %512 = vector.broadcast %511 : vector<1x32xf32> to vector<24x32xf32>
    %513 = arith.addf %510, %512 : vector<24x32xf32>
    %514 = arith.addf %499, %513 : vector<24x32xf32>
    %c21 = arith.constant 21 : index
    %c0_177 = arith.constant 0 : index
    %515 = vector.load %arg4[%c21, %c0_177] : memref<24x96xf32, #tpu.memory_space<vmem>>, vector<1x32xf32>
    %c22 = arith.constant 22 : index
    %c0_178 = arith.constant 0 : index
    %516 = vector.load %arg4[%c22, %c0_178] : memref<24x96xf32, #tpu.memory_space<vmem>>, vector<1x32xf32>
    %cst_179 = arith.constant dense<0.000000e+00> : vector<24xf32>
    %517 = vector.multi_reduction <add>, %514, %cst_179 [1] : vector<24x32xf32> to vector<24xf32>
    %518 = vector.shape_cast %517 : vector<24xf32> to vector<24x1xf32>
    %cst_180 = arith.constant 3.200000e+01 : f32
    %519 = vector.broadcast %cst_180 : f32 to vector<24x1xf32>
    %520 = arith.divf %518, %519 : vector<24x1xf32>
    %521 = vector.broadcast %520 : vector<24x1xf32> to vector<24x32xf32>
    %522 = arith.subf %514, %521 : vector<24x32xf32>
    %523 = arith.mulf %522, %522 : vector<24x32xf32>
    %cst_181 = arith.constant dense<0.000000e+00> : vector<24xf32>
    %524 = vector.multi_reduction <add>, %523, %cst_181 [1] : vector<24x32xf32> to vector<24xf32>
    %525 = vector.shape_cast %524 : vector<24xf32> to vector<24x1xf32>
    %cst_182 = arith.constant 3.200000e+01 : f32
    %526 = vector.broadcast %cst_182 : f32 to vector<24x1xf32>
    %527 = arith.divf %525, %526 : vector<24x1xf32>
    %528 = vector.broadcast %520 : vector<24x1xf32> to vector<24x32xf32>
    %529 = arith.subf %514, %528 : vector<24x32xf32>
    %cst_183 = arith.constant 9.99999974E-6 : f32
    %530 = vector.broadcast %cst_183 : f32 to vector<24x1xf32>
    %531 = arith.addf %527, %530 : vector<24x1xf32>
    %532 = math.rsqrt %531 : vector<24x1xf32>
    %533 = vector.broadcast %532 : vector<24x1xf32> to vector<24x32xf32>
    %534 = arith.mulf %529, %533 : vector<24x32xf32>
    %535 = vector.broadcast %515 : vector<1x32xf32> to vector<24x32xf32>
    %536 = arith.mulf %534, %535 : vector<24x32xf32>
    %537 = vector.broadcast %516 : vector<1x32xf32> to vector<24x32xf32>
    %538 = arith.addf %536, %537 : vector<24x32xf32>
    %c424 = arith.constant 424 : index
    %c0_184 = arith.constant 0 : index
    %539 = vector.load %arg3[%c424, %c0_184] : memref<456x96xbf16, #tpu.memory_space<vmem>>, vector<32x4xbf16>
    %540 = arith.truncf %538 : vector<24x32xf32> to vector<24x32xbf16>
    %cst_185 = arith.constant dense<0.000000e+00> : vector<24x4xf32>
    %541 = tpu.matmul %540, %539, %cst_185 {dimension_numbers = #tpu.dot_dimension_numbers<[1], [0], [0], [1], [0, 0, 1, 1], [], []>} : vector<24x32xbf16>, vector<32x4xbf16>, vector<24x4xf32> -> vector<24x4xf32>
    %c23 = arith.constant 23 : index
    %c0_186 = arith.constant 0 : index
    %542 = vector.load %arg4[%c23, %c0_186] : memref<24x96xf32, #tpu.memory_space<vmem>>, vector<1x4xf32>
    %543 = vector.broadcast %542 : vector<1x4xf32> to vector<24x4xf32>
    %544 = arith.addf %541, %543 : vector<24x4xf32>
    %545 = tpu.iota {dimensions = array<i32: 1>} : vector<24x4xi32>
    %c2_i32 = arith.constant 2 : i32
    %546 = vector.broadcast %c2_i32 : i32 to vector<24x4xi32>
    %547 = arith.cmpi sge, %545, %546 : vector<24x4xi32>
    %cst_187 = arith.constant -9.000000e+00 : f32
    %cst_188 = arith.constant 4.000000e+00 : f32
    %548 = vector.broadcast %cst_187 : f32 to vector<24x4xf32>
    %549 = arith.maximumf %548, %544 : vector<24x4xf32>
    %550 = vector.broadcast %cst_188 : f32 to vector<24x4xf32>
    %551 = arith.minimumf %550, %549 : vector<24x4xf32>
    %552 = arith.select %547, %551, %544 : vector<24x4xi1>, vector<24x4xf32>
    %553 = tpu.iota {dimensions = array<i32: 0>} : vector<96x24xi32>
    %554 = arith.sitofp %553 : vector<96x24xi32> to vector<96x24xf32>
    %555 = tpu.iota {dimensions = array<i32: 1>} : vector<96x24xi32>
    %556 = arith.sitofp %555 : vector<96x24xi32> to vector<96x24xf32>
    %cst_189 = arith.constant 5.000000e-01 : f32
    %557 = vector.broadcast %cst_189 : f32 to vector<96x24xf32>
    %558 = arith.addf %554, %557 : vector<96x24xf32>
    %cst_190 = arith.constant 1.250000e-01 : f32
    %559 = vector.broadcast %cst_190 : f32 to vector<96x24xf32>
    %560 = arith.mulf %558, %559 : vector<96x24xf32>
    %561 = math.floor %560 : vector<96x24xf32>
    %cst_191 = arith.constant 5.000000e-01 : f32
    %562 = vector.broadcast %cst_191 : f32 to vector<96x24xf32>
    %563 = arith.addf %556, %562 : vector<96x24xf32>
    %cst_192 = arith.constant 5.000000e-01 : f32
    %564 = vector.broadcast %cst_192 : f32 to vector<96x24xf32>
    %565 = arith.mulf %563, %564 : vector<96x24xf32>
    %566 = math.floor %565 : vector<96x24xf32>
    %567 = arith.cmpf oeq, %561, %566 : vector<96x24xf32>
    %cst_193 = arith.constant 5.000000e-01 : f32
    %568 = vector.broadcast %cst_193 : f32 to vector<96x24xf32>
    %569 = arith.addf %554, %568 : vector<96x24xf32>
    %cst_194 = arith.constant 5.000000e-01 : f32
    %570 = vector.broadcast %cst_194 : f32 to vector<96x24xf32>
    %571 = arith.mulf %569, %570 : vector<96x24xf32>
    %572 = math.floor %571 : vector<96x24xf32>
    %cst_195 = arith.constant 2.000000e+00 : f32
    %573 = vector.broadcast %cst_195 : f32 to vector<96x24xf32>
    %574 = arith.mulf %573, %572 : vector<96x24xf32>
    %575 = arith.subf %554, %574 : vector<96x24xf32>
    %cst_196 = arith.constant 5.000000e-01 : f32
    %576 = vector.broadcast %cst_196 : f32 to vector<96x24xf32>
    %577 = arith.addf %556, %576 : vector<96x24xf32>
    %cst_197 = arith.constant 5.000000e-01 : f32
    %578 = vector.broadcast %cst_197 : f32 to vector<96x24xf32>
    %579 = arith.mulf %577, %578 : vector<96x24xf32>
    %580 = math.floor %579 : vector<96x24xf32>
    %cst_198 = arith.constant 2.000000e+00 : f32
    %581 = vector.broadcast %cst_198 : f32 to vector<96x24xf32>
    %582 = arith.mulf %581, %580 : vector<96x24xf32>
    %583 = arith.subf %556, %582 : vector<96x24xf32>
    %584 = arith.cmpf oeq, %575, %583 : vector<96x24xf32>
    %585 = arith.andi %567, %584 : vector<96x24xi1>
    %cst_199 = arith.constant 1.000000e+00 : f32
    %cst_200 = arith.constant 0.000000e+00 : f32
    %586 = vector.broadcast %cst_199 : f32 to vector<96x24xf32>
    %587 = vector.broadcast %cst_200 : f32 to vector<96x24xf32>
    %588 = arith.select %585, %586, %587 : vector<96x24xi1>, vector<96x24xf32>
    %cst_201 = arith.constant dense<0.000000e+00> : vector<96x4xf32>
    %589 = tpu.matmul %588, %552, %cst_201 {dimension_numbers = #tpu.dot_dimension_numbers<[1], [0], [0], [1], [0, 0, 1, 1], [], []>} : vector<96x24xf32>, vector<24x4xf32>, vector<96x4xf32> -> vector<96x4xf32>
    %590 = vector.extract_strided_slice %589 {offsets = [0, 0], sizes = [96, 2], strides = [1, 1]} : vector<96x4xf32> to vector<96x2xf32>
    %591 = vector.extract_strided_slice %589 {offsets = [0, 2], sizes = [96, 2], strides = [1, 1]} : vector<96x4xf32> to vector<96x2xf32>
    %592 = math.exp %591 : vector<96x2xf32>
    %c0_202 = arith.constant 0 : index
    %c0_203 = arith.constant 0 : index
    %593 = vector.load %arg2[%c0_202, %c0_203] : memref<96x2xf32, #tpu.memory_space<vmem>>, vector<96x2xf32>
    %594 = arith.mulf %592, %593 : vector<96x2xf32>
    %595 = arith.addf %590, %594 : vector<96x2xf32>
    %c0_204 = arith.constant 0 : index
    %c0_205 = arith.constant 0 : index
    %596 = vector.load %arg6[%c0_204, %c0_205] : memref<96x6xf32, #tpu.memory_space<vmem>>, vector<96x4xf32>
    tpu.vector_store %arg6[%c0_204, %c0_205], %589 {strides = array<i32>} : memref<96x6xf32, #tpu.memory_space<vmem>>, vector<96x4xf32>,
    %c0_206 = arith.constant 0 : index
    %c4_207 = arith.constant 4 : index
    %597 = vector.load %arg6[%c0_206, %c4_207] : memref<96x6xf32, #tpu.memory_space<vmem>>, vector<96x2xf32>
    tpu.vector_store %arg6[%c0_206, %c4_207], %595 {strides = array<i32>} : memref<96x6xf32, #tpu.memory_space<vmem>>, vector<96x2xf32>,
    %c0_208 = arith.constant 0 : index
    %598 = memref.load %arg0[%c0_208] : memref<1xi32, #tpu.memory_space<smem>>
    %599 = arith.sitofp %598 : i32 to f32
    %600 = tpu.iota {dimensions = array<i32: 0>} : vector<96x1xi32>
    %601 = arith.sitofp %600 : vector<96x1xi32> to vector<96x1xf32>
    %cst_209 = arith.constant 5.000000e-01 : f32
    %602 = vector.broadcast %cst_209 : f32 to vector<96x1xf32>
    %603 = arith.addf %601, %602 : vector<96x1xf32>
    %cst_210 = arith.constant 1.250000e-01 : f32
    %604 = vector.broadcast %cst_210 : f32 to vector<96x1xf32>
    %605 = arith.mulf %603, %604 : vector<96x1xf32>
    %606 = math.floor %605 : vector<96x1xf32>
    %cst_211 = arith.constant 8.000000e+00 : f32
    %607 = vector.broadcast %cst_211 : f32 to vector<96x1xf32>
    %608 = arith.mulf %607, %606 : vector<96x1xf32>
    %609 = arith.subf %601, %608 : vector<96x1xf32>
    %610 = vector.broadcast %599 : f32 to vector<96x1xf32>
    %611 = arith.cmpf oeq, %609, %610 : vector<96x1xf32>
    %612 = arith.mulf %594, %594 : vector<96x2xf32>
    %cst_212 = arith.constant dense<0.000000e+00> : vector<96xf32>
    %613 = vector.multi_reduction <add>, %612, %cst_212 [1] : vector<96x2xf32> to vector<96xf32>
    %614 = vector.shape_cast %613 : vector<96xf32> to vector<96x1xf32>
    %cst_213 = arith.constant 0.000000e+00 : f32
    %615 = vector.broadcast %cst_213 : f32 to vector<96x1xf32>
    %616 = arith.select %611, %614, %615 : vector<96x1xi1>, vector<96x1xf32>
    %cst_214 = arith.constant dense<0.000000e+00> : vector<1xf32>
    %617 = vector.multi_reduction <add>, %616, %cst_214 [0] : vector<96x1xf32> to vector<1xf32>
    %618 = vector.shape_cast %617 : vector<1xf32> to vector<1x1xf32>
    %c0_215 = arith.constant 0 : index
    %c0_216 = arith.constant 0 : index
    %619 = vector.load %arg7[%c0_215, %c0_216] : memref<1x1xf32, #tpu.memory_space<vmem>>, vector<1x1xf32>
    tpu.vector_store %arg7[%c0_215, %c0_216], %618 {strides = array<i32>} : memref<1x1xf32, #tpu.memory_space<vmem>>, vector<1x1xf32>,
    return
  }
}

</mosaic_0001>

<bundles_post_ra>
// kernel: trajectory_generator_forward.1
= control target key start
LH: loop header
LB: loop body
LE: loop exit
PB: predicated region body
PF: predicated region fallthrough
CT: control target
= control target key end

     0   :  { %vm41_vm0 = vcmask 1040384   ;;  %v5803_v2 = vmov 0.0   ;;  %vm5831_vm1 = vmmov 0   ;;  %vm5829_vm2 = vcmask 15360   ;;  %s5787_s0 = inlined_call_operand.<no memory space> [shape: s32[1], index: 0, kind: input, shape index: {}]   ;;  %s5788_s1 = inlined_call_operand.vmem [shape: f32[16,2], index: 1, kind: input, shape index: {}]   ;;  %s5789_s2 = inlined_call_operand.vmem [shape: f32[96,2], index: 2, kind: input, shape index: {}]   ;;  %s5790_s3 = inlined_call_operand.vmem [shape: bf16[456,96], index: 3, kind: input, shape index: {}]   ;;  %s5791_s4 = inlined_call_operand.vmem [shape: f32[24,96], index: 4, kind: input, shape index: {}]   ;;  %s5792_s5 = inlined_call_operand.vmem [shape: f32[40,32], index: 5, kind: input, shape index: {}]   ;;  %s5793_s6 = inlined_call_operand.vmem [shape: f32[96,6], index: 6, kind: output, shape index: {0}]   ;;  %s5794_s7 = inlined_call_operand.hbm [shape: f32[1,1], index: 7, kind: output, shape index: {1}]  }
   0x1   :  { %v30_v0 = vld [vmem:[%s5790_s3] sm:$0x1]  ;;  %3456 = vmatprep.subr.bf16.mxu0 %v5803_v2  ;;  %3458 = vmatprep.mubr.msk.bf16.mxu0 %vm5831_vm1, %v5803_v2  ;;  %v29_v4 = vld [vmem:[%s5788_s1 + $0x8] sm:$0xff] }
   0x2   :  { %v28_v1 = vld [vmem:[%s5788_s1] sm:$0xff]  ;;  %v43_v3 = vsel %vm41_vm0, %v30_v0, 0 }
   0x3   :  { %3457 = vmatpush3.bf16.msra.mxu0 %v43_v3  ;;  %v31_v5 = vpack.c.bf16 %v29_v4, %v28_v1 }
   0x4   :  { %3462 = vmatprep.subr.bf16.mxu0 %v5803_v2 }
   0x6   :  { %3459 = vmatmul.mubr.msk.bf16.vlgmr.msra.gmra.mrb[0].mxu0 %vm5829_vm2, %v31_v5 }
   0x7   :  { %3466 = vmatprep.mubr.msk.bf16.mxu0 %vm5831_vm1, %v5803_v2 }
   0x8   :  { %14 = vsyncpa [#allocation4], 0  ;;  %v3919_v6 = vld [vmem:[%s5790_s3 + $0x4] sm:$0xff]   ;;  %v3920_v7 = vld [vmem:[%s5790_s3 + $0xc] sm:$0xff]   ;;  %v162_v8 = vlaneseq  ;;  %s4055_s10 = smov 32   ;;  %vm5830_vm11 = vcmask 261120   ;;  %s3005_s9 = scvt.s32.f32 %s5787_s0 }
   0x9   :  { %3463 = vmatpush3.bf16.msra.mxu0 %v3919_v6  ;;  %v3188_v3 = vld [vmem:[%s5791_s4] ss:$0 sm:$0xff]  ;;  %s4056_s19 = smov 96   ;;  %vm5833_vm14 = vcmask 523264   ;;  %s4059_s20 = smov 64  }
   0xa   :  { %3464 = vmatprep.subr.bf16.mxu0 %v5803_v2  ;;  %v4129_v9 = vshrl.u32 %v162_v8, 7  ;;  %v4131_v10 = vand.u32 127, %v162_v8  ;;  %s4061_s28 = smov 2   ;;  %s4064_s22 = smov [#allocation3]  }
   0xc   :  { %5898 = vst [vmem:[#allocation6_spill] sm:$0xff] %v4131_v10  ;;  %v167_v11 = vadd.s32 32, %v4129_v9  ;;  %v168_v12 = vadd.s32 40, %v4129_v9  ;;  %v4136_v13 = vcvt.s32.f32 %v4131_v10  ;;  %v164_v14 = vadd.s32 8, %v4129_v9 }
   0xd   :  { %3465 = vmatpush3.bf16.msra.mxu0 %v3920_v7  ;;  %v4140_v15 = vcvt.s32.f32 %v4129_v9  ;;  %v169_v16 = vadd.s32 48, %v4129_v9  ;;  %v170_v17 = vadd.s32 56, %v4129_v9  ;;  %v165_v25 = vadd.s32 16, %v4129_v9  ;;  %v86_v7 = vld [vmem:[%s5792_s5] sm:$0xff] }
   0xe   :  { %3470 = vmatprep.subr.bf16.mxu0 %v5803_v2  ;;  %v4144_v18 = vcvt.s32.f32 %v167_v11  ;;  %v4146_v19 = vcvt.s32.f32 %v168_v12  ;;  %v4149_v20 = vadd.f32 0.5, %v4136_v13  ;;  %v4151_v21 = vcvt.s32.f32 %v164_v14  ;;  %v87_v11 = vld [vmem:[%s5792_s5 + $0x8] sm:$0xff] }
   0xf   :  { %5899 = vst [vmem:[#allocation7_spill] sm:$0xff] %v4140_v15  ;;  %v4154_v22 = vadd.f32 0.5, %v4140_v15  ;;  %v4156_v23 = vcvt.s32.f32 %v169_v16  ;;  %v4158_v24 = vcvt.s32.f32 %v170_v17  ;;  %v166_v29 = vadd.s32 24, %v4129_v9 }
  0x10   :  { %5900 = vst [vmem:[#allocation8_spill] sm:$0xff] %v4144_v18  ;;  %5901 = vst [vmem:[#allocation9_spill] sm:$0xff] %v4146_v19  ;;  %v4162_v26 = vadd.f32 0.5, %v4144_v18  ;;  %v4165_v27 = vadd.f32 0.5, %v4146_v19  ;;  %v207_v28 = vmul.f32 0.125, %v4149_v20  ;;  %v4170_v30 = vadd.f32 0.5, %v4151_v21 }
  0x11   :  { %5902 = vst [vmem:[#allocation10_spill] sm:$0xff] %v4151_v21  ;;  %5903 = vst [vmem:[#allocation11_spill] sm:$0xff] %v4154_v22  ;;  %v4173_v31 = vmul.f32 0.0625, %v4154_v22  ;;  %v4176_v32 = vadd.f32 0.5, %v4156_v23  ;;  %v4179_v33 = vadd.f32 0.5, %v4158_v24  ;;  %v4201_v43 = vcvt.s32.f32 %v165_v25 }
  0x12   :  { %5904 = vst [vmem:[#allocation12_spill] sm:$0xff] %v4156_v23  ;;  %5905 = vst [vmem:[#allocation13_spill] sm:$0xff] %v4158_v24  ;;  %v4182_v34 = vmul.f32 0.0625, %v4162_v26  ;;  %v4185_v35 = vmul.f32 0.0625, %v4165_v27  ;;  %v4187_v36 = vfloor.f32 %v207_v28  ;;  %v4190_v37 = vmul.f32 0.0625, %v4170_v30 }
  0x13   :  { %5906 = vst [vmem:[#allocation14_spill] sm:$0xff] %v4162_v26  ;;  %5907 = vst [vmem:[#allocation15_spill] sm:$0xff] %v4165_v27  ;;  %v5802_v38 = vfloor.f32 %v4173_v31  ;;  %v4194_v39 = vmul.f32 0.0625, %v4176_v32  ;;  %v4197_v40 = vmul.f32 0.0625, %v4179_v33  ;;  %v4203_v44 = vcvt.s32.f32 %v166_v29 }
  0x14   :  { %5908 = vst [vmem:[#allocation16_spill] sm:$0xff] %v4170_v30  ;;  %5909 = vst [vmem:[#allocation17_spill] sm:$0xff] %v4176_v32  ;;  %v5798_v41 = vfloor.f32 %v4182_v34  ;;  %v5797_v42 = vfloor.f32 %v4185_v35  ;;  %v5801_v45 = vfloor.f32 %v4190_v37  ;;  %v4221_v49 = vadd.f32 0.5, %v4201_v43 }
  0x15   :  { %5910 = vst [vmem:[#allocation18_spill] sm:$0xff] %v4179_v33  ;;  %5911 = vst [vmem:[#allocation19_spill] sm:$0xff] %v4201_v43  ;;  %vm209_vm3 = vcmp.eq.f32.partialorder %v5802_v38, %v4187_v36  ;;  %v5796_v46 = vfloor.f32 %v4194_v39  ;;  %v5795_v47 = vfloor.f32 %v4197_v40  ;;  %v4256_v57 = vadd.f32 0.5, %v4203_v44 }
  0x16   :  { %5912 = vst [vmem:[#allocation20_spill] sm:$0xff] %v4203_v44  ;;  %vm213_vm4 = vcmp.eq.f32.partialorder %v5798_v41, %v4187_v36  ;;  %vm214_vm5 = vcmp.eq.f32.partialorder %v5797_v42, %v4187_v36  ;;  %v4218_v48 = vsel %vm209_vm3, 1.0, %v5803_v2  ;;  %5914 = vst [vmem:[#allocation22_spill] sm:$0xff] %v4221_v49  ;;  %vm210_vm6 = vcmp.eq.f32.partialorder %v5801_v45, %v4187_v36 }
  0x17   :  { %5913 = vst [vmem:[#allocation21_spill] sm:$0xff] %v4218_v48  ;;  %v4224_v50 = vsel %vm213_vm4, 1.0, %v5803_v2  ;;  %v4227_v51 = vsel %vm214_vm5, 1.0, %v5803_v2  ;;  %vm215_vm7 = vcmp.eq.f32.partialorder %v5796_v46, %v4187_v36  ;;  %v4240_v53 = vsel %vm210_vm6, 1.0, %v5803_v2  ;;  %5920 = vst [vmem:[#allocation28_spill] sm:$0xff] %v4256_v57 }
  0x18   :  { %5915 = vst [vmem:[#allocation23_spill] sm:$0xff] %v4224_v50  ;;  %5916 = vst [vmem:[#allocation24_spill] sm:$0xff] %v4227_v51  ;;  %v4237_v52 = vpack.i.bf16 %v4227_v51, %v4224_v50  ;;  %vm216_vm8 = vcmp.eq.f32.partialorder %v5795_v47, %v4187_v36  ;;  %v4246_v54 = vsel %vm215_vm7, 1.0, %v5803_v2  ;;  %v4250_v55 = vpack.i.bf16 %v4240_v53, %v4218_v48 }
  0x19   :  { %5917 = vst [vmem:[#allocation25_spill] sm:$0xff] %v4240_v53  ;;  %5918 = vst [vmem:[#allocation26_spill] sm:$0xff] %v4246_v54  ;;  %v4253_v56 = vsel %vm216_vm8, 1.0, %v5803_v2  ;;  %v4259_v58 = vmul.f32 0.0625, %v4221_v49  ;;  %v4270_v60 = vmul.f32 0.0625, %v4256_v57 }
  0x1a   :  { %5919 = vst [vmem:[#allocation27_spill] sm:$0xff] %v4253_v56  ;;  %3830 = vrot.lane.b32.xlu1 %v4237_v52, %s4055_s10  ;;  %v4265_v59 = vpack.i.bf16 %v4253_v56, %v4246_v54  ;;  %3820 = vrot.lane.b32.xlu0 %v4250_v55, %s4055_s10 }
  0x1b   :  { %v5800_v61 = vfloor.f32 %v4259_v58  ;;  %v5799_v62 = vfloor.f32 %v4270_v60  ;;  %v5941_v56 = vfloor.f32 %v4270_v60 }
  0x1d   :  { %vm211_vm9 = vcmp.eq.f32.partialorder %v5800_v61, %v4187_v36  ;;  %vm212_vm10 = vcmp.eq.f32.partialorder %v5799_v62, %v4187_v36 }
  0x1e   :  { %3835 = vrot.lane.b32.xlu1 %v4265_v59, %s4055_s10  ;;  %v4280_v63 = vsel %vm211_vm9, 1.0, %v5803_v2  ;;  %v4286_v0 = vsel %vm212_vm10, 1.0, %v5803_v2 }
  0x1f   :  { %5921 = vst [vmem:[#allocation29_spill] sm:$0xff] %v4280_v63  ;;  %5922 = vst [vmem:[#allocation30_spill] sm:$0xff] %v4286_v0  ;;  %v4290_v1 = vpack.i.bf16 %v4286_v0, %v4280_v63 }
  0x21   :  { %3825 = vrot.lane.b32.xlu0 %v4290_v1, %s4055_s10 }
  0x8c   :  { %v4312_v28 = vpop.permute.xlu0 %3820  ;;  %v4314_v29 = vpop.permute.xlu1 %3830 }
  0x8d   :  { %5923 = vst [vmem:[#allocation31_spill] sm:$0xff] %v4312_v28  ;;  %5924 = vst [vmem:[#allocation32_spill] sm:$0xff] %v4314_v29  ;;  %v5808_v46 = vunpack.i.h.bf16 %v4314_v29  ;;  %v5811_v61 = vunpack.i.l.bf16 %v4314_v29 }
  0xd9   :  { %v79_v4 = vpop.f32.mrb[0].mxu0 }
  0xda   :  { %v80_v5 = vadd.f32 %v3188_v3, %v79_v4  ;;  %v3460_v6 = vpop.f32.mrb[1].mxu0  ;;  %v4316_v4 = vpop.permute.xlu0 %3825 }
  0xdb   :  { %v82_v8 = vpop.f32.mrb[2].mxu0  ;;  %5925 = vst [vmem:[#allocation33_spill] sm:$0xff] %v4316_v4 }
  0xdc   :  { %v83_v12 = vadd.f32 %v3188_v3, %v82_v8  ;;  %v3461_v14 = vpop.f32.mrb[3].mxu0  ;;  %v4303_v16 = vadd.f32 %v86_v7, %v80_v5  ;;  %v3190_v3 = vld [vmem:[%s5791_s4 + $0x1] ss:$0 sm:$0xff]  ;;  %v5810_v5 = vunpack.i.h.bf16 %v4312_v28  ;;  %v5812_v7 = vunpack.i.l.bf16 %v4312_v28  ;;  %v4323_v8 = vpop.permute.xlu1 %3835 }
  0xdd   :  { %5926 = vst [vmem:[#allocation34_spill] sm:$0xff] %v4323_v8  ;;  %v5807_v42 = vunpack.i.h.bf16 %v4323_v8  ;;  %v5809_v45 = vunpack.i.l.bf16 %v4323_v8  ;;  %v5935_v8 = vfloor.f32 %v4173_v31 }
  0xde   :  { %v4305_v17 = vadd.f32 %v87_v11, %v83_v12  ;;  %v5806_v11 = vunpack.i.h.bf16 %v4316_v4  ;;  %v5805_v12 = vunpack.i.l.bf16 %v4316_v4 }
  0xe0   :  { %v94_v25 = vpack.c.bf16 %v4305_v17, %v4303_v16 }
  0xe2   :  { %3467 = vmatmul.mubr.msk.bf16.vlgmr.msra.gmra.mrb[4].mxu0 %vm5830_vm11, %v94_v25 }
  0xe3   :  { %3478 = vmatprep.mubr.msk.bf16.mxu0 %vm5831_vm1, %v5803_v2 }
 0x1b5   :  { %v150_v6 = vpop.f32.mrb[4].mxu0 }
 0x1b6   :  { %v4327_v14 = vadd.f32 %v3190_v3, %v150_v6  ;;  %v3468_v25 = vpop.f32.mrb[5].mxu0 }
 0x1b7   :  { %v153_v47 = vpop.f32.mrb[6].mxu0 }
 0x1b8   :  { %v4331_v41 = vadd.f32 %v3190_v3, %v153_v47  ;;  %v3469_v62 = vpop.f32.mrb[7].mxu0  ;;  %v331_v38 = vmul.f32 %v5805_v12, %v4327_v14  ;;  %v329_v25 = vmul.f32 %v5812_v7, %v4327_v14 }
 0x1ba   :  { %v332_v6 = vmul.f32 %v5806_v11, %v4331_v41  ;;  %v330_v47 = vmul.f32 %v5810_v5, %v4331_v41  ;;  %v336_v2 = vmul.f32 %v5807_v42, %v4331_v41  ;;  %v334_v12 = vmul.f32 %v5808_v46, %v4331_v41  ;;  %v2800_v5 = vld [vmem:[%s5789_s2 + $0x10] sm:$0xff] }
 0x1bb   :  { %v335_v11 = vmul.f32 %v5809_v45, %v4327_v14 }
 0x1bc   :  { %v371_v62 = vpack.c.bf16 %v332_v6, %v331_v38  ;;  %v370_v3 = vpack.c.bf16 %v330_v47, %v329_v25  ;;  %v333_v38 = vmul.f32 %v5811_v61, %v4327_v14 }
 0x1bd   :  { %v373_v6 = vpack.c.bf16 %v336_v2, %v335_v11 }
 0x1be   :  { %380 = vrot.lane.b32.xlu1 %v371_v62, %s4056_s19  ;;  %378 = vrot.lane.b32.xlu0 %v370_v3, %s4056_s19  ;;  %v372_v25 = vpack.c.bf16 %v334_v12, %v333_v38  ;;  %v5927_v62 = vmov 0.0   ;;  %v4381_v38 = vmul.f32 0.5, %v4170_v30 }
 0x1c2   :  { %384 = vrot.lane.b32.xlu1 %v373_v6, %s4056_s19  ;;  %382 = vrot.lane.b32.xlu0 %v372_v25, %s4056_s19 }
 0x230   :  { %v379_v47 = vpop.permute.xlu0 %378  ;;  %v381_v3 = vpop.permute.xlu1 %380 }
 0x231   :  { %v390_v42 = vsel %vm5830_vm11, %v379_v47, 0  ;;  %v393_v46 = vsel %vm5830_vm11, %v381_v3, 0  ;;  %v5814_v47 = vfloor.f32 %v4381_v38 }
 0x232   :  { %3471 = vmatpush3.bf16.xpose.msra.mxu0 %v390_v42  ;;  %v369_v42 = vpack.c.bf16 %v4331_v41, %v4327_v14 }
 0x233   :  { %3472 = vmatprep.subr.bf16.mxu0 %v5927_v62 }
 0x234   :  { %v383_v45 = vpop.permute.xlu0 %382  ;;  %v385_v11 = vpop.permute.xlu1 %384 }
 0x235   :  { %v396_v2 = vsel %vm5830_vm11, %v383_v45, 0  ;;  %v399_v12 = vsel %vm5830_vm11, %v385_v11, 0  ;;  %v4378_v45 = vmul.f32 0.5, %v4154_v22  ;;  %v252_v11 = vmul.f32 2.0, %v5814_v47 }
 0x237   :  { %v5813_v25 = vfloor.f32 %v4378_v45 }
 0x239   :  { %v251_v3 = vmul.f32 2.0, %v5813_v25  ;;  %v5821_v25 = vmov -1e+09  }
 0x23a   :  { %3473 = vmatpush3.bf16.xpose.msra.mxu0 %v393_v46  ;;  %v267_v46 = vmul.f32 0.5, %v4149_v20 }
 0x23b   :  { %3474 = vmatprep.subr.bf16.mxu0 %v5927_v62 }
 0x23c   :  { %v4383_v6 = vfloor.f32 %v267_v46  ;;  %v260_v46 = vsub.f32 %v4151_v21, %v252_v11 }
 0x23e   :  { %5928 = vst [vmem:[#allocation35_spill] sm:$0xff] %v4383_v6 }
 0x242   :  { %3475 = vmatpush3.bf16.xpose.msra.mxu0 %v396_v2  ;;  %v269_v2 = vmul.f32 2.0, %v4383_v6 }
 0x243   :  { %3476 = vmatprep.subr.bf16.mxu0 %v5927_v62 }
 0x24a   :  { %3477 = vmatpush3.bf16.xpose.msra.mxu0 %v399_v12  ;;  %v259_v12 = vsub.f32 %v4140_v15, %v251_v3 }
 0x24b   :  { %3513 = vmatprep.subr.bf16.mxu0 %v5927_v62 }
 0x251   :  { %3479 = vmatmul.mubr.msk.bf16.vlgmr.msra.gmra.mrb[8].mxu0 %vm5830_vm11, %v369_v42  ;;  %v4394_v42 = vsub.f32 %v4136_v13, %v269_v2 }
 0x252   :  { %3517 = vmatprep.mubr.msk.bf16.mxu0 %vm5831_vm1, %v5927_v62 }
 0x253   :  { %vm4398_vm12 = vcmp.eq.f32.partialorder %v259_v12, %v4394_v42  ;;  %vm4403_vm13 = vcmp.eq.f32.partialorder %v260_v46, %v4394_v42 }
 0x254   :  { %v4410_v3 = vsel %vm4398_vm12, 0.0, %v5821_v25  ;;  %v4415_v12 = vsel %vm4403_vm13, 0.0, %v5821_v25  ;;  %v4429_v25 = vmul.f32 0.5, %v4221_v49 }
 0x255   :  { %5933 = vst [vmem:[#allocation36_spill] sm:$0xff] %v4410_v3  ;;  %5934 = vst [vmem:[#allocation37_spill] sm:$0xff] %v4415_v12 }
 0x324   :  { %v435_v7 = vpop.f32.mrb[8].mxu0 }
 0x325   :  { %v442_v2 = vmul.f32 0.35355338, %v435_v7  ;;  %v3480_v47 = vpop.f32.mrb[9].mxu0 }
 0x326   :  { %v438_v11 = vpop.f32.mrb[10].mxu0  ;;  %v225_v47 = vmul.f32 0.0625, %v4149_v20 }
 0x327   :  { %v443_v46 = vmul.f32 0.35355338, %v438_v11  ;;  %v3481_v15 = vpop.f32.mrb[11].mxu0  ;;  %v4418_v21 = vadd.f32 %v442_v2, %v4410_v3  ;;  %v5827_v11 = vfloor.f32 %v4429_v25 }
 0x328   :  { %v238_v15 = vmul.f32 0.5, %v4256_v57  ;;  %v226_v2 = vfloor.f32 %v225_v47  ;;  %v240_v47 = vmul.f32 0.5, %v4165_v27 }
 0x329   :  { %v447_v10 = vsel %vm5833_vm14, %v4418_v21, -inf  ;;  %v4423_v6 = vadd.f32 %v443_v46, %v4415_v12  ;;  %v253_v46 = vmul.f32 2.0, %v5827_v11  ;;  %v239_v12 = vmul.f32 0.5, %v4162_v26 }
 0x32a   :  { %448 = vmax.xlane.f32.xlu0 %v447_v10  ;;  %v246_v3 = vfloor.f32 %v238_v15  ;;  %vm227_vm15 = vcmp.eq.f32.partialorder %v5935_v8, %v226_v2  ;;  %v5936_v10 = vfloor.f32 %v4190_v37  ;;  %v5937_v37 = vmov 0 }
 0x32b   :  { %v450_v7 = vsel %vm5833_vm14, %v4423_v6, -inf  ;;  %vm279_vm3 = vmand %vm227_vm15, %vm4398_vm12  ;;  %v261_v31 = vsub.f32 %v4201_v43, %v253_v46  ;;  %v247_v15 = vfloor.f32 %v239_v12  ;;  %v5940_v11 = vfloor.f32 %v4259_v58 }
 0x32c   :  { %451 = vmax.xlane.f32.xlu1 %v450_v7  ;;  %vm228_vm0 = vcmp.eq.f32.partialorder %v5936_v10, %v226_v2  ;;  %v254_v7 = vmul.f32 2.0, %v246_v3  ;;  %v248_v3 = vfloor.f32 %v240_v47  ;;  %v5834_v10 = vmov 1.0|1.0  }
 0x32d   :  { %vm280_vm4 = vmand %vm228_vm0, %vm4403_vm13  ;;  %vm229_vm6 = vcmp.eq.f32.partialorder %v5940_v11, %v226_v2  ;;  %vm230_vm7 = vcmp.eq.f32.partialorder %v5941_v56, %v226_v2  ;;  %vm4459_vm8 = vcmp.eq.f32.partialorder %v261_v31, %v4394_v42  ;;  %v255_v58 = vmul.f32 2.0, %v247_v15 }
 0x32e   :  { %v262_v8 = vsub.f32 %v4203_v44, %v254_v7  ;;  %vm4447_vm5 = vmpackc.low %vm280_vm4, %vm279_vm3  ;;  %v256_v60 = vmul.f32 2.0, %v248_v3  ;;  %v241_v56 = vmul.f32 0.5, %v4176_v32  ;;  %v242_v11 = vmul.f32 0.5, %v4179_v33 }
 0x32f   :  { %v5938_v37 = vsel %vm4447_vm5, 4294967295, %v5937_v37  ;;  %3748 = vmatprep.subr.msk.bf16.mxu1 %vm4447_vm5, %v5834_v10  ;;  %vm281_vm10 = vmand %vm229_vm6, %vm4459_vm8  ;;  %v5946_v7 = vmov 0  ;;  %v263_v47 = vsub.f32 %v4144_v18, %v255_v58  ;;  %v5949_v3 = vfloor.f32 %v4182_v34 }
 0x330   :  { %5939 = vst [vmem:[#allocation38_spill] sm:$0xff] %v5938_v37  ;;  %vm4464_vm9 = vcmp.eq.f32.partialorder %v262_v8, %v4394_v42  ;;  %3750 = vmatpush3.bf16.msk.msra.mxu1 %vm4447_vm5, %v5834_v10  ;;  %v264_v31 = vsub.f32 %v4146_v19, %v256_v60  ;;  %v249_v8 = vfloor.f32 %v241_v56  ;;  %v250_v15 = vfloor.f32 %v242_v11 }
 0x331   :  { %vm282_vm15 = vmand %vm230_vm7, %vm4464_vm9  ;;  %vm231_vm3 = vcmp.eq.f32.partialorder %v5949_v3, %v226_v2  ;;  %vm4498_vm6 = vcmp.eq.f32.partialorder %v263_v47, %v4394_v42  ;;  %v5955_v11 = vmov 0  ;;  %v5958_v47 = vfloor.f32 %v4194_v39 }
 0x332   :  { %vm4479_vm0 = vmpackc.low %vm282_vm15, %vm281_vm10  ;;  %vm4503_vm7 = vcmp.eq.f32.partialorder %v264_v31, %v4394_v42  ;;  %v257_v34 = vmul.f32 2.0, %v249_v8  ;;  %v5959_v31 = vfloor.f32 %v4197_v40  ;;  %v5962_v8 = vmov 0 }
 0x333   :  { %v5947_v7 = vsel %vm4479_vm0, 4294967295, %v5946_v7  ;;  %3752 = vmatprep.subr.msk.bf16.mxu1 %vm4479_vm0, %v5834_v10  ;;  %vm283_vm10 = vmand %vm231_vm3, %vm4498_vm6  ;;  %vm233_vm11 = vcmp.eq.f32.partialorder %v5958_v47, %v226_v2  ;;  %v5964_v39 = vmov 0  ;;  %v1001_v18 = vadd.s32 88, %v4129_v9 }
 0x334   :  { %5948 = vst [vmem:[#allocation39_spill] sm:$0xff] %v5947_v7  ;;  %3754 = vmatpush3.bf16.msk.msra.mxu1 %vm4479_vm0, %v5834_v10  ;;  %vm234_vm1 = vcmp.eq.f32.partialorder %v5959_v31, %v226_v2 }
 0x335   :  { %v4706_v43 = vcvt.s32.f32 %v1001_v18 }
 0x33d   :  { %3845 = vrot.lane.b32.xlu1 %v4290_v1, %s4059_s20  ;;  %v5950_v1 = vfloor.f32 %v4185_v35  ;;  %v258_v35 = vmul.f32 2.0, %v250_v15 }
 0x33f   :  { %vm232_vm4 = vcmp.eq.f32.partialorder %v5950_v1, %v226_v2  ;;  %v266_v56 = vsub.f32 %v4158_v24, %v258_v35 }
 0x340   :  { %3840 = vrot.lane.b32.xlu0 %v4250_v55, %s4059_s20  ;;  %vm284_vm15 = vmand %vm232_vm4, %vm4503_vm7  ;;  %v265_v55 = vsub.f32 %v4156_v23, %v257_v34 }
 0x341   :  { %3855 = vrot.lane.b32.xlu1 %v4265_v59, %s4059_s20  ;;  %vm4515_vm2 = vmpackc.low %vm284_vm15, %vm283_vm10  ;;  %vm4534_vm4 = vcmp.eq.f32.partialorder %v266_v56, %v4394_v42 }
 0x342   :  { %v5956_v11 = vsel %vm4515_vm2, 4294967295, %v5955_v11  ;;  %3756 = vmatprep.subr.msk.bf16.mxu1 %vm4515_vm2, %v5834_v10  ;;  %vm4529_vm3 = vcmp.eq.f32.partialorder %v265_v55, %v4394_v42  ;;  %v5963_v8 = vsel %vm4534_vm4, 4294967295, %v5962_v8  ;;  %vm286_vm15 = vmand %vm234_vm1, %vm4534_vm4  ;;  %vm5967_vm1 = vcmask 523264  }
 0x343   :  { %5957 = vst [vmem:[#allocation40_spill] sm:$0xff] %v5956_v11  ;;  %3758 = vmatpush3.bf16.msk.msra.mxu1 %vm4515_vm2, %v5834_v10  ;;  %vm285_vm10 = vmand %vm233_vm11, %vm4529_vm3 }
 0x344   :  { %3850 = vrot.lane.b32.xlu0 %v4237_v52, %s4059_s20  ;;  %vm4545_vm14 = vmpackc.low %vm286_vm15, %vm285_vm10  ;;  %vm5969_vm10 = vmmov 0  }
 0x345   :  { %v5965_v39 = vsel %vm4545_vm14, 4294967295, %v5964_v39  ;;  %3760 = vmatprep.subr.msk.bf16.mxu1 %vm4545_vm14, %v5834_v10  ;;  %vm5968_vm11 = vmmov %vm5967_vm1 }
 0x346   :  { %5966 = vst [vmem:[#allocation41_spill] sm:$0xff] %v5965_v39  ;;  %vm5970_vm15 = vmmov %vm5967_vm1 }
 0x347   :  { %3762 = vmatpush3.bf16.msk.msra.mxu1 %vm4545_vm14, %v5834_v10 }
 0x348   :  { %3501 = vmatprep.subr.bf16.mxu1 %v5927_v62 }
 0x3b7   :  { %v449_v40 = vpop.xlane.xlu0 %448 }
 0x3b8   :  { %v453_v52 = vsub.f32 %v4418_v21, %v449_v40 }
 0x3b9   :  { %v452_v2 = vpop.xlane.xlu1 %451 }
 0x3ba   :  { %v455_v15 = vmul.f32 1.442695, %v453_v52  ;;  %v454_v3 = vsub.f32 %v4423_v6, %v452_v2 }
 0x3bb   :  { %v3841_v1 = vpop.permute.xlu0 %3840 }
 0x3bc   :  { %3947 = vpow2.f32 %v455_v15  ;;  %v457_v34 = vmul.f32 1.442695, %v454_v3  ;;  %v3843_v35 = vunpack.i.h.bf16 %v3841_v1  ;;  %v3842_v55 = vunpack.i.l.bf16 %v3841_v1 }
 0x3bd   :  { %v3846_v56 = vpop.permute.xlu1 %3845 }
 0x3be   :  { %3949 = vpow2.f32 %v457_v34  ;;  %v362_v47 = vmul.f32 %v3843_v35, %v4331_v41  ;;  %v361_v31 = vmul.f32 %v3842_v55, %v4327_v14  ;;  %v3848_v10 = vunpack.i.h.bf16 %v3846_v56 }
 0x3bf   :  { %v3847_v24 = vunpack.i.l.bf16 %v3846_v56  ;;  %v3851_v23 = vpop.permute.xlu0 %3850 }
 0x3c0   :  { %v364_v21 = vmul.f32 %v3848_v10, %v4331_v41  ;;  %v3853_v40 = vunpack.i.h.bf16 %v3851_v23  ;;  %v3852_v52 = vunpack.i.l.bf16 %v3851_v23  ;;  %v545_v19 = vpack.c.bf16 %v362_v47, %v361_v31 }
 0x3c1   :  { %v363_v6 = vmul.f32 %v3847_v24, %v4327_v14  ;;  %v3856_v2 = vpop.permute.xlu1 %3855 }
 0x3c2   :  { %v366_v15 = vmul.f32 %v3853_v40, %v4331_v41  ;;  %v365_v3 = vmul.f32 %v3852_v52, %v4327_v14  ;;  %v3858_v1 = vunpack.i.h.bf16 %v3856_v2  ;;  %v3857_v34 = vunpack.i.l.bf16 %v3856_v2  ;;  %553 = vrot.lane.b32.xlu0 %v545_v19, %s4059_s20  ;;  %v3921_v19 = vld [vmem:[%s5790_s3 + $0x14] sm:$0xff]  }
 0x3c3   :  { %v546_v35 = vpack.c.bf16 %v364_v21, %v363_v6  ;;  %3514 = vmatpush3.bf16.msra.mxu0 %v3921_v19 }
 0x3c4   :  { %v368_v55 = vmul.f32 %v3858_v1, %v4331_v41  ;;  %v367_v56 = vmul.f32 %v3857_v34, %v4327_v14  ;;  %v547_v10 = vpack.c.bf16 %v366_v15, %v365_v3  ;;  %3515 = vmatprep.subr.bf16.mxu0 %v5927_v62 }
 0x3c5   :  { %555 = vrot.lane.b32.xlu1 %v546_v35, %s4059_s20 }
 0x3c6   :  { %v3948_v23 = vpop.eup %3947  ;;  %557 = vrot.lane.b32.xlu0 %v547_v10, %s4059_s20  ;;  %v548_v24 = vpack.c.bf16 %v368_v55, %v367_v56  ;;  %v3922_v55 = vld [vmem:[%s5790_s3 + $0x1c] sm:$0xff]  }
 0x3c7   :  { %3498 = vmatprep.mubr.msk.f32.mxu1 %vm5967_vm1, %v3948_v23  ;;  %3516 = vmatpush3.bf16.msra.mxu0 %v3922_v55  ;;  %vm5971_vm1 = vcmask 261120  }
 0x3c8   :  { %v3950_v47 = vpop.eup %3949  ;;  %3529 = vmatprep.subr.bf16.mxu0 %v5927_v62 }
 0x3c9   :  { %559 = vrot.lane.b32.xlu1 %v548_v24, %s4059_s20  ;;  %3499 = vmatmul.mubr.msk.f32.vlgmr.msra.gmra.mrb[0].mxu1 %vm5968_vm11, %v3950_v47  ;;  %vm5972_vm11 = vmmov %vm5971_vm1 }
 0x3ca   :  { %3509 = vmatprep.mubr.msk.bf16.mxu1 %vm5969_vm10, %v5927_v62 }
 0x434   :  { %v554_v41 = vpop.permute.xlu0 %553 }
 0x435   :  { %3502 = vmatpush3.bf16.msra.mxu1 %v554_v41 }
 0x436   :  { %3503 = vmatprep.subr.bf16.mxu1 %v5927_v62 }
 0x437   :  { %v556_v14 = vpop.permute.xlu1 %555 }
 0x438   :  { %v558_v31 = vpop.permute.xlu0 %557 }
 0x439   :  { %3504 = vmatpush3.bf16.msra.mxu1 %v556_v14 }
 0x43a   :  { %3505 = vmatprep.subr.bf16.mxu1 %v5927_v62 }
 0x43b   :  { %v560_v21 = vpop.permute.xlu1 %559 }
 0x43d   :  { %3506 = vmatpush3.bf16.msra.mxu1 %v558_v31 }
 0x43e   :  { %3507 = vmatprep.subr.bf16.mxu1 %v5927_v62 }
 0x441   :  { %3508 = vmatpush3.bf16.msra.mxu1 %v560_v21 }
 0x442   :  { %3521 = vmatprep.subr.bf16.mxu1 %v5927_v62 }
 0x49c   :  { %v3500_v40 = vpop.f32.mrb[0].mxu1 }
 0x49d   :  { %v537_v52 = vadd.f32 1e-30, %v3500_v40  ;;  %v531_v6 = vpop.f32.mrb[1].mxu1 }
 0x49e   :  { %v532_v2 = vadd.f32 1e-30, %v531_v6 }
 0x49f   :  { %3951 = vrcp.f32 %v537_v52 }
 0x4a0   :  { %3953 = vrcp.f32 %v532_v2 }
 0x4a9   :  { %v3952_v15 = vpop.eup %3951 }
 0x4aa   :  { %v3954_v3 = vpop.eup %3953  ;;  %v543_v1 = vmul.f32 %v3952_v15, %v3950_v47 }
 0x4ab   :  { %v542_v34 = vmul.f32 %v3954_v3, %v3948_v23  ;;  %v3206_v23 = vld [vmem:[%s5791_s4 + $0x2] ss:$0 sm:$0xff] }
 0x4ad   :  { %v544_v35 = vpack.c.bf16 %v543_v1, %v542_v34 }
 0x4af   :  { %3510 = vmatmul.mubr.msk.bf16.vlgmr.msra.gmra.mrb[4].mxu1 %vm5970_vm15, %v544_v35  ;;  %vm5973_vm15 = vmmov %vm5971_vm1 }
 0x4b0   :  { %3525 = vmatprep.mubr.msk.bf16.mxu1 %vm5969_vm10, %v5927_v62 }
 0x582   :  { %v602_v56 = vpop.f32.mrb[4].mxu1 }
 0x583   :  { %v3511_v10 = vpop.f32.mrb[5].mxu1 }
 0x584   :  { %v605_v24 = vpop.f32.mrb[6].mxu1 }
 0x585   :  { %v609_v19 = vpack.c.bf16 %v605_v24, %v602_v56  ;;  %v3512_v41 = vpop.f32.mrb[7].mxu1 }
 0x586   :  { %v3923_v41 = vld [vmem:[%s5790_s3 + $0x24] sm:$0xff]  }
 0x587   :  { %3518 = vmatmul.mubr.msk.bf16.vlgmr.msra.gmra.mrb[12].mxu0 %vm5971_vm1, %v609_v19  ;;  %3522 = vmatpush3.bf16.msra.mxu1 %v3923_v41 }
 0x588   :  { %3537 = vmatprep.mubr.msk.bf16.mxu0 %vm5969_vm10, %v5927_v62  ;;  %3523 = vmatprep.subr.bf16.mxu1 %v5927_v62 }
 0x65a   :  { %v663_v47 = vpop.f32.mrb[12].mxu0 }
 0x65b   :  { %v664_v14 = vadd.f32 %v3206_v23, %v663_v47  ;;  %v3519_v31 = vpop.f32.mrb[13].mxu0  ;;  %v4619_v47 = vld [vmem:[%s5790_s3 + $0x54] sm:$0xff]  }
 0x65c   :  { %v666_v21 = vpop.f32.mrb[14].mxu0  ;;  %v4626_v31 = vmul.f32 0.041666668, %v4170_v30 }
 0x65d   :  { %v667_v40 = vadd.f32 %v3206_v23, %v666_v21  ;;  %v3520_v52 = vpop.f32.mrb[15].mxu0  ;;  %v670_v6 = vadd.f32 %v664_v14, %v4303_v16  ;;  %v3924_v23 = vld [vmem:[%s5790_s3 + $0x2c] sm:$0xff]   ;;  %v4623_v14 = vmul.f32 0.041666668, %v4154_v22  ;;  %v4629_v21 = vmul.f32 0.041666668, %v4162_v26 }
 0x65e   :  { %3524 = vmatpush3.bf16.msra.mxu1 %v3924_v23  ;;  %v4635_v52 = vmul.f32 0.041666668, %v4176_v32 }
 0x65f   :  { %v674_v2 = vsel %vm5972_vm11, %v670_v6, 0.0  ;;  %v671_v15 = vadd.f32 %v667_v40, %v4305_v17  ;;  %vm5974_vm11 = vmmov %vm5971_vm1  ;;  %3541 = vmatprep.subr.bf16.mxu1 %v4619_v47  ;;  %v4632_v40 = vmul.f32 0.041666668, %v4165_v27  ;;  %v4722_v27 = vadd.f32 0.5, %v4706_v43 }
 0x660   :  { %675 = vadd.xlane.f32.xlu0 %v674_v2  ;;  %v5843_v2 = vfloor.f32 %v4623_v14 }
 0x661   :  { %v677_v3 = vsel %vm5973_vm15, %v671_v15, 0.0 }
 0x662   :  { %678 = vadd.xlane.f32.xlu1 %v677_v3  ;;  %v5841_v3 = vfloor.f32 %v4629_v21  ;;  %vm1034_vm15 = vcmp.eq.f32.partialorder %v5843_v2, %v4187_v36 }
 0x663   :  { %v1046_v41 = vsel %vm1034_vm15, 1.0, %v5927_v62 }
 0x6ed   :  { %v676_v1 = vpop.xlane.xlu0 %675 }
 0x6ee   :  { %v681_v34 = vmul.f32 0.03125, %v676_v1  ;;  %v4644_v1 = vmul.f32 0.041666668, %v4221_v49 }
 0x6ef   :  { %v679_v35 = vpop.xlane.xlu1 %678 }
 0x6f0   :  { %v4599_v55 = vsub.f32 %v670_v6, %v681_v34  ;;  %v682_v56 = vmul.f32 0.03125, %v679_v35  ;;  %v4638_v6 = vmul.f32 0.041666668, %v4179_v33  ;;  %v3927_v34 = vld [vmem:[%s5790_s3 + $0x34] sm:$0xff]   ;;  %v5844_v35 = vfloor.f32 %v4632_v40 }
 0x6f1   :  { %3530 = vmatpush3.bf16.msra.mxu0 %v3927_v34 }
 0x6f2   :  { %v4601_v10 = vsub.f32 %v671_v15, %v682_v56  ;;  %v685_v24 = vmul.f32 %v4599_v55, %v4599_v55  ;;  %v5840_v15 = vfloor.f32 %v4626_v31  ;;  %v5845_v56 = vfloor.f32 %v4635_v52  ;;  %3531 = vmatprep.subr.bf16.mxu0 %v5927_v62 }
 0x6f3   :  { %vm1039_vm14 = vcmp.eq.f32.partialorder %v5844_v35, %v4187_v36 }
 0x6f4   :  { %v687_v16 = vsel %vm5971_vm1, %v685_v24, 0.0  ;;  %v686_v17 = vmul.f32 %v4601_v10, %v4601_v10  ;;  %v5847_v24 = vfloor.f32 %v4638_v6  ;;  %vm1035_vm1 = vcmp.eq.f32.partialorder %v5840_v15, %v4187_v36 }
 0x6f5   :  { %688 = vadd.xlane.f32.xlu0 %v687_v16  ;;  %v4653_v16 = vmul.f32 0.041666668, %v4256_v57  ;;  %v1047_v23 = vsel %vm1035_vm1, 1.0, %v5927_v62  ;;  %v1051_v34 = vsel %vm1039_vm14, 1.0, %v5927_v62  ;;  %vm1040_vm2 = vcmp.eq.f32.partialorder %v5845_v56, %v4187_v36 }
 0x6f6   :  { %v690_v19 = vsel %vm5974_vm11, %v686_v17, 0.0  ;;  %vm1038_vm11 = vcmp.eq.f32.partialorder %v5841_v3, %v4187_v36  ;;  %v4675_v3 = vpack.i.bf16 %v1047_v23, %v1046_v41  ;;  %vm1041_vm15 = vcmp.eq.f32.partialorder %v5847_v24, %v4187_v36 }
 0x6f7   :  { %v1050_v15 = vsel %vm1038_vm11, 1.0, %v5927_v62  ;;  %v1052_v35 = vsel %vm1040_vm2, 1.0, %v5927_v62  ;;  %v5852_v17 = vfloor.f32 %v4653_v16  ;;  %v1053_v41 = vsel %vm1041_vm15, 1.0, %v5927_v62 }
 0x6f8   :  { %v4684_v2 = vpack.i.bf16 %v1051_v34, %v1050_v15  ;;  %3860 = vrot.lane.b32.xlu1 %v4675_v3, %s4055_s10  ;;  %v5975_v23 = vfloor.f32 %v4644_v1  ;;  %v1000_v56 = vadd.s32 80, %v4129_v9  ;;  %v998_v34 = vadd.s32 64, %v4129_v9 }
 0x6f9   :  { %691 = vadd.xlane.f32.xlu0 %v690_v19  ;;  %v3928_v19 = vld [vmem:[%s5790_s3 + $0x3c] sm:$0xff]   ;;  %vm1037_vm2 = vcmp.eq.f32.partialorder %v5852_v17, %v4187_v36  ;;  %v999_v24 = vadd.s32 72, %v4129_v9  ;;  %v4716_v17 = vpack.i.bf16 %v1053_v41, %v1052_v35  ;;  %v4736_v35 = vmul.f32 0.041666668, %v4722_v27 }
 0x6fa   :  { %vm1036_vm14 = vcmp.eq.f32.partialorder %v5975_v23, %v4187_v36  ;;  %3532 = vmatpush3.bf16.msra.mxu0 %v3928_v19  ;;  %v1049_v44 = vsel %vm1037_vm2, 1.0, %v5927_v62  ;;  %v4704_v23 = vcvt.s32.f32 %v1000_v56  ;;  %v4710_v19 = vcvt.s32.f32 %v998_v34 }
 0x6fb   :  { %v1048_v15 = vsel %vm1036_vm14, 1.0, %v5927_v62  ;;  %3533 = vmatprep.subr.bf16.mxu0 %v5927_v62  ;;  %v4712_v32 = vcvt.s32.f32 %v999_v24  ;;  %5976 = vst [vmem:[#allocation42_spill] sm:$0xff] %v4716_v17  ;;  %v5862_v34 = vfloor.f32 %v4736_v35  ;;  %vm5982_vm2 = vcmask 261120  }
 0x6fc   :  { %v4708_v33 = vpack.i.bf16 %v1049_v44, %v1048_v15  ;;  %3870 = vrot.lane.b32.xlu1 %v4684_v2, %s4055_s10  ;;  %v4719_v9 = vadd.f32 0.5, %v4704_v23  ;;  %v4727_v18 = vadd.f32 0.5, %v4710_v19 }
 0x6fd   :  { %v4730_v44 = vadd.f32 0.5, %v4712_v32  ;;  %vm1045_vm11 = vcmp.eq.f32.partialorder %v5862_v34, %v4187_v36 }
 0x6fe   :  { %v4733_v56 = vmul.f32 0.041666668, %v4719_v9  ;;  %v4739_v24 = vmul.f32 0.041666668, %v4727_v18  ;;  %v1057_v30 = vsel %vm1045_vm11, 1.0, %v5927_v62 }
 0x6ff   :  { %v4742_v41 = vmul.f32 0.041666668, %v4730_v44  ;;  %v5437_v12 = vmul.f32 0.125, %v4730_v44 }
 0x700   :  { %3875 = vrot.lane.b32.xlu1 %v4716_v17, %s4055_s10  ;;  %v5859_v15 = vfloor.f32 %v4733_v56  ;;  %v5863_v26 = vfloor.f32 %v4739_v24 }
 0x701   :  { %v5867_v57 = vfloor.f32 %v4742_v41 }
 0x702   :  { %vm1044_vm1 = vcmp.eq.f32.partialorder %v5859_v15, %v4187_v36  ;;  %vm1042_vm15 = vcmp.eq.f32.partialorder %v5863_v26, %v4187_v36 }
 0x703   :  { %v1056_v49 = vsel %vm1044_vm1, 1.0, %v5927_v62  ;;  %vm1043_vm14 = vcmp.eq.f32.partialorder %v5867_v57, %v4187_v36  ;;  %v1054_v15 = vsel %vm1042_vm15, 1.0, %v5927_v62  ;;  %vm5984_vm1 = vmmov %vm5982_vm2  ;;  %vm5986_vm15 = vcmask 523264  }
 0x704   :  { %v4764_v22 = vpack.i.bf16 %v1057_v30, %v1056_v49  ;;  %v1055_v51 = vsel %vm1043_vm14, 1.0, %v5927_v62  ;;  %vm5985_vm11 = vmmov %vm5984_vm1 }
 0x705   :  { %v4768_v0 = vpack.i.bf16 %v1055_v51, %v1054_v15  ;;  %v3210_v51 = vld [vmem:[%s5791_s4 + $0x3] ss:$0 sm:$0xff]  ;;  %v3224_v15 = vld [vmem:[%s5791_s4 + $0x9] ss:$0 sm:$0xff]  ;;  %vm5987_vm14 = vmmov %vm5984_vm1 }
 0x706   :  { %5977 = vst [vmem:[#allocation43_spill] sm:$0xff] %v4764_v22  ;;  %3885 = vrot.lane.b32.xlu1 %v4764_v22, %s4055_s10  ;;  %vm5992_vm0 = vmmov %vm5984_vm1 }
 0x707   :  { %vm5993_vm5 = vmmov %vm5992_vm0 }
 0x70f   :  { %3865 = vrot.lane.b32.xlu0 %v4708_v33, %s4055_s10 }
 0x713   :  { %3880 = vrot.lane.b32.xlu0 %v4768_v0, %s4055_s10 }
 0x782   :  { %v689_v34 = vpop.xlane.xlu0 %688 }
 0x783   :  { %v693_v26 = vmul.f32 0.03125, %v689_v34 }
 0x785   :  { %v695_v53 = vadd.f32 1e-05, %v693_v26  ;;  %v906_v26 = vld [vmem:[%s5792_s5 + $0x10] sm:$0xff] }
 0x786   :  { %v692_v4 = vpop.xlane.xlu0 %691 }
 0x787   :  { %3955 = vrsqrt.f32 %v695_v53  ;;  %v694_v36 = vmul.f32 0.03125, %v692_v4  ;;  %v907_v53 = vld [vmem:[%s5792_s5 + $0x18] sm:$0xff] }
 0x789   :  { %v696_v30 = vadd.f32 1e-05, %v694_v36  ;;  %v3211_v36 = vld [vmem:[%s5791_s4 + $0x4] ss:$0 sm:$0xff] }
 0x78a   :  { %v3866_v63 = vpop.permute.xlu0 %3865 }
 0x78b   :  { %3957 = vrsqrt.f32 %v696_v30  ;;  %v4791_v30 = vadd.f32 %v3224_v15, %v906_v26  ;;  %v3926_v26 = vld [vmem:[%s5790_s3 + $0x5c] sm:$0xff]   ;;  %v3867_v11 = vunpack.i.l.bf16 %v3866_v63  ;;  %v3868_v7 = vunpack.i.h.bf16 %v3866_v63 }
 0x78d   :  { %5978 = vst [vmem:[#allocation44_spill] sm:$0xff] %v4791_v30 }
 0x791   :  { %v3956_v49 = vpop.eup %3955 }
 0x792   :  { %v699_v57 = vmul.f32 %v3956_v49, %v4599_v55  ;;  %v4793_v49 = vadd.f32 %v3224_v15, %v907_v53  ;;  %v3929_v53 = vld [vmem:[%s5790_s3 + $0x44] sm:$0xff]  }
 0x793   :  { %3534 = vmatpush3.bf16.msra.mxu0 %v3929_v53 }
 0x794   :  { %v705_v34 = vmul.f32 %v3210_v51, %v699_v57  ;;  %5979 = vst [vmem:[#allocation45_spill] sm:$0xff] %v4793_v49  ;;  %v920_v50 = vpack.c.bf16 %v4793_v49, %v4791_v30  ;;  %v908_v57 = vld [vmem:[%s5792_s5 + $0x20] sm:$0xff]  ;;  %3535 = vmatprep.subr.bf16.mxu0 %v5927_v62 }
 0x795   :  { %v3958_v4 = vpop.eup %3957 }
 0x796   :  { %v700_v55 = vmul.f32 %v3958_v4, %v4601_v10  ;;  %v4795_v28 = vadd.f32 %v3211_v36, %v705_v34 }
 0x798   :  { %v706_v29 = vmul.f32 %v3210_v51, %v700_v55  ;;  %5980 = vst [vmem:[#allocation46_spill] sm:$0xff] %v4795_v28  ;;  %v4810_v51 = vadd.f32 %v3224_v15, %v908_v57  ;;  %v3212_v15 = vld [vmem:[%s5791_s4 + $0x5] ss:$0 sm:$0xff] }
 0x79a   :  { %v4797_v54 = vadd.f32 %v3211_v36, %v706_v29  ;;  %5983 = vst [vmem:[#allocation48_spill] sm:$0xff] %v4810_v51  ;;  %v921_v29 = vpack.c.bf16 %v4810_v51, %v4810_v51 }
 0x79c   :  { %5981 = vst [vmem:[#allocation47_spill] sm:$0xff] %v4797_v54  ;;  %v717_v10 = vpack.c.bf16 %v4797_v54, %v4795_v28 }
 0x79e   :  { %3526 = vmatmul.mubr.msk.bf16.vlgmr.msra.gmra.mrb[8].mxu1 %vm5982_vm2, %v717_v10  ;;  %vm5988_vm2 = vmmov %vm5984_vm1 }
 0x79f   :  { %3542 = vmatpush3.bf16.msra.mxu1 %v4619_v47  ;;  %3545 = vmatprep.mubr.msk.bf16.mxu1 %vm5984_vm1, %v920_v50  ;;  %v3930_v47 = vld [vmem:[%s5790_s3 + $0x4c] sm:$0xff]   ;;  %v3861_v50 = vpop.permute.xlu1 %3860 }
 0x7a0   :  { %3543 = vmatprep.subr.bf16.mxu1 %v3926_v26  ;;  %3536 = vmatpush3.bf16.msra.mxu0 %v3930_v47  ;;  %v3225_v47 = vld [vmem:[%s5791_s4 + $0xa] ss:$0 sm:$0xff]  ;;  %v3862_v51 = vunpack.i.l.bf16 %v3861_v50 }
 0x7a3   :  { %3544 = vmatpush3.bf16.msra.mxu1 %v3926_v26  ;;  %v3871_v34 = vpop.permute.xlu1 %3870 }
 0x7a4   :  { %v3873_v28 = vunpack.i.h.bf16 %v3871_v34 }
 0x7a6   :  { %3546 = vmatmul.mubr.msk.bf16.vlgmr.msra.gmra.mrb[12].mxu1 %vm5985_vm11, %v921_v29  ;;  %vm5989_vm11 = vmmov %vm5984_vm1 }
 0x7a7   :  { %v3876_v48 = vpop.permute.xlu1 %3875 }
 0x7a8   :  { %v3877_v63 = vunpack.i.l.bf16 %v3876_v48 }
 0x7ab   :  { %v3886_v30 = vpop.permute.xlu1 %3885 }
 0x7ac   :  { %v3888_v17 = vunpack.i.h.bf16 %v3886_v30 }
 0x871   :  { %v772_v4 = vpop.f32.mrb[8].mxu1 }
 0x872   :  { %v773_v55 = vadd.f32 %v3212_v15, %v772_v4  ;;  %v3527_v36 = vpop.f32.mrb[9].mxu1 }
 0x873   :  { %v775_v57 = vpop.f32.mrb[10].mxu1  ;;  %v3878_v36 = vunpack.i.h.bf16 %v3876_v48 }
 0x874   :  { %v776_v10 = vadd.f32 %v3212_v15, %v775_v57  ;;  %v3528_v26 = vpop.f32.mrb[11].mxu1  ;;  %v779_v29 = vmax.f32 %v773_v55, 0.0  ;;  %v3863_v15 = vunpack.i.h.bf16 %v3861_v50  ;;  %v3887_v50 = vunpack.i.l.bf16 %v3886_v30 }
 0x876   :  { %v780_v53 = vmax.f32 %v776_v10, 0.0 }
 0x878   :  { %v789_v39 = vpack.c.bf16 %v780_v53, %v779_v29  ;;  %v3872_v29 = vunpack.i.l.bf16 %v3871_v34  ;;  %v3881_v53 = vpop.permute.xlu0 %3880 }
 0x879   :  { %v3547_v37 = vpop.f32.mrb[12].mxu1  ;;  %v3883_v22 = vunpack.i.h.bf16 %v3881_v53  ;;  %v3882_v48 = vunpack.i.l.bf16 %v3881_v53 }
 0x87a   :  { %v4830_v49 = vadd.f32 %v3547_v37, %v3225_v47  ;;  %3538 = vmatmul.mubr.msk.bf16.vlgmr.msra.gmra.mrb[16].mxu0 %vm5986_vm15, %v789_v39  ;;  %v979_v4 = vpop.f32.mrb[13].mxu1  ;;  %vm5990_vm15 = vmmov %vm5984_vm1 }
 0x87b   :  { %v4833_v55 = vadd.f32 %v3225_v47, %v979_v4  ;;  %v3548_v57 = vpop.f32.mrb[14].mxu1  ;;  %3589 = vmatprep.mubr.msk.f32.mxu0 %vm5969_vm10, %v5927_v62  ;;  %vm5994_vm10 = vmmov %vm5992_vm0 }
 0x87c   :  { %v982_v10 = vpop.f32.mrb[15].mxu1  ;;  %v1180_v26 = vmul.f32 %v3867_v11, %v4830_v49  ;;  %v1189_v30 = vmul.f32 %v3888_v17, %v4830_v49 }
 0x87d   :  { %v4838_v37 = vadd.f32 %v3225_v47, %v982_v10  ;;  %v1181_v39 = vmul.f32 %v3868_v7, %v4833_v55  ;;  %v1178_v4 = vmul.f32 %v3862_v51, %v4833_v55  ;;  %v1184_v34 = vmul.f32 %v3877_v63, %v4833_v55 }
 0x87e   :  { %v1183_v10 = vmul.f32 %v3873_v28, %v4830_v49 }
 0x87f   :  { %v1238_v57 = vpack.c.bf16 %v4838_v37, %v4833_v55  ;;  %v1241_v54 = vpack.c.bf16 %v1181_v39, %v1180_v26  ;;  %v1179_v62 = vmul.f32 %v3863_v15, %v4838_v37  ;;  %v1185_v11 = vmul.f32 %v3878_v36, %v4838_v37 }
 0x880   :  { %v1182_v51 = vmul.f32 %v3872_v29, %v4838_v37  ;;  %v1188_v15 = vmul.f32 %v3887_v50, %v4838_v37  ;;  %v1186_v36 = vmul.f32 %v3882_v48, %v4830_v49 }
 0x881   :  { %3561 = vmatprep.mubr.msk.bf16.mxu1 %vm5987_vm14, %v1238_v57  ;;  %1254 = vrot.lane.b32.xlu1 %v1241_v54, %s4056_s19  ;;  %v1240_v7 = vpack.c.bf16 %v1179_v62, %v1178_v4  ;;  %v1243_v47 = vpack.c.bf16 %v1185_v11, %v1184_v34  ;;  %v1187_v54 = vmul.f32 %v3883_v22, %v4833_v55  ;;  %vm5991_vm14 = vmmov %vm5984_vm1 }
 0x882   :  { %v1242_v26 = vpack.c.bf16 %v1183_v10, %v1182_v51  ;;  %v1245_v62 = vpack.c.bf16 %v1189_v30, %v1188_v15  ;;  %v1239_v34 = vpack.c.bf16 %v4830_v49, %v4830_v49 }
 0x883   :  { %1252 = vrot.lane.b32.xlu0 %v1240_v7, %s4056_s19  ;;  %v1244_v29 = vpack.c.bf16 %v1187_v54, %v1186_v36  ;;  %v1058_v36 = vmul.f32 0.041666668, %v4149_v20  ;;  %v6000_v54 = vfloor.f32 %v4626_v31  ;;  %v6002_v20 = vfloor.f32 %v4653_v16 }
 0x885   :  { %1258 = vrot.lane.b32.xlu1 %v1243_v47, %s4056_s19  ;;  %v4880_v30 = vfloor.f32 %v1058_v36 }
 0x887   :  { %1256 = vrot.lane.b32.xlu0 %v1242_v26, %s4056_s19  ;;  %v5999_v26 = vfloor.f32 %v4623_v14  ;;  %v6003_v14 = vmov 1.0|1.0   ;;  %v1116_v31 = vmul.f32 24.0, %v4880_v30 }
 0x889   :  { %1262 = vrot.lane.b32.xlu1 %v1245_v62, %s4056_s19  ;;  %v4060_v62 = vmov 0.0|0.0  }
 0x88a   :  { %3763 = vmatprep.subr.bf16.mxu0 %v4060_v62 }
 0x88b   :  { %1260 = vrot.lane.b32.xlu0 %v1244_v29, %s4056_s19  ;;  %v6001_v29 = vfloor.f32 %v4644_v1  ;;  %v1117_v1 = vsub.f32 %v4136_v13, %v1116_v31  ;;  %v1072_v31 = vmul.f32 0.5, %v4727_v18 }
 0x88d   :  { %v1118_v16 = vadd.f32 0.5, %v1117_v1  ;;  %v1073_v1 = vmul.f32 0.5, %v4730_v44 }
 0x8f3   :  { %v1255_v53 = vpop.permute.xlu1 %1254 }
 0x8f4   :  { %v1274_v17 = vsel %vm5990_vm15, %v1255_v53, 0  ;;  %vm5998_vm15 = vmmov %vm5992_vm0 }
 0x8f5   :  { %v1253_v28 = vpop.permute.xlu0 %1252 }
 0x8f6   :  { %3797 = vmatprep.subr.msk.bf16.mxu1 %vm5988_vm2, %v1253_v28  ;;  %v1271_v63 = vsel %vm5984_vm1, %v1253_v28, 0  ;;  %vm5995_vm2 = vmmov %vm5992_vm0  ;;  %v1119_v28 = vmul.f32 0.5, %v1118_v16  ;;  %v1076_v16 = vfloor.f32 %v1072_v31 }
 0x8f7   :  { %3550 = vmatpush3.bf16.xpose.msra.mxu1 %v1271_v63  ;;  %v1259_v50 = vpop.permute.xlu1 %1258  ;;  %vm5996_vm1 = vmmov %vm5992_vm0 }
 0x8f8   :  { %3798 = vmatprep.subr.msk.bf16.mxu1 %vm5989_vm11, %v1255_v53  ;;  %v1280_v4 = vsel %vm5994_vm10, %v1259_v50, 0  ;;  %vm5997_vm11 = vmmov %vm5992_vm0  ;;  %vm1061_vm10 = vcmp.eq.f32.partialorder %v6000_v54, %v4880_v30  ;;  %v1120_v63 = vfloor.f32 %v1119_v28  ;;  %v6004_v53 = vfloor.f32 %v4378_v45 }
 0x8f9   :  { %v1257_v22 = vpop.permute.xlu0 %1256  ;;  %v1077_v28 = vfloor.f32 %v1073_v1 }
 0x8fa   :  { %v1277_v39 = vsel %vm5992_vm0, %v1257_v22, 0 }
 0x8fb   :  { %v1263_v48 = vpop.permute.xlu1 %1262 }
 0x8fc   :  { %v1286_v7 = vsel %vm5998_vm15, %v1263_v48, 0 }
 0x8fd   :  { %v1261_v57 = vpop.permute.xlu0 %1260 }
 0x8fe   :  { %v1283_v11 = vsel %vm5996_vm1, %v1261_v57, 0  ;;  %vm1093_vm1 = vmand %vm1061_vm10, %vm4403_vm13  ;;  %vm1121_vm10 = vcmp.le.f32.partialorder %v1120_v63, %v6004_v53  ;;  %v1081_v53 = vmul.f32 2.0, %v1077_v28 }
 0x8ff   :  { %3552 = vmatpush3.bf16.xpose.msra.mxu1 %v1274_v17  ;;  %v6005_v17 = vfloor.f32 %v4429_v25 }
 0x900   :  { %3799 = vmatprep.subr.msk.bf16.mxu1 %vm5991_vm14, %v1257_v22  ;;  %v6006_v22 = vfloor.f32 %v4381_v38 }
 0x907   :  { %3554 = vmatpush3.bf16.xpose.msra.mxu1 %v1277_v39 }
 0x908   :  { %3800 = vmatprep.subr.msk.bf16.mxu1 %vm5993_vm5, %v1259_v50  ;;  %vm1060_vm5 = vcmp.eq.f32.partialorder %v5999_v26, %v4880_v30  ;;  %v6007_v50 = vmov -1e+09  }
 0x909   :  { %vm1092_vm14 = vmand %vm1060_vm5, %vm4398_vm12 }
 0x90a   :  { %vm3764_vm15 = vmpackc.low %vm1093_vm1, %vm1092_vm14  ;;  %vm1123_vm14 = vcmp.le.f32.partialorder %v1120_v63, %v6005_v17  ;;  %v1074_v17 = vmul.f32 0.5, %v4719_v9 }
 0x90b   :  { %3765 = vmatpush3.bf16.msk.msra.mxu0 %vm3764_vm15, %v6003_v14  ;;  %vm1126_vm1 = vmand %vm4459_vm8, %vm1123_vm14  ;;  %vm5893_vm15 = vcmask 785408  }
 0x90c   :  { %3766 = vmatprep.subr.bf16.mxu0 %v4060_v62 }
 0x90f   :  { %3556 = vmatpush3.bf16.xpose.msra.mxu1 %v1280_v4 }
 0x910   :  { %3801 = vmatprep.subr.msk.bf16.mxu1 %vm5995_vm2, %v1261_v57  ;;  %vm1062_vm2 = vcmp.eq.f32.partialorder %v6001_v29, %v4880_v30  ;;  %v6008_v29 = vfloor.f32 %v4629_v21  ;;  %v6010_v21 = vfloor.f32 %v4635_v52 }
 0x917   :  { %3558 = vmatpush3.bf16.xpose.msra.mxu1 %v1283_v11 }
 0x918   :  { %3802 = vmatprep.subr.msk.bf16.mxu1 %vm5997_vm11, %v1263_v48  ;;  %vm1063_vm11 = vcmp.eq.f32.partialorder %v6002_v20, %v4880_v30  ;;  %v1129_v48 = vsel %vm1126_vm1, 0.0, %v6007_v50  ;;  %v6009_v20 = vfloor.f32 %v4632_v40  ;;  %v6011_v40 = vfloor.f32 %v4638_v6 }
 0x919   :  { %vm1095_vm5 = vmand %vm1063_vm11, %vm4464_vm9  ;;  %v1085_v6 = vsub.f32 %v4712_v32, %v1081_v53 }
 0x91a   :  { %vm1067_vm1 = vcmp.eq.f32.partialorder %v6011_v40, %v4880_v30 }
 0x91f   :  { %3560 = vmatpush3.bf16.xpose.msra.mxu1 %v1286_v7 }
 0x926   :  { %3562 = vmatmul.mubr.msk.bf16.vlgmr.msra.gmra.mrb[16].mxu1 %vm5992_vm0, %v1239_v34  ;;  %vm1094_vm0 = vmand %vm1062_vm2, %vm4459_vm8  ;;  %vm1122_vm2 = vcmp.le.f32.partialorder %v1120_v63, %v6006_v22  ;;  %v1080_v63 = vmul.f32 2.0, %v1076_v16  ;;  %v1075_v22 = vmul.f32 0.5, %v4722_v27 }
 0x927   :  { %vm3767_vm4 = vmpackc.low %vm1095_vm5, %vm1094_vm0  ;;  %vm1064_vm0 = vcmp.eq.f32.partialorder %v6008_v29, %v4880_v30  ;;  %vm1065_vm5 = vcmp.eq.f32.partialorder %v6009_v20, %v4880_v30 }
 0x928   :  { %3768 = vmatpush3.bf16.msk.msra.mxu0 %vm3767_vm4, %v6003_v14  ;;  %vm1124_vm4 = vmand %vm4398_vm12, %vm1121_vm10  ;;  %v1084_v52 = vsub.f32 %v4710_v19, %v1080_v63 }
 0x929   :  { %3769 = vmatprep.subr.bf16.mxu0 %v4060_v62  ;;  %vm1125_vm11 = vmand %vm4403_vm13, %vm1122_vm2  ;;  %v1127_v45 = vsel %vm1124_vm4, 0.0, %v6007_v50  ;;  %vm1066_vm4 = vcmp.eq.f32.partialorder %v6010_v21, %v4880_v30 }
 0x92a   :  { %v1128_v38 = vsel %vm1125_vm11, 0.0, %v6007_v50  ;;  %vm1096_vm10 = vmand %vm1064_vm0, %vm4498_vm6  ;;  %vm6012_vm0 = vnez %v5963_v8 }
 0x92b   :  { %vm1097_vm14 = vmand %vm1065_vm5, %vm4503_vm7 }
 0x92c   :  { %vm3770_vm2 = vmpackc.low %vm1097_vm14, %vm1096_vm10 }
 0x92d   :  { %3771 = vmatpush3.bf16.msk.msra.mxu0 %vm3770_vm2, %v6003_v14  ;;  %vm1098_vm11 = vmand %vm1066_vm4, %vm4529_vm3  ;;  %vm4974_vm4 = vcmp.eq.f32.partialorder %v1084_v52, %v4394_v42 }
 0x92e   :  { %3772 = vmatprep.subr.bf16.mxu0 %v4060_v62  ;;  %vm1099_vm5 = vmand %vm1067_vm1, %vm6012_vm0  ;;  %vm4979_vm1 = vcmp.eq.f32.partialorder %v1085_v6, %v4394_v42 }
 0x92f   :  { %vm3773_vm10 = vmpackc.low %vm1099_vm5, %vm1098_vm11 }
 0x931   :  { %3774 = vmatpush3.bf16.msk.msra.mxu0 %vm3773_vm10, %v6003_v14 }
 0x932   :  { %3775 = vmatprep.subr.bf16.mxu0 %v4060_v62 }
 0x94d   :  { %v4875_v51 = vpop.f32.mrb[16].mxu0 }
 0x94e   :  { %v3539_v47 = vpop.f32.mrb[17].mxu0 }
 0x94f   :  { %v4877_v10 = vpop.f32.mrb[18].mxu0 }
 0x950   :  { %v3540_v15 = vpop.f32.mrb[19].mxu0 }
 0x9f9   :  { %v3563_v39 = vpop.f32.mrb[16].mxu1 }
 0x9fa   :  { %v1322_v13 = vpop.f32.mrb[17].mxu1  ;;  %v1338_v4 = vmul.f32 0.35355338, %v3563_v39  ;;  %v1078_v39 = vfloor.f32 %v1074_v17 }
 0x9fb   :  { %v1336_v57 = vmul.f32 0.35355338, %v1322_v13  ;;  %v3564_v25 = vpop.f32.mrb[18].mxu1  ;;  %v1079_v13 = vfloor.f32 %v1075_v22 }
 0x9fc   :  { %v1325_v11 = vpop.f32.mrb[19].mxu1  ;;  %v4930_v36 = vadd.f32 %v1338_v4, %v1129_v48  ;;  %v6014_v4 = vfloor.f32 %v4742_v41  ;;  %v6020_v48 = vfloor.f32 %v4736_v35 }
 0x9fd   :  { %v1337_v7 = vmul.f32 0.35355338, %v1325_v11  ;;  %v4924_v34 = vadd.f32 %v1336_v57, %v1127_v45  ;;  %v6013_v45 = vfloor.f32 %v4739_v24  ;;  %v6017_v57 = vmov 0 }
 0x9fe   :  { %v1349_v54 = vsel %vm5893_vm15, %v4930_v36, -inf  ;;  %vm1069_vm2 = vcmp.eq.f32.partialorder %v6014_v4, %v4880_v30  ;;  %v6018_v57 = vsel %vm4979_vm1, 4294967295, %v6017_v57  ;;  %v1082_v24 = vmul.f32 2.0, %v1078_v39 }
 0x9ff   :  { %v1343_v47 = vsel %vm5893_vm15, %v4924_v34, -inf  ;;  %v4928_v15 = vadd.f32 %v1337_v7, %v1128_v38  ;;  %vm1068_vm14 = vcmp.eq.f32.partialorder %v6013_v45, %v4880_v30  ;;  %v1083_v25 = vmul.f32 2.0, %v1079_v13  ;;  %vm1101_vm5 = vmand %vm1069_vm2, %vm4979_vm1 }
 0xa00   :  { %1344 = vmax.xlane.f32.xlu0 %v1343_v47  ;;  %vm1100_vm11 = vmand %vm1068_vm14, %vm4974_vm4  ;;  %v1086_v41 = vsub.f32 %v4704_v23, %v1082_v24  ;;  %v6019_v38 = vfloor.f32 %v4733_v56  ;;  %vm1071_vm14 = vcmp.eq.f32.partialorder %v6020_v48, %v4880_v30  ;;  %v6023_v7 = vmov 0 }
 0xa01   :  { %v1346_v26 = vsel %vm5893_vm15, %v4928_v15, -inf  ;;  %vm3776_vm10 = vmpackc.low %vm1101_vm5, %vm1100_vm11  ;;  %v1087_v11 = vsub.f32 %v4706_v43, %v1083_v25 }
 0xa02   :  { %1347 = vmax.xlane.f32.xlu1 %v1346_v26  ;;  %3777 = vmatpush3.bf16.msk.msra.mxu0 %vm3776_vm10, %v6003_v14  ;;  %vm1070_vm15 = vcmp.eq.f32.partialorder %v6019_v38, %v4880_v30  ;;  %vm5003_vm2 = vcmp.eq.f32.partialorder %v1086_v41, %v4394_v42 }
 0xa03   :  { %3778 = vmatprep.subr.bf16.mxu0 %v4060_v62  ;;  %vm5008_vm11 = vcmp.eq.f32.partialorder %v1087_v11, %v4394_v42  ;;  %vm1102_vm5 = vmand %vm1070_vm15, %vm5003_vm2  ;;  %v6026_v42 = vld [vmem:[#allocation43_spill] sm:$0xff]  ;;  %vm6027_vm15 = vcmask 785408  }
 0xa04   :  { %1350 = vmax.xlane.f32.xlu0 %v1349_v54  ;;  %v6024_v7 = vsel %vm5008_vm11, 4294967295, %v6023_v7  ;;  %vm1103_vm10 = vmand %vm1071_vm14, %vm5008_vm11 }
 0xa05   :  { %vm3779_vm1 = vmpackc.low %vm1103_vm10, %vm1102_vm5  ;;  %vm6033_vm10 = vcmask 261120  }
 0xa06   :  { %3780 = vmatpush3.bf16.msk.msra.mxu0 %vm3779_vm1, %v6003_v14  ;;  %vm6029_vm1 = vmmov 0   ;;  %vm6030_vm14 = vmmov %vm6027_vm15 }
 0xa07   :  { %vm6031_vm5 = vmmov %vm6030_vm14 }
 0xa13   :  { %3895 = vrot.lane.b32.xlu1 %v4708_v33, %s4059_s20  ;;  %v6015_v33 = vmov 0 }
 0xa14   :  { %v6016_v33 = vsel %vm4974_vm4, 4294967295, %v6015_v33 }
 0xa17   :  { %3900 = vrot.lane.b32.xlu1 %v4684_v2, %s4059_s20  ;;  %v6021_v2 = vmov 0 }
 0xa18   :  { %v6022_v2 = vsel %vm5003_vm2, 4294967295, %v6021_v2 }
 0xa1a   :  { %3890 = vrot.lane.b32.xlu0 %v4675_v3, %s4059_s20  ;;  %v6025_v3 = vld [vmem:[#allocation42_spill] sm:$0xff] }
 0xa1b   :  { %3910 = vrot.lane.b32.xlu1 %v4768_v0, %s4059_s20 }
 0xa1e   :  { %3905 = vrot.lane.b32.xlu0 %v6025_v3, %s4059_s20 }
 0xa22   :  { %3915 = vrot.lane.b32.xlu0 %v6026_v42, %s4059_s20 }
 0xa8d   :  { %v1345_v56 = vpop.xlane.xlu0 %1344 }
 0xa8e   :  { %v1352_v35 = vsub.f32 %v4924_v34, %v1345_v56 }
 0xa8f   :  { %v1348_v30 = vpop.xlane.xlu1 %1347 }
 0xa90   :  { %v1355_v0 = vmul.f32 1.442695, %v1352_v35  ;;  %v1353_v47 = vsub.f32 %v4928_v15, %v1348_v30  ;;  %v6028_v30 = vmov 0.0  }
 0xa91   :  { %v1351_v26 = vpop.xlane.xlu0 %1350 }
 0xa92   :  { %3959 = vpow2.f32 %v1355_v0  ;;  %v1357_v54 = vmul.f32 1.442695, %v1353_v47  ;;  %v1354_v29 = vsub.f32 %v4930_v36, %v1351_v26 }
 0xa93   :  { %v3896_v20 = vpop.permute.xlu1 %3895 }
 0xa94   :  { %v3898_v31 = vunpack.i.h.bf16 %v3896_v20  ;;  %v3897_v1 = vunpack.i.l.bf16 %v3896_v20  ;;  %3961 = vpow2.f32 %v1357_v54  ;;  %v1359_v34 = vmul.f32 1.442695, %v1354_v29 }
 0xa95   :  { %v3891_v16 = vpop.permute.xlu0 %3890 }
 0xa96   :  { %v1229_v28 = vmul.f32 %v3898_v31, %v4833_v55  ;;  %v1228_v21 = vmul.f32 %v3897_v1, %v4830_v49  ;;  %v3893_v40 = vunpack.i.h.bf16 %v3891_v16  ;;  %v3892_v63 = vunpack.i.l.bf16 %v3891_v16 }
 0xa97   :  { %v3901_v53 = vpop.permute.xlu1 %3900  ;;  %3963 = vpow2.f32 %v1359_v34 }
 0xa98   :  { %v1227_v15 = vmul.f32 %v3893_v40, %v4838_v37  ;;  %v3903_v17 = vunpack.i.h.bf16 %v3901_v53  ;;  %v3902_v22 = vunpack.i.l.bf16 %v3901_v53  ;;  %v1459_v52 = vpack.c.bf16 %v1229_v28, %v1228_v21  ;;  %v6032_v28 = vld [vmem:[#allocation47_spill] sm:$0xff] }
 0xa99   :  { %v1226_v36 = vmul.f32 %v3892_v63, %v4833_v55  ;;  %v3906_v6 = vpop.permute.xlu0 %3905  ;;  %v6034_v63 = vld [vmem:[#allocation46_spill] sm:$0xff] }
 0xa9a   :  { %v3908_v39 = vunpack.i.h.bf16 %v3906_v6  ;;  %v3907_v13 = vunpack.i.l.bf16 %v3906_v6  ;;  %1472 = vrot.lane.b32.xlu0 %v1459_v52, %s4059_s20  ;;  %v1231_v45 = vmul.f32 %v3903_v17, %v4830_v49  ;;  %v1230_v4 = vmul.f32 %v3902_v22, %v4838_v37 }
 0xa9b   :  { %v3911_v24 = vpop.permute.xlu1 %3910  ;;  %v1458_v25 = vpack.c.bf16 %v1227_v15, %v1226_v36 }
 0xa9c   :  { %v5033_v41 = vpop.eup %3959  ;;  %v1233_v11 = vmul.f32 %v3908_v39, %v4838_v37  ;;  %v1232_v38 = vmul.f32 %v3907_v13, %v4833_v55  ;;  %v3913_v48 = vunpack.i.h.bf16 %v3911_v24  ;;  %v3912_v3 = vunpack.i.l.bf16 %v3911_v24 }
 0xa9d   :  { %1470 = vrot.lane.b32.xlu1 %v1458_v25, %s4059_s20  ;;  %3590 = vmatmul.mubr.msk.f32.vlgmr.msra.gmra.mrb[20].mxu0 %vm6027_vm15, %v5033_v41  ;;  %v3916_v42 = vpop.permute.xlu0 %3915  ;;  %v1460_v26 = vpack.c.bf16 %v1231_v45, %v1230_v4  ;;  %vm6035_vm15 = vmmov %vm6033_vm10 }
 0xa9e   :  { %v3918_v56 = vunpack.i.h.bf16 %v3916_v42  ;;  %v3917_v35 = vunpack.i.l.bf16 %v3916_v42  ;;  %3592 = vmatprep.mubr.msk.f32.mxu0 %vm6029_vm1, %v6028_v30  ;;  %v1235_v0 = vmul.f32 %v3913_v48, %v4833_v55  ;;  %v1234_v47 = vmul.f32 %v3912_v3, %v4830_v49  ;;  %v3962_v31 = vpop.eup %3961 }
 0xa9f   :  { %v1461_v54 = vpack.c.bf16 %v1233_v11, %v1232_v38 }
 0xaa0   :  { %v1237_v29 = vmul.f32 %v3918_v56, %v4830_v49  ;;  %v1236_v20 = vmul.f32 %v3917_v35, %v4838_v37  ;;  %v1462_v55 = vpack.c.bf16 %v1235_v0, %v1234_v47  ;;  %v3216_v49 = vld [vmem:[%s5791_s4 + $0x6] ss:$0 sm:$0xff] }
 0xaa1   :  { %1474 = vrot.lane.b32.xlu1 %v1460_v26, %s4059_s20  ;;  %1476 = vrot.lane.b32.xlu0 %v1461_v54, %s4059_s20  ;;  %v3964_v16 = vpop.eup %3963  ;;  %v860_v37 = vadd.f32 %v3216_v49, %v4877_v10  ;;  %v857_v40 = vadd.f32 %v3216_v49, %v4875_v51  ;;  %v3931_v10 = vld [vmem:[%s5790_s3 + $0x64] sm:$0xff]  }
 0xaa2   :  { %3593 = vmatmul.mubr.msk.f32.gmra.mrb[22].mxu0 %vm6030_vm14, %v3962_v31  ;;  %v1463_v1 = vpack.c.bf16 %v1237_v29, %v1236_v20  ;;  %3614 = vmatprep.subr.bf16.mxu1 %v3931_v10  ;;  %vm6036_vm14 = vmmov %vm6031_vm5  ;;  %v3932_v29 = vld [vmem:[%s5790_s3 + $0x6c] sm:$0xff]  }
 0xaa3   :  { %3595 = vmatprep.mubr.msk.f32.mxu0 %vm6029_vm1, %v6028_v30  ;;  %v5059_v21 = vadd.f32 %v860_v37, %v6032_v28  ;;  %v5065_v53 = vadd.f32 %v857_v40, %v6034_v63  ;;  %3615 = vmatpush3.bf16.msra.mxu1 %v3931_v10  ;;  %v3249_v28 = vld [vmem:[%s5791_s4 + $0xb] ss:$0 sm:$0xff] }
 0xaa4   :  { %3616 = vmatprep.subr.bf16.mxu1 %v3932_v29 }
 0xaa5   :  { %1478 = vrot.lane.b32.xlu1 %v1462_v55, %s4059_s20  ;;  %1480 = vrot.lane.b32.xlu0 %v1463_v1, %s4059_s20  ;;  %v870_v34 = vsel %vm6033_vm10, %v5059_v21, 0.0  ;;  %v867_v15 = vsel %vm6035_vm15, %v5065_v53, 0.0  ;;  %vm6037_vm15 = vmmov %vm6033_vm10  ;;  %s4062_s20 = smov 126  }
 0xaa6   :  { %3596 = vmatmul.mubr.msk.f32.gmra.mrb[24].mxu0 %vm6031_vm5, %v3964_v16 }
 0xaa7   :  { %3617 = vmatpush3.bf16.msra.mxu1 %v3932_v29 }
 0xaa8   :  { %3630 = vmatprep.subr.bf16.mxu1 %v6028_v30 }
 0xac4   :  { %871 = vadd.xlane.f32.xlu0 %v870_v34 }
 0xac9   :  { %868 = vadd.xlane.f32.xlu1 %v867_v15 }
 0xb0c   :  { %v1473_v51 = vpop.permute.xlu0 %1472 }
 0xb0f   :  { %v1471_v17 = vpop.permute.xlu1 %1470 }
 0xb10   :  { %3598 = vmatprep.subr.bf16.mxu0 %v1471_v17 }
 0xb11   :  { %3599 = vmatpush3.bf16.msra.mxu0 %v1471_v17 }
 0xb12   :  { %3600 = vmatprep.subr.bf16.mxu0 %v1473_v51 }
 0xb13   :  { %v1475_v22 = vpop.permute.xlu1 %1474  ;;  %v1477_v52 = vpop.permute.xlu0 %1476 }
 0xb15   :  { %3601 = vmatpush3.bf16.msra.mxu0 %v1473_v51 }
 0xb16   :  { %3602 = vmatprep.subr.bf16.mxu0 %v1475_v22 }
 0xb17   :  { %v1479_v36 = vpop.permute.xlu1 %1478  ;;  %v1481_v6 = vpop.permute.xlu0 %1480 }
 0xb19   :  { %3603 = vmatpush3.bf16.msra.mxu0 %v1475_v22 }
 0xb1a   :  { %3604 = vmatprep.subr.bf16.mxu0 %v1477_v52 }
 0xb1d   :  { %3605 = vmatpush3.bf16.msra.mxu0 %v1477_v52 }
 0xb1e   :  { %3606 = vmatprep.subr.bf16.mxu0 %v1479_v36 }
 0xb21   :  { %3607 = vmatpush3.bf16.msra.mxu0 %v1479_v36 }
 0xb22   :  { %3608 = vmatprep.subr.bf16.mxu0 %v1481_v6 }
 0xb25   :  { %3609 = vmatpush3.bf16.msra.mxu0 %v1481_v6  ;;  %v6038_v6 = vld [vmem:[#allocation44_spill] sm:$0xff] }
 0xb51   :  { %v872_v37 = vpop.xlane.xlu0 %871 }
 0xb52   :  { %v874_v15 = vmul.f32 0.03125, %v872_v37 }
 0xb70   :  { %v1436_v39 = vpop.f32.mrb[20].mxu0 }
 0xb71   :  { %v3591_v13 = vpop.f32.mrb[21].mxu0  ;;  %v1437_v45 = vadd.f32 1e-30, %v1436_v39 }
 0xb72   :  { %v876_v13 = vsub.f32 %v5059_v21, %v874_v15 }
 0xb73   :  { %3965 = vrcp.f32 %v1437_v45 }
 0xb75   :  { %v1441_v4 = vpop.f32.mrb[22].mxu0 }
 0xb76   :  { %v1442_v24 = vadd.f32 1e-30, %v1441_v4  ;;  %v3594_v25 = vpop.f32.mrb[23].mxu0  ;;  %v6040_v4 = vld [vmem:[#allocation45_spill] sm:$0xff] }
 0xb77   :  { %v6041_v25 = vld [vmem:[#allocation48_spill] sm:$0xff] }
 0xb78   :  { %3967 = vrcp.f32 %v1442_v24 }
 0xb79   :  { %v1446_v11 = vpop.f32.mrb[24].mxu0 }
 0xb7a   :  { %v1447_v38 = vadd.f32 1e-30, %v1446_v11  ;;  %v3597_v48 = vpop.f32.mrb[25].mxu0 }
 0xb7c   :  { %3969 = vrcp.f32 %v1447_v38 }
 0xb7d   :  { %v3966_v3 = vpop.eup %3965 }
 0xb7e   :  { %v1453_v56 = vmul.f32 %v3966_v3, %v5033_v41 }
 0xb82   :  { %v3968_v42 = vpop.eup %3967 }
 0xb83   :  { %v1454_v35 = vmul.f32 %v3968_v42, %v3962_v31  ;;  %v878_v42 = vmul.f32 %v876_v13, %v876_v13 }
 0xb85   :  { %v1456_v0 = vpack.c.bf16 %v1454_v35, %v1453_v56  ;;  %v3933_v56 = vld [vmem:[%s5790_s3 + $0x84] sm:$0xff]   ;;  %v3934_v35 = vld [vmem:[%s5790_s3 + $0x8c] sm:$0xff]  }
 0xb86   :  { %v3970_v47 = vpop.eup %3969 }
 0xb87   :  { %v1455_v26 = vmul.f32 %v3970_v47, %v3964_v16  ;;  %3610 = vmatprep.mubr.msk.bf16.mxu0 %vm6036_vm14, %v1456_v0  ;;  %v869_v16 = vpop.xlane.xlu1 %868  ;;  %vm6039_vm14 = vmmov %vm6033_vm10 }
 0xb88   :  { %v873_v40 = vmul.f32 0.03125, %v869_v16 }
 0xb89   :  { %v1457_v54 = vpack.c.bf16 %v1455_v26, %v1455_v26 }
 0xb8a   :  { %v875_v52 = vsub.f32 %v5065_v53, %v873_v40 }
 0xb8b   :  { %3611 = vmatmul.mubr.msk.bf16.vlgmr.msra.gmra.mrb[28].mxu0 %vm6031_vm5, %v1457_v54  ;;  %vm6042_vm5 = vmmov %vm6033_vm10 }
 0xb8c   :  { %v877_v48 = vmul.f32 %v875_v52, %v875_v52  ;;  %vm6045_vm11 = vmmov %vm6042_vm5 }
 0xb8d   :  { %v882_v21 = vsel %vm6045_vm11, %v878_v42, 0.0  ;;  %vm6046_vm11 = vmmov %vm6042_vm5  ;;  %v3936_v42 = vld [vmem:[%s5790_s3 + $0x7c] sm:$0xff]  }
 0xc5e   :  { %v3612_v20 = vpop.f32.mrb[28].mxu0 }
 0xc5f   :  { %v1528_v1 = vpop.f32.mrb[29].mxu0  ;;  %v1543_v49 = vpack.c.bf16 %v3612_v20, %v3612_v20 }
 0xc60   :  { %v3613_v41 = vpop.f32.mrb[30].mxu0 }
 0xc61   :  { %v1531_v31 = vpop.f32.mrb[31].mxu0 }
 0xc62   :  { %v1542_v55 = vpack.c.bf16 %v1531_v31, %v1528_v1 }
 0xc64   :  { %3618 = vmatprep.mubr.msk.bf16.mxu1 %vm6033_vm10, %v1542_v55  ;;  %vm6043_vm10 = vmmov %vm6042_vm5 }
 0xc65   :  { %3619 = vmatmul.mubr.msk.bf16.vlgmr.msra.gmra.mrb[20].mxu1 %vm6037_vm15, %v1543_v49  ;;  %vm6044_vm15 = vmmov %vm6042_vm5 }
 0xc66   :  { %3634 = vmatprep.mubr.msk.bf16.mxu1 %vm6029_vm1, %v6028_v30  ;;  %v879_v53 = vsel %vm6044_vm15, %v877_v48, 0.0  ;;  %3631 = vmatpush3.bf16.msra.mxu1 %v3933_v56 }
 0xc67   :  { %3632 = vmatprep.subr.bf16.mxu1 %v6028_v30 }
 0xc6a   :  { %3633 = vmatpush3.bf16.msra.mxu1 %v3934_v35 }
 0xc6b   :  { %3781 = vmatprep.subr.bf16.mxu1 %v4060_v62 }
 0xd38   :  { %v3620_v34 = vpop.f32.mrb[20].mxu1 }
 0xd39   :  { %v1600_v63 = vpop.f32.mrb[21].mxu1  ;;  %v1609_v10 = vadd.f32 %v3620_v34, %v3249_v28 }
 0xd3a   :  { %v1601_v17 = vadd.f32 %v3249_v28, %v1600_v63  ;;  %v3621_v51 = vpop.f32.mrb[22].mxu1 }
 0xd3b   :  { %v1603_v22 = vpop.f32.mrb[23].mxu1  ;;  %v1616_v11 = vadd.f32 %v1609_v10, %v6041_v25 }
 0xd3c   :  { %v1604_v36 = vadd.f32 %v3249_v28, %v1603_v22  ;;  %v1614_v39 = vadd.f32 %v1601_v17, %v6038_v6 }
 0xd3d   :  { %v1625_v3 = vsel %vm6043_vm10, %v1616_v11, 0.0  ;;  %vm6048_vm10 = vmmov %vm6042_vm5 }
 0xd3e   :  { %v1619_v45 = vsel %vm6039_vm14, %v1614_v39, 0.0  ;;  %v1615_v24 = vadd.f32 %v1604_v36, %v6040_v4  ;;  %vm6047_vm14 = vmmov %vm6042_vm5  ;;  %v3222_v36 = vld [vmem:[%s5791_s4 + $0x7] ss:$0 sm:$0xff] }
 0xd3f   :  { %1620 = vadd.xlane.f32.xlu0 %v1619_v45 }
 0xd40   :  { %v1622_v38 = vsel %vm6042_vm5, %v1615_v24, 0.0 }
 0xd41   :  { %1623 = vadd.xlane.f32.xlu1 %v1622_v38 }
 0xd43   :  { %1626 = vadd.xlane.f32.xlu0 %v1625_v3  ;;  %v6049_v3 = vld [vmem:[#allocation38_spill] sm:$0xff] }
 0xd44   :  { %vm6050_vm15 = vnez %v6049_v3  ;;  %v6060_v3 = vld [vmem:[#allocation23_spill] sm:$0xff] }
 0xd45   :  { %880 = vadd.xlane.f32.xlu1 %v879_v53  ;;  %v6053_v53 = vld [vmem:[#allocation40_spill] sm:$0xff] }
 0xd47   :  { %883 = vadd.xlane.f32.xlu0 %v882_v21  ;;  %v6055_v21 = vld [vmem:[#allocation41_spill] sm:$0xff] }
 0xdcc   :  { %v1621_v0 = vpop.xlane.xlu0 %1620 }
 0xdcd   :  { %v1628_v47 = vmul.f32 0.03125, %v1621_v0 }
 0xdce   :  { %v1624_v26 = vpop.xlane.xlu1 %1623 }
 0xdcf   :  { %v5104_v54 = vsub.f32 %v1614_v39, %v1628_v47  ;;  %v1629_v29 = vmul.f32 0.03125, %v1624_v26 }
 0xdd0   :  { %v1627_v20 = vpop.xlane.xlu0 %1626 }
 0xdd1   :  { %v1632_v1 = vsub.f32 %v1615_v24, %v1629_v29  ;;  %v1630_v41 = vmul.f32 0.03125, %v1627_v20  ;;  %v1634_v31 = vmul.f32 %v5104_v54, %v5104_v54  ;;  %v3223_v24 = vld [vmem:[%s5791_s4 + $0x8] ss:$0 sm:$0xff] }
 0xdd2   :  { %v881_v55 = vpop.xlane.xlu1 %880 }
 0xdd3   :  { %v1633_v49 = vsub.f32 %v1616_v11, %v1630_v41  ;;  %v885_v16 = vmul.f32 0.03125, %v881_v55  ;;  %v1637_v37 = vsel %vm6046_vm11, %v1634_v31, 0.0  ;;  %v1635_v28 = vmul.f32 %v1632_v1, %v1632_v1  ;;  %v3254_v55 = vld [vmem:[%s5791_s4 + $0xc] ss:$0 sm:$0xff] }
 0xdd4   :  { %1638 = vadd.xlane.f32.xlu1 %v1637_v37  ;;  %v884_v40 = vpop.xlane.xlu0 %883 }
 0xdd5   :  { %v887_v34 = vadd.f32 1e-05, %v885_v16  ;;  %v886_v63 = vmul.f32 0.03125, %v884_v40  ;;  %v1640_v15 = vsel %vm6047_vm14, %v1635_v28, 0.0  ;;  %v1636_v10 = vmul.f32 %v1633_v49, %v1633_v49 }
 0xdd6   :  { %1641 = vadd.xlane.f32.xlu0 %v1640_v15  ;;  %vm6054_vm14 = vnez %v6053_v53  ;;  %v6062_v53 = vld [vmem:[#allocation31_spill] sm:$0xff] }
 0xdd7   :  { %3971 = vrsqrt.f32 %v887_v34  ;;  %v888_v17 = vadd.f32 1e-05, %v886_v63  ;;  %v1643_v51 = vsel %vm6042_vm5, %v1636_v10, 0.0  ;;  %vm6056_vm5 = vnez %v6055_v21  ;;  %v3255_v34 = vld [vmem:[%s5791_s4 + $0xd] ss:$0 sm:$0xff] }
 0xdd8   :  { %1644 = vadd.xlane.f32.xlu1 %v1643_v51  ;;  %v6063_v21 = vunpack.i.l.bf16 %v6062_v53 }
 0xdd9   :  { %3973 = vrsqrt.f32 %v888_v17 }
 0xde1   :  { %v3972_v22 = vpop.eup %3971 }
 0xde2   :  { %v891_v6 = vmul.f32 %v3972_v22, %v875_v52  ;;  %v6051_v52 = vld [vmem:[#allocation39_spill] sm:$0xff] }
 0xde3   :  { %v3974_v39 = vpop.eup %3973  ;;  %vm6052_vm11 = vnez %v6051_v52 }
 0xde4   :  { %v897_v45 = vmul.f32 %v3222_v36, %v891_v6  ;;  %v892_v4 = vmul.f32 %v3974_v39, %v876_v13  ;;  %v3935_v13 = vld [vmem:[%s5790_s3 + $0x74] sm:$0xff]  }
 0xde5   :  { %3622 = vmatprep.subr.bf16.mxu0 %v3935_v13 }
 0xde6   :  { %v898_v25 = vmul.f32 %v3222_v36, %v892_v4  ;;  %v903_v11 = vadd.f32 %v3223_v24, %v897_v45  ;;  %3623 = vmatpush3.bf16.msra.mxu0 %v3935_v13  ;;  %v6061_v13 = vld [vmem:[#allocation26_spill] sm:$0xff] }
 0xde7   :  { %3624 = vmatprep.subr.bf16.mxu0 %v3936_v42 }
 0xde8   :  { %v904_v38 = vadd.f32 %v3223_v24, %v898_v25  ;;  %v6058_v25 = vld [vmem:[#allocation21_spill] sm:$0xff] }
 0xdea   :  { %v1753_v48 = vpack.c.bf16 %v904_v38, %v903_v11  ;;  %3625 = vmatpush3.bf16.msra.mxu0 %v3936_v42  ;;  %v6059_v38 = vld [vmem:[#allocation29_spill] sm:$0xff] }
 0xdec   :  { %3635 = vmatmul.mubr.msk.bf16.vlgmr.msra.gmra.mrb[24].mxu1 %vm6048_vm10, %v1753_v48 }
 0xded   :  { %3783 = vmatpush3.bf16.msk.msra.mxu1 %vm6050_vm15, %v6003_v14  ;;  %3666 = vmatprep.mubr.msk.f32.mxu1 %vm6029_vm1, %v6028_v30  ;;  %vm6057_vm15 = vmmov %vm6048_vm10 }
 0xdee   :  { %3784 = vmatprep.subr.bf16.mxu1 %v4060_v62 }
 0xdf1   :  { %3786 = vmatpush3.bf16.msk.msra.mxu1 %vm6052_vm11, %v6003_v14  ;;  %vm6078_vm11 = vmmov %vm6048_vm10 }
 0xdf2   :  { %3787 = vmatprep.subr.bf16.mxu1 %v4060_v62 }
 0xdf5   :  { %3789 = vmatpush3.bf16.msk.msra.mxu1 %vm6054_vm14, %v6003_v14  ;;  %vm6079_vm14 = vmmov %vm6048_vm10 }
 0xdf6   :  { %3790 = vmatprep.subr.bf16.mxu1 %v4060_v62 }
 0xdf9   :  { %3792 = vmatpush3.bf16.msk.msra.mxu1 %vm6056_vm5, %v6003_v14  ;;  %vm6080_vm5 = vmmov %vm6048_vm10 }
 0xdfa   :  { %vm6083_vm2 = vmmov %vm6080_vm5 }
 0xdfb   :  { %vm6084_vm4 = vmmov %vm6083_vm2 }
 0xdfc   :  { %vm6085_vm0 = vmmov %vm6083_vm2 }
 0xe61   :  { %v1639_v56 = vpop.xlane.xlu1 %1638 }
 0xe62   :  { %v1646_v35 = vmul.f32 0.03125, %v1639_v56 }
 0xe63   :  { %v1642_v0 = vpop.xlane.xlu0 %1641 }
 0xe64   :  { %v1649_v47 = vadd.f32 1e-05, %v1646_v35  ;;  %v1647_v26 = vmul.f32 0.03125, %v1642_v0  ;;  %v6064_v35 = vld [vmem:[#allocation32_spill] sm:$0xff] }
 0xe65   :  { %v1645_v29 = vpop.xlane.xlu1 %1644  ;;  %v6065_v0 = vunpack.i.l.bf16 %v6064_v35 }
 0xe66   :  { %3975 = vrsqrt.f32 %v1649_v47  ;;  %v1650_v20 = vadd.f32 1e-05, %v1647_v26  ;;  %v1648_v41 = vmul.f32 0.03125, %v1645_v29  ;;  %v6066_v26 = vld [vmem:[#allocation33_spill] sm:$0xff] }
 0xe67   :  { %v6067_v29 = vunpack.i.l.bf16 %v6066_v26 }
 0xe68   :  { %3977 = vrsqrt.f32 %v1650_v20  ;;  %v1651_v31 = vadd.f32 1e-05, %v1648_v41  ;;  %v6068_v41 = vld [vmem:[#allocation25_spill] sm:$0xff] }
 0xe6a   :  { %3979 = vrsqrt.f32 %v1651_v31 }
 0xe70   :  { %v3976_v62 = vpop.eup %3975 }
 0xe71   :  { %v1655_v14 = vmul.f32 %v3976_v62, %v5104_v54  ;;  %v6069_v62 = vld [vmem:[#allocation30_spill] sm:$0xff] }
 0xe72   :  { %v3978_v16 = vpop.eup %3977 }
 0xe73   :  { %v1656_v37 = vmul.f32 %v3978_v16, %v1632_v1  ;;  %v1662_v28 = vmul.f32 %v3254_v55, %v1655_v14  ;;  %v3261_v1 = vld [vmem:[%s5791_s4 + $0xf] ss:$0 sm:$0xff]  ;;  %v6070_v14 = vld [vmem:[#allocation24_spill] sm:$0xff] }
 0xe74   :  { %v3980_v40 = vpop.eup %3979 }
 0xe75   :  { %v1657_v63 = vmul.f32 %v3980_v40, %v1633_v49  ;;  %v1663_v15 = vmul.f32 %v3254_v55, %v1656_v37  ;;  %v5148_v10 = vadd.f32 %v3255_v34, %v1662_v28  ;;  %v6071_v37 = vld [vmem:[#allocation27_spill] sm:$0xff]  ;;  %v6072_v40 = vunpack.i.h.bf16 %v6062_v53 }
 0xe77   :  { %v5150_v17 = vadd.f32 %v3255_v34, %v1663_v15  ;;  %v1664_v51 = vmul.f32 %v3254_v55, %v1657_v63  ;;  %v6073_v63 = vunpack.i.h.bf16 %v6064_v35 }
 0xe79   :  { %v1676_v22 = vpack.c.bf16 %v5150_v17, %v5148_v10  ;;  %v5154_v36 = vadd.f32 %v3255_v34, %v1664_v51  ;;  %v6074_v51 = vunpack.i.h.bf16 %v6066_v26 }
 0xe7b   :  { %3626 = vmatprep.mubr.msk.bf16.mxu0 %vm6048_vm10, %v1676_v22  ;;  %v1677_v54 = vpack.c.bf16 %v5154_v36, %v5154_v36  ;;  %vm6081_vm10 = vmmov %vm6080_vm5 }
 0xe7d   :  { %3627 = vmatmul.mubr.msk.bf16.vlgmr.msra.gmra.mrb[32].mxu0 %vm6057_vm15, %v1677_v54  ;;  %v6075_v54 = vld [vmem:[#allocation34_spill] sm:$0xff]  ;;  %vm6082_vm15 = vmmov %vm6080_vm5 }
 0xebf   :  { %v1808_v49 = vpop.f32.mrb[24].mxu1 }
 0xec0   :  { %v1809_v6 = vadd.f32 %v3261_v1, %v1808_v49  ;;  %v3636_v39 = vpop.f32.mrb[25].mxu1 }
 0xec1   :  { %v1811_v45 = vpop.f32.mrb[26].mxu1 }
 0xec2   :  { %v1812_v4 = vadd.f32 %v3261_v1, %v1811_v45  ;;  %v3637_v24 = vpop.f32.mrb[27].mxu1  ;;  %v1821_v11 = vmul.f32 %v1809_v6, %v6058_v25  ;;  %v1823_v48 = vmul.f32 %v1809_v6, %v6059_v38  ;;  %v1825_v52 = vmul.f32 %v1809_v6, %v6060_v3 }
 0xec3   :  { %v1827_v42 = vmul.f32 %v1809_v6, %v6061_v13  ;;  %v1829_v56 = vmul.f32 %v6063_v21, %v1809_v6  ;;  %v1833_v47 = vmul.f32 %v6065_v0, %v1809_v6  ;;  %v1831_v20 = vmul.f32 %v6067_v29, %v1809_v6 }
 0xec4   :  { %v1822_v31 = vmul.f32 %v1812_v4, %v6068_v41  ;;  %v1824_v55 = vmul.f32 %v1812_v4, %v6069_v62  ;;  %v1826_v16 = vmul.f32 %v1812_v4, %v6070_v14  ;;  %v1828_v28 = vmul.f32 %v1812_v4, %v6071_v37 }
 0xec5   :  { %v1830_v34 = vmul.f32 %v6072_v40, %v1812_v4  ;;  %v1834_v15 = vmul.f32 %v6073_v63, %v1812_v4  ;;  %v1832_v22 = vmul.f32 %v6074_v51, %v1812_v4  ;;  %v6076_v1 = vunpack.i.l.bf16 %v6075_v54  ;;  %v6088_v63 = vld [vmem:[#allocation36_spill] sm:$0xff] }
 0xec6   :  { %v1839_v39 = vpack.c.bf16 %v1822_v31, %v1821_v11  ;;  %v1840_v45 = vpack.c.bf16 %v1824_v55, %v1823_v48  ;;  %v1841_v24 = vpack.c.bf16 %v1826_v16, %v1825_v52  ;;  %v1842_v25 = vpack.c.bf16 %v1828_v28, %v1827_v42  ;;  %v3256_v52 = vld [vmem:[%s5791_s4 + $0xe] ss:$0 sm:$0xff] }
 0xec7   :  { %v1835_v49 = vmul.f32 %v6076_v1, %v1809_v6  ;;  %v2030_v38 = vpack.c.bf16 %v1830_v34, %v1829_v56  ;;  %v2032_v3 = vpack.c.bf16 %v1834_v15, %v1833_v47  ;;  %v2031_v13 = vpack.c.bf16 %v1832_v22, %v1831_v20  ;;  %v6090_v22 = vld [vmem:[#allocation37_spill] sm:$0xff] }
 0xec8   :  { %v6077_v21 = vunpack.i.h.bf16 %v6075_v54  ;;  %3803 = vmatprep.subr.msk.bf16.mxu0 %vm6078_vm11, %v1839_v39  ;;  %v1850_v35 = vsel %vm6079_vm14, %v1839_v39, 0  ;;  %v1853_v6 = vsel %vm6081_vm10, %v1840_v45, 0  ;;  %v1856_v11 = vsel %vm6083_vm2, %v1841_v24, 0  ;;  %vm6086_vm2 = vmmov %vm6085_vm0 }
 0xec9   :  { %3639 = vmatpush3.bf16.xpose.msra.mxu0 %v1850_v35  ;;  %vm6087_vm11 = vmmov %vm6085_vm0  ;;  %v1820_v40 = vsel %vm4459_vm8, 0.0, %v6007_v50 }
 0xeca   :  { %v1836_v53 = vmul.f32 %v6077_v21, %v1812_v4  ;;  %3804 = vmatprep.subr.msk.bf16.mxu0 %vm6080_vm5, %v1840_v45  ;;  %v1859_v4 = vsel %vm6085_vm0, %v1842_v25, 0  ;;  %vm6089_vm0 = vcmask 523264  }
 0xecb   :  { %vm6092_vm14 = vmmov %vm6089_vm0 }
 0xecc   :  { %v2033_v0 = vpack.c.bf16 %v1836_v53, %v1835_v49  ;;  %vm6093_vm5 = vmmov %vm6089_vm0 }
 0xecd   :  { %vm6094_vm10 = vmmov %vm6089_vm0 }
 0xed1   :  { %3641 = vmatpush3.bf16.xpose.msra.mxu0 %v1853_v6 }
 0xed2   :  { %3805 = vmatprep.subr.msk.bf16.mxu0 %vm6082_vm15, %v1841_v24  ;;  %vm6095_vm15 = vmmov %vm6089_vm0 }
 0xed9   :  { %3643 = vmatpush3.bf16.xpose.msra.mxu0 %v1856_v11 }
 0xeda   :  { %3806 = vmatprep.subr.msk.bf16.mxu0 %vm6084_vm4, %v1842_v25  ;;  %vm6091_vm4 = vmmov %vm6089_vm0 }
 0xee1   :  { %3645 = vmatpush3.bf16.xpose.msra.mxu0 %v1859_v4 }
 0xf50   :  { %v3628_v48 = vpop.f32.mrb[32].mxu0 }
 0xf51   :  { %v1735_v42 = vpop.f32.mrb[33].mxu0  ;;  %v1744_v47 = vadd.f32 %v3628_v48, %v3256_v52 }
 0xf52   :  { %v3629_v56 = vpop.f32.mrb[34].mxu0  ;;  %v1736_v29 = vadd.f32 %v3256_v52, %v1735_v42  ;;  %v3937_v42 = vld [vmem:[%s5790_s3 + $0x94] sm:$0xff]  }
 0xf53   :  { %v1738_v26 = vpop.f32.mrb[35].mxu0  ;;  %v1838_v31 = vpack.c.bf16 %v1744_v47, %v1744_v47  ;;  %3687 = vmatprep.subr.bf16.mxu0 %v3937_v42 }
 0xf54   :  { %v1739_v20 = vadd.f32 %v3256_v52, %v1738_v26 }
 0xf56   :  { %v1837_v41 = vpack.c.bf16 %v1739_v20, %v1736_v29 }
 0xf58   :  { %3646 = vmatprep.mubr.msk.bf16.mxu0 %vm6086_vm2, %v1837_v41  ;;  %vm6097_vm2 = vmmov %vm6089_vm0 }
 0xf59   :  { %3647 = vmatmul.mubr.msk.bf16.vlgmr.msra.gmra.mrb[36].mxu0 %vm6087_vm11, %v1838_v31 }
 0xf5a   :  { %3688 = vmatpush3.bf16.msra.mxu0 %v3937_v42 }
0x102c   :  { %v3648_v62 = vpop.f32.mrb[36].mxu0 }
0x102d   :  { %v1895_v55 = vpop.f32.mrb[37].mxu0  ;;  %v1911_v14 = vmul.f32 0.35355338, %v3648_v62 }
0x102e   :  { %v1909_v16 = vmul.f32 0.35355338, %v1895_v55  ;;  %v3649_v37 = vpop.f32.mrb[38].mxu0 }
0x102f   :  { %v1898_v28 = vpop.f32.mrb[39].mxu0  ;;  %v1914_v1 = vadd.f32 %v1911_v14, %v1820_v40 }
0x1030   :  { %v1910_v34 = vmul.f32 0.35355338, %v1898_v28  ;;  %v1912_v15 = vadd.f32 %v1909_v16, %v6088_v63 }
0x1031   :  { %v1921_v39 = vsel %vm6092_vm14, %v1914_v1, -inf }
0x1032   :  { %v1915_v51 = vsel %vm6089_vm0, %v1912_v15, -inf  ;;  %v1913_v54 = vadd.f32 %v1910_v34, %v6090_v22 }
0x1033   :  { %1916 = vmax.xlane.f32.xlu0 %v1915_v51  ;;  %v3938_v51 = vld [vmem:[%s5790_s3 + $0x9c] sm:$0xff]  }
0x1034   :  { %v1918_v49 = vsel %vm6091_vm4, %v1913_v54, -inf  ;;  %3689 = vmatprep.subr.bf16.mxu0 %v3938_v51 }
0x1035   :  { %1919 = vmax.xlane.f32.xlu1 %v1918_v49  ;;  %3690 = vmatpush3.bf16.msra.mxu0 %v3938_v51 }
0x1037   :  { %1922 = vmax.xlane.f32.xlu0 %v1921_v39 }
0x1046   :  { %2038 = vrot.lane.b32.xlu1 %v2030_v38, %s4056_s19 }
0x104a   :  { %2042 = vrot.lane.b32.xlu1 %v2032_v3, %s4056_s19 }
0x104d   :  { %2040 = vrot.lane.b32.xlu0 %v2031_v13, %s4056_s19 }
0x104e   :  { %2044 = vrot.lane.b32.xlu1 %v2033_v0, %s4056_s19 }
0x10c0   :  { %v1917_v50 = vpop.xlane.xlu0 %1916 }
0x10c1   :  { %v1924_v45 = vsub.f32 %v1912_v15, %v1917_v50 }
0x10c2   :  { %v1920_v24 = vpop.xlane.xlu1 %1919 }
0x10c3   :  { %v1927_v25 = vmul.f32 1.442695, %v1924_v45  ;;  %v1925_v21 = vsub.f32 %v1913_v54, %v1920_v24  ;;  %v3280_v45 = vld [vmem:[%s5791_s4 + $0x10] ss:$0 sm:$0xff] }
0x10c4   :  { %v1923_v53 = vpop.xlane.xlu0 %1922 }
0x10c5   :  { %3981 = vpow2.f32 %v1927_v25  ;;  %v1929_v35 = vmul.f32 1.442695, %v1925_v21  ;;  %v1926_v6 = vsub.f32 %v1914_v1, %v1923_v53 }
0x10c6   :  { %v2039_v11 = vpop.permute.xlu1 %2038 }
0x10c7   :  { %3675 = vmatprep.subr.bf16.mxu1 %v2039_v11  ;;  %3983 = vpow2.f32 %v1929_v35  ;;  %v1931_v4 = vmul.f32 1.442695, %v1926_v6 }
0x10c8   :  { %v2041_v3 = vpop.permute.xlu0 %2040 }
0x10c9   :  { %3985 = vpow2.f32 %v1931_v4 }
0x10ca   :  { %v2043_v0 = vpop.permute.xlu1 %2042 }
0x10ce   :  { %v2045_v52 = vpop.permute.xlu1 %2044 }
0x10cf   :  { %v3982_v38 = vpop.eup %3981 }
0x10d0   :  { %3667 = vmatmul.mubr.msk.f32.vlgmr.msra.gmra.mrb[2].mxu1 %vm6093_vm5, %v3982_v38 }
0x10d1   :  { %3676 = vmatpush3.bf16.msra.mxu1 %v2039_v11  ;;  %3669 = vmatprep.mubr.msk.f32.mxu1 %vm6029_vm1, %v6028_v30  ;;  %v3984_v13 = vpop.eup %3983 }
0x10d2   :  { %3677 = vmatprep.subr.bf16.mxu1 %v2041_v3 }
0x10d3   :  { %v3986_v48 = vpop.eup %3985 }
0x10d4   :  { %3670 = vmatmul.mubr.msk.f32.gmra.mrb[28].mxu1 %vm6094_vm10, %v3984_v13 }
0x10d5   :  { %3678 = vmatpush3.bf16.msra.mxu1 %v2041_v3  ;;  %3672 = vmatprep.mubr.msk.f32.mxu1 %vm6029_vm1, %v6028_v30  ;;  %vm6096_vm1 = vmmov %vm6089_vm0 }
0x10d6   :  { %3679 = vmatprep.subr.bf16.mxu1 %v2043_v0  ;;  %vm6098_vm0 = vmmov %vm6087_vm11 }
0x10d7   :  { %vm6099_vm4 = vmmov %vm6098_vm0 }
0x10d8   :  { %3673 = vmatmul.mubr.msk.f32.gmra.mrb[30].mxu1 %vm6095_vm15, %v3986_v48  ;;  %vm6100_vm14 = vmmov %vm6098_vm0 }
0x10d9   :  { %3680 = vmatpush3.bf16.msra.mxu1 %v2043_v0  ;;  %vm6101_vm5 = vmmov %vm6098_vm0 }
0x10da   :  { %3681 = vmatprep.subr.bf16.mxu1 %v2045_v52  ;;  %vm6102_vm10 = vmmov %vm6098_vm0 }
0x10db   :  { %vm6103_vm15 = vmmov %vm6098_vm0 }
0x10dd   :  { %3682 = vmatpush3.bf16.msra.mxu1 %v2045_v52 }
0x11a3   :  { %v2008_v56 = vpop.f32.mrb[2].mxu1 }
0x11a4   :  { %v2009_v47 = vadd.f32 1e-30, %v2008_v56  ;;  %v3668_v26 = vpop.f32.mrb[3].mxu1 }
0x11a6   :  { %3987 = vrcp.f32 %v2009_v47 }
0x11a7   :  { %v2013_v29 = vpop.f32.mrb[28].mxu1 }
0x11a8   :  { %v2014_v20 = vadd.f32 1e-30, %v2013_v29  ;;  %v3671_v41 = vpop.f32.mrb[29].mxu1 }
0x11aa   :  { %3989 = vrcp.f32 %v2014_v20 }
0x11ab   :  { %v2018_v31 = vpop.f32.mrb[30].mxu1 }
0x11ac   :  { %v2019_v62 = vadd.f32 1e-30, %v2018_v31  ;;  %v3674_v55 = vpop.f32.mrb[31].mxu1 }
0x11ae   :  { %3991 = vrcp.f32 %v2019_v62 }
0x11b0   :  { %v3988_v14 = vpop.eup %3987 }
0x11b1   :  { %v2025_v37 = vmul.f32 %v3988_v14, %v3982_v38 }
0x11b4   :  { %v3990_v16 = vpop.eup %3989 }
0x11b5   :  { %v2026_v28 = vmul.f32 %v3990_v16, %v3984_v13  ;;  %v3939_v16 = vld [vmem:[%s5790_s3 + $0xa4] sm:$0xff]  }
0x11b6   :  { %3695 = vmatprep.subr.bf16.mxu1 %v3939_v16 }
0x11b7   :  { %v2028_v40 = vpack.c.bf16 %v2026_v28, %v2025_v37  ;;  %v3940_v37 = vld [vmem:[%s5790_s3 + $0xac] sm:$0xff]   ;;  %v3941_v28 = vld [vmem:[%s5790_s3 + $0xb4] sm:$0xff]  }
0x11b8   :  { %v3992_v34 = vpop.eup %3991  ;;  %3703 = vmatprep.subr.bf16.mxu0 %v3941_v28 }
0x11b9   :  { %v2027_v63 = vmul.f32 %v3992_v34, %v3986_v48  ;;  %3683 = vmatprep.mubr.msk.bf16.mxu1 %vm6096_vm1, %v2028_v40  ;;  %vm6104_vm1 = vmmov %vm6098_vm0  ;;  %v3942_v40 = vld [vmem:[%s5790_s3 + $0xbc] sm:$0xff]  }
0x11bb   :  { %v2029_v15 = vpack.c.bf16 %v2027_v63, %v2027_v63 }
0x11bd   :  { %3684 = vmatmul.mubr.msk.bf16.vlgmr.msra.gmra.mrb[32].mxu1 %vm6097_vm2, %v2029_v15  ;;  %vm6105_vm2 = vmmov %vm6098_vm0 }
0x11be   :  { %3696 = vmatpush3.bf16.msra.mxu1 %v3939_v16 }
0x11bf   :  { %3697 = vmatprep.subr.bf16.mxu1 %v3940_v37 }
0x11c2   :  { %3698 = vmatpush3.bf16.msra.mxu1 %v3940_v37  ;;  %v3292_v37 = vld [vmem:[%s5791_s4 + $0x14] ss:$0 sm:$0xff] }
0x1290   :  { %v3685_v22 = vpop.f32.mrb[32].mxu1 }
0x1291   :  { %v2090_v54 = vpop.f32.mrb[33].mxu1  ;;  %v2105_v50 = vpack.c.bf16 %v3685_v22, %v3685_v22 }
0x1292   :  { %v3686_v1 = vpop.f32.mrb[34].mxu1 }
0x1293   :  { %v2093_v49 = vpop.f32.mrb[35].mxu1 }
0x1294   :  { %v2104_v39 = vpack.c.bf16 %v2093_v49, %v2090_v54 }
0x1296   :  { %3691 = vmatprep.mubr.msk.bf16.mxu0 %vm6087_vm11, %v2104_v39  ;;  %vm6106_vm11 = vmmov %vm6098_vm0 }
0x1297   :  { %3692 = vmatmul.mubr.msk.bf16.vlgmr.msra.gmra.mrb[40].mxu0 %vm6098_vm0, %v2105_v50  ;;  %vm6107_vm0 = vcmask 523264  }
0x1298   :  { %3704 = vmatpush3.bf16.msra.mxu0 %v3941_v28 }
0x1299   :  { %3705 = vmatprep.subr.bf16.mxu0 %v3942_v40 }
0x129c   :  { %3706 = vmatpush3.bf16.msra.mxu0 %v3942_v40 }
0x136a   :  { %v3693_v24 = vpop.f32.mrb[40].mxu0 }
0x136b   :  { %v2162_v25 = vpop.f32.mrb[41].mxu0  ;;  %v2171_v21 = vadd.f32 %v3693_v24, %v3280_v45 }
0x136c   :  { %v2163_v53 = vadd.f32 %v3280_v45, %v2162_v25  ;;  %v3694_v35 = vpop.f32.mrb[42].mxu0 }
0x136d   :  { %v2165_v6 = vpop.f32.mrb[43].mxu0  ;;  %v2178_v13 = vadd.f32 %v2171_v21, %v5154_v36 }
0x136e   :  { %v2166_v11 = vadd.f32 %v3280_v45, %v2165_v6  ;;  %v2176_v4 = vadd.f32 %v2163_v53, %v5148_v10  ;;  %v3285_v45 = vld [vmem:[%s5791_s4 + $0x11] ss:$0 sm:$0xff]  ;;  %v3286_v6 = vld [vmem:[%s5791_s4 + $0x12] ss:$0 sm:$0xff] }
0x136f   :  { %v2187_v48 = vsel %vm6101_vm5, %v2178_v13, 0.0  ;;  %vm6110_vm5 = vmmov %vm6104_vm1 }
0x1370   :  { %v2181_v38 = vsel %vm6099_vm4, %v2176_v4, 0.0  ;;  %v2177_v3 = vadd.f32 %v2166_v11, %v5150_v17  ;;  %vm6108_vm4 = vmmov %vm6107_vm0 }
0x1371   :  { %2182 = vadd.xlane.f32.xlu0 %v2181_v38 }
0x1372   :  { %v2184_v0 = vsel %vm6100_vm14, %v2177_v3, 0.0  ;;  %vm6109_vm14 = vmmov %vm6104_vm1 }
0x1373   :  { %2185 = vadd.xlane.f32.xlu1 %v2184_v0 }
0x1375   :  { %2188 = vadd.xlane.f32.xlu0 %v2187_v48 }
0x13fe   :  { %v2183_v52 = vpop.xlane.xlu0 %2182 }
0x13ff   :  { %v2190_v42 = vmul.f32 0.03125, %v2183_v52 }
0x1400   :  { %v2186_v56 = vpop.xlane.xlu1 %2185 }
0x1401   :  { %v2193_v47 = vsub.f32 %v2176_v4, %v2190_v42  ;;  %v2191_v26 = vmul.f32 0.03125, %v2186_v56  ;;  %v3943_v42 = vld [vmem:[%s5790_s3 + $0xc4] sm:$0xff]   ;;  %v3944_v56 = vld [vmem:[%s5790_s3 + $0xcc] sm:$0xff]  }
0x1402   :  { %v2189_v29 = vpop.xlane.xlu0 %2188  ;;  %3707 = vmatprep.subr.bf16.mxu0 %v3943_v42 }
0x1403   :  { %v2194_v10 = vsub.f32 %v2177_v3, %v2191_v26  ;;  %v2192_v20 = vmul.f32 0.03125, %v2189_v29  ;;  %v2196_v41 = vmul.f32 %v2193_v47, %v2193_v47  ;;  %3708 = vmatpush3.bf16.msra.mxu0 %v3943_v42 }
0x1404   :  { %3709 = vmatprep.subr.bf16.mxu0 %v3944_v56 }
0x1405   :  { %v2195_v31 = vsub.f32 %v2178_v13, %v2192_v20  ;;  %v2199_v17 = vsel %vm6102_vm10, %v2196_v41, 0.0  ;;  %v2197_v36 = vmul.f32 %v2194_v10, %v2194_v10  ;;  %vm6111_vm10 = vmmov %vm6104_vm1 }
0x1406   :  { %2200 = vadd.xlane.f32.xlu0 %v2199_v17 }
0x1407   :  { %v2202_v62 = vsel %vm6103_vm15, %v2197_v36, 0.0  ;;  %v2198_v55 = vmul.f32 %v2195_v31, %v2195_v31  ;;  %3710 = vmatpush3.bf16.msra.mxu0 %v3944_v56  ;;  %vm6112_vm15 = vmmov %vm6104_vm1  ;;  %v3945_v56 = vld [vmem:[%s5790_s3 + $0xd4] sm:$0xff]  }
0x1408   :  { %2203 = vadd.xlane.f32.xlu1 %v2202_v62  ;;  %3715 = vmatprep.subr.bf16.mxu1 %v3945_v56 }
0x1409   :  { %v2205_v14 = vsel %vm6104_vm1, %v2198_v55, 0.0 }
0x140a   :  { %2206 = vadd.xlane.f32.xlu0 %v2205_v14 }
0x1493   :  { %v2201_v34 = vpop.xlane.xlu0 %2200 }
0x1494   :  { %v2208_v63 = vmul.f32 0.03125, %v2201_v34 }
0x1495   :  { %v2204_v15 = vpop.xlane.xlu1 %2203 }
0x1496   :  { %v2211_v51 = vadd.f32 1e-05, %v2208_v63  ;;  %v2209_v22 = vmul.f32 0.03125, %v2204_v15 }
0x1497   :  { %v2207_v54 = vpop.xlane.xlu0 %2206 }
0x1498   :  { %3993 = vrsqrt.f32 %v2211_v51  ;;  %v2212_v1 = vadd.f32 1e-05, %v2209_v22  ;;  %v2210_v49 = vmul.f32 0.03125, %v2207_v54 }
0x149a   :  { %3995 = vrsqrt.f32 %v2212_v1  ;;  %v2213_v39 = vadd.f32 1e-05, %v2210_v49 }
0x149c   :  { %3997 = vrsqrt.f32 %v2213_v39 }
0x14a2   :  { %v3994_v50 = vpop.eup %3993 }
0x14a3   :  { %v2217_v24 = vmul.f32 %v3994_v50, %v2193_v47  ;;  %v3287_v47 = vld [vmem:[%s5791_s4 + $0x13] ss:$0 sm:$0xff] }
0x14a4   :  { %v3996_v25 = vpop.eup %3995 }
0x14a5   :  { %v2218_v21 = vmul.f32 %v3996_v25, %v2194_v10  ;;  %v2224_v53 = vmul.f32 %v3285_v45, %v2217_v24 }
0x14a6   :  { %v3998_v35 = vpop.eup %3997 }
0x14a7   :  { %v2219_v11 = vmul.f32 %v3998_v35, %v2195_v31  ;;  %v2225_v4 = vmul.f32 %v3285_v45, %v2218_v21  ;;  %v2231_v38 = vadd.f32 %v3286_v6, %v2224_v53 }
0x14a9   :  { %v2232_v3 = vadd.f32 %v3286_v6, %v2225_v4  ;;  %v2226_v13 = vmul.f32 %v3285_v45, %v2219_v11 }
0x14ab   :  { %v2238_v0 = vpack.c.bf16 %v2232_v3, %v2231_v38  ;;  %v2233_v48 = vadd.f32 %v3286_v6, %v2226_v13 }
0x14ad   :  { %3699 = vmatprep.mubr.msk.bf16.mxu1 %vm6105_vm2, %v2238_v0  ;;  %v2239_v52 = vpack.c.bf16 %v2233_v48, %v2233_v48  ;;  %vm6113_vm2 = vmmov %vm6104_vm1 }
0x14af   :  { %3700 = vmatmul.mubr.msk.bf16.vlgmr.msra.gmra.mrb[36].mxu1 %vm6106_vm11, %v2239_v52  ;;  %vm6114_vm11 = vmmov %vm6104_vm1 }
0x14b0   :  { %3716 = vmatpush3.bf16.msra.mxu1 %v3945_v56  ;;  %v3301_v56 = vld [vmem:[%s5791_s4 + $0x17] ss:$0 sm:$0xff] }
0x1582   :  { %v3701_v26 = vpop.f32.mrb[36].mxu1 }
0x1583   :  { %v2306_v29 = vadd.f32 %v3701_v26, %v3287_v47  ;;  %v2297_v10 = vpop.f32.mrb[37].mxu1 }
0x1584   :  { %v2298_v20 = vadd.f32 %v3287_v47, %v2297_v10  ;;  %v3702_v41 = vpop.f32.mrb[38].mxu1 }
0x1585   :  { %v2300_v31 = vpop.f32.mrb[39].mxu1  ;;  %v2313_v36 = vmax.f32 %v2306_v29, 0.0 }
0x1586   :  { %v2301_v17 = vadd.f32 %v3287_v47, %v2300_v31  ;;  %v2311_v62 = vmax.f32 %v2298_v20, 0.0  ;;  %v3946_v47 = vld [vmem:[%s5790_s3 + $0xdc] sm:$0xff]   ;;  %s4063_s3 = smov 4  }
0x1587   :  { %v2323_v16 = vpack.c.bf16 %v2313_v36, %v2313_v36  ;;  %3717 = vmatprep.subr.bf16.mxu1 %v3946_v47 }
0x1588   :  { %v2312_v55 = vmax.f32 %v2301_v17, 0.0  ;;  %3718 = vmatpush3.bf16.msra.mxu1 %v3946_v47 }
0x158a   :  { %v2322_v14 = vpack.c.bf16 %v2312_v55, %v2311_v62 }
0x158c   :  { %3711 = vmatprep.mubr.msk.bf16.mxu0 %vm6107_vm0, %v2322_v14  ;;  %v3299_v14 = vld [vmem:[%s5791_s4 + $0x15] ss:$0 sm:$0xff]  ;;  %vm6115_vm0 = vmmov %vm6104_vm1 }
0x158d   :  { %3712 = vmatmul.mubr.msk.bf16.vlgmr.msra.gmra.mrb[44].mxu0 %vm6108_vm4, %v2323_v16 }
0x1660   :  { %v3713_v28 = vpop.f32.mrb[44].mxu0 }
0x1661   :  { %v2393_v40 = vpop.f32.mrb[45].mxu0  ;;  %v2402_v34 = vadd.f32 %v3713_v28, %v3292_v37 }
0x1662   :  { %v2394_v63 = vadd.f32 %v3292_v37, %v2393_v40  ;;  %v3714_v15 = vpop.f32.mrb[46].mxu0 }
0x1663   :  { %v2396_v51 = vpop.f32.mrb[47].mxu0  ;;  %v2409_v39 = vadd.f32 %v2402_v34, %v2233_v48 }
0x1664   :  { %v2397_v22 = vadd.f32 %v3292_v37, %v2396_v51  ;;  %v2407_v54 = vadd.f32 %v2394_v63, %v2231_v38  ;;  %v3300_v63 = vld [vmem:[%s5791_s4 + $0x16] ss:$0 sm:$0xff] }
0x1665   :  { %v2418_v45 = vsel %vm6111_vm10, %v2409_v39, 0.0 }
0x1666   :  { %v2412_v1 = vsel %vm6109_vm14, %v2407_v54, 0.0  ;;  %v2408_v49 = vadd.f32 %v2397_v22, %v2232_v3  ;;  %vm2612_vm14 = vcmask 195584  }
0x1667   :  { %2413 = vadd.xlane.f32.xlu1 %v2412_v1 }
0x1668   :  { %v2415_v50 = vsel %vm6110_vm5, %v2408_v49, 0.0 }
0x1669   :  { %2416 = vadd.xlane.f32.xlu0 %v2415_v50 }
0x166b   :  { %2419 = vadd.xlane.f32.xlu1 %v2418_v45  ;;  %v6116_v45 = vld [vmem:[#allocation11_spill] sm:$0xff] }
0x16f4   :  { %v2414_v24 = vpop.xlane.xlu1 %2413 }
0x16f5   :  { %v2421_v25 = vmul.f32 0.03125, %v2414_v24  ;;  %v5296_v24 = vmul.f32 0.125, %v6116_v45 }
0x16f6   :  { %v2417_v21 = vpop.xlane.xlu0 %2416 }
0x16f7   :  { %v2424_v53 = vsub.f32 %v2407_v54, %v2421_v25  ;;  %v2422_v35 = vmul.f32 0.03125, %v2417_v21  ;;  %v2564_v25 = vfloor.f32 %v5296_v24  ;;  %v6117_v21 = vld [vmem:[#allocation35_spill] sm:$0xff] }
0x16f8   :  { %v2420_v6 = vpop.xlane.xlu1 %2419 }
0x16f9   :  { %v2425_v11 = vsub.f32 %v2408_v49, %v2422_v35  ;;  %v2423_v4 = vmul.f32 0.03125, %v2420_v6  ;;  %v2427_v38 = vmul.f32 %v2424_v53, %v2424_v53  ;;  %vm2576_vm4 = vcmp.eq.f32.partialorder %v2564_v25, %v6117_v21  ;;  %v2798_v35 = vld [vmem:[%s5789_s2] sm:$0xff]  ;;  %v2799_v6 = vld [vmem:[%s5789_s2 + $0x8] sm:$0xff] }
0x16fa   :  { %vm2588_vm5 = vmand %vm2576_vm4, %vm4398_vm12 }
0x16fb   :  { %v2426_v13 = vsub.f32 %v2409_v39, %v2423_v4  ;;  %v2430_v3 = vsel %vm6112_vm15, %v2427_v38, 0.0  ;;  %v2428_v0 = vmul.f32 %v2425_v11, %v2425_v11  ;;  %v2801_v4 = vld [vmem:[%s5789_s2 + $0x18] sm:$0xff]  ;;  %v2804_v38 = vld [vmem:[%s5789_s2 + $0x30] sm:$0xff] }
0x16fc   :  { %2431 = vadd.xlane.f32.xlu0 %v2430_v3  ;;  %v2806_v3 = vld [vmem:[%s5789_s2 + $0x40] sm:$0xff] }
0x16fd   :  { %v2433_v48 = vsel %vm6104_vm1, %v2428_v0, 0.0  ;;  %v2429_v52 = vmul.f32 %v2426_v13, %v2426_v13  ;;  %v2805_v0 = vld [vmem:[%s5789_s2 + $0x38] sm:$0xff] }
0x16fe   :  { %2434 = vadd.xlane.f32.xlu1 %v2433_v48  ;;  %v2808_v48 = vld [vmem:[%s5789_s2 + $0x50] sm:$0xff] }
0x16ff   :  { %v2436_v42 = vsel %vm6113_vm2, %v2429_v52, 0.0  ;;  %v2807_v52 = vld [vmem:[%s5789_s2 + $0x48] sm:$0xff] }
0x1700   :  { %2437 = vadd.xlane.f32.xlu0 %v2436_v42  ;;  %v2809_v42 = vld [vmem:[%s5789_s2 + $0x58] sm:$0xff] }
0x170f   :  { %2822 = vrot.lane.b32.xlu1 %v2798_v35, %s4061_s28  ;;  %v6125_v35 = vld [vmem:[#allocation15_spill] sm:$0xff] }
0x1713   :  { %2826 = vrot.lane.b32.xlu1 %v2800_v5, %s4061_s28 }
0x1716   :  { %2824 = vrot.lane.b32.xlu0 %v2799_v6, %s4061_s28  ;;  %v5373_v6 = vmul.f32 0.125, %v6125_v35 }
0x1717   :  { %2828 = vrot.lane.b32.xlu1 %v2801_v4, %s4061_s28 }
0x1718   :  { %v2569_v61 = vfloor.f32 %v5373_v6 }
0x171a   :  { %vm5431_vm4 = vcmp.eq.f32.partialorder %v2569_v61, %v6117_v21 }
0x1789   :  { %v2432_v26 = vpop.xlane.xlu0 %2431 }
0x178a   :  { %v2439_v29 = vmul.f32 0.03125, %v2432_v26 }
0x178b   :  { %v2435_v10 = vpop.xlane.xlu1 %2434 }
0x178c   :  { %v2442_v20 = vadd.f32 1e-05, %v2439_v29  ;;  %v2440_v41 = vmul.f32 0.03125, %v2435_v10  ;;  %v6118_v29 = vld [vmem:[#allocation16_spill] sm:$0xff] }
0x178d   :  { %v2438_v31 = vpop.xlane.xlu0 %2437  ;;  %v5346_v10 = vmul.f32 0.125, %v6118_v29 }
0x178e   :  { %3999 = vrsqrt.f32 %v2442_v20  ;;  %v2443_v17 = vadd.f32 1e-05, %v2440_v41  ;;  %v2441_v36 = vmul.f32 0.03125, %v2438_v31 }
0x1790   :  { %4001 = vrsqrt.f32 %v2443_v17  ;;  %v2444_v62 = vadd.f32 1e-05, %v2441_v36  ;;  %v6119_v36 = vld [vmem:[#allocation22_spill] sm:$0xff] }
0x1792   :  { %4003 = vrsqrt.f32 %v2444_v62  ;;  %v5349_v62 = vmul.f32 0.125, %v6119_v36  ;;  %v5471_v36 = vmul.f32 0.125, %v4722_v27 }
0x1794   :  { %v2575_v27 = vfloor.f32 %v5471_v36 }
0x1798   :  { %v4000_v55 = vpop.eup %3999 }
0x1799   :  { %v2448_v16 = vmul.f32 %v4000_v55, %v2424_v53  ;;  %v2600_v53 = vsel %vm2588_vm5, 1.0, %v6028_v30 }
0x179a   :  { %v4002_v37 = vpop.eup %4001 }
0x179b   :  { %v2449_v28 = vmul.f32 %v4002_v37, %v2425_v11  ;;  %v2455_v40 = vmul.f32 %v3299_v14, %v2448_v16  ;;  %v2802_v11 = vld [vmem:[%s5789_s2 + $0x20] sm:$0xff]  ;;  %v2565_v16 = vfloor.f32 %v5346_v10  ;;  %v6120_v37 = vld [vmem:[#allocation28_spill] sm:$0xff] }
0x179c   :  { %v4004_v34 = vpop.eup %4003  ;;  %2830 = vrot.lane.b32.xlu0 %v2802_v11, %s4061_s28 }
0x179d   :  { %v2450_v15 = vmul.f32 %v4004_v34, %v2426_v13  ;;  %v2456_v51 = vmul.f32 %v3299_v14, %v2449_v28  ;;  %v2462_v22 = vadd.f32 %v3300_v63, %v2455_v40  ;;  %v2803_v13 = vld [vmem:[%s5789_s2 + $0x28] sm:$0xff]  ;;  %v5353_v28 = vmul.f32 0.125, %v6120_v37 }
0x179e   :  { %2832 = vrot.lane.b32.xlu1 %v2803_v13, %s4061_s28  ;;  %vm5363_vm10 = vcmp.eq.f32.partialorder %v2565_v16, %v6117_v21 }
0x179f   :  { %v2463_v54 = vadd.f32 %v3300_v63, %v2456_v51  ;;  %v2457_v1 = vmul.f32 %v3299_v14, %v2450_v15  ;;  %v6121_v15 = vld [vmem:[#allocation6_spill] sm:$0xff]  ;;  %v2566_v51 = vfloor.f32 %v5349_v62  ;;  %vm2589_vm1 = vmand %vm5363_vm10, %vm4403_vm13 }
0x17a0   :  { %2834 = vrot.lane.b32.xlu0 %v2804_v38, %s4061_s28  ;;  %vm2542_vm12 = vcmp.ge.s32.totalorder %v6121_v15, 2  ;;  %v6128_v38 = vld [vmem:[#allocation17_spill] sm:$0xff]  ;;  %v2823_v15 = vpop.permute.xlu1 %2822 }
0x17a1   :  { %v2469_v49 = vpack.c.bf16 %v2463_v54, %v2462_v22  ;;  %v2464_v39 = vadd.f32 %v3300_v63, %v2457_v1  ;;  %v6122_v22 = vld [vmem:[#allocation14_spill] sm:$0xff]  ;;  %vm5378_vm15 = vcmp.eq.f32.partialorder %v2566_v51, %v6117_v21  ;;  %v5384_v13 = vmul.f32 0.125, %v6128_v38 }
0x17a2   :  { %2836 = vrot.lane.b32.xlu1 %v2805_v0, %s4061_s28  ;;  %v5358_v54 = vmul.f32 0.125, %v6122_v22  ;;  %vm2590_vm2 = vmand %vm5378_vm15, %vm4459_vm8  ;;  %vm6141_vm15 = vnez %v6016_v33  ;;  %v3008_v10 = vmul.f32 8.0, %v2566_v51 }
0x17a3   :  { %3719 = vmatprep.mubr.msk.bf16.mxu1 %vm6114_vm11, %v2469_v49  ;;  %v2470_v50 = vpack.c.bf16 %v2464_v39, %v2464_v39  ;;  %v2567_v39 = vfloor.f32 %v5353_v28 }
0x17a4   :  { %2838 = vrot.lane.b32.xlu0 %v2806_v3, %s4061_s28  ;;  %v2568_v4 = vfloor.f32 %v5358_v54 }
0x17a5   :  { %3720 = vmatmul.mubr.msk.bf16.vlgmr.msra.gmra.mrb[40].mxu1 %vm6115_vm0, %v2470_v50  ;;  %vm5399_vm11 = vcmp.eq.f32.partialorder %v2567_v39, %v6117_v21 }
0x17a6   :  { %3729 = vmatprep.mubr.msk.f32.mxu1 %vm2612_vm14, %v2600_v53  ;;  %2840 = vrot.lane.b32.xlu1 %v2807_v52, %s4061_s28  ;;  %vm5410_vm13 = vcmp.eq.f32.partialorder %v2568_v4, %v6117_v21  ;;  %vm2591_vm8 = vmand %vm5399_vm11, %vm4464_vm9 }
0x17a7   :  { %vm2592_vm0 = vmand %vm5410_vm13, %vm4498_vm6  ;;  %vm6142_vm13 = vnez %v6018_v57 }
0x17a8   :  { %2842 = vrot.lane.b32.xlu0 %v2808_v48, %s4061_s28  ;;  %v6131_v48 = vld [vmem:[#allocation18_spill] sm:$0xff]  ;;  %v2604_v44 = vsel %vm2592_vm0, 1.0, %v6028_v30  ;;  %vm2593_vm6 = vmand %vm5431_vm4, %vm4503_vm7  ;;  %vm6143_vm0 = vnez %v6022_v2 }
0x17a9   :  { %v5405_v52 = vmul.f32 0.125, %v6131_v48  ;;  %v2605_v59 = vsel %vm2593_vm6, 1.0, %v6028_v30  ;;  %vm6144_vm6 = vnez %v6024_v7 }
0x17aa   :  { %2844 = vrot.lane.b32.xlu1 %v2809_v42, %s4061_s28  ;;  %v2570_v42 = vfloor.f32 %v5384_v13 }
0x17ab   :  { %v2571_v29 = vfloor.f32 %v5405_v52 }
0x17ac   :  { %vm5443_vm9 = vcmp.eq.f32.partialorder %v2570_v42, %v6117_v21 }
0x17ad   :  { %vm2594_vm5 = vmand %vm5443_vm9, %vm4529_vm3  ;;  %vm6140_vm3 = vnez %v5963_v8  ;;  %vm2587_vm9 = vcmp.eq.f32.partialorder %v2575_v27, %v6117_v21 }
0x1878   :  { %v3721_v47 = vpop.f32.mrb[40].mxu1 }
0x1879   :  { %v2528_v26 = vpop.f32.mrb[41].mxu1  ;;  %v2537_v20 = vadd.f32 %v3721_v47, %v3301_v56  ;;  %v2601_v47 = vsel %vm2589_vm1, 1.0, %v6028_v30 }
0x187a   :  { %v2529_v41 = vadd.f32 %v3301_v56, %v2528_v26  ;;  %v3722_v31 = vpop.f32.mrb[42].mxu1  ;;  %v2602_v26 = vsel %vm2590_vm2, 1.0, %v6028_v30 }
0x187b   :  { %v2531_v17 = vpop.f32.mrb[43].mxu1  ;;  %v2545_v40 = vmax.f32 %v2537_v20, -9.0  ;;  %v2603_v31 = vsel %vm2591_vm8, 1.0, %v6028_v30 }
0x187c   :  { %v2543_v55 = vmax.f32 %v2529_v41, -9.0  ;;  %v2532_v14 = vadd.f32 %v3301_v56, %v2531_v17  ;;  %v5416_v56 = vmul.f32 0.125, %v4727_v18  ;;  %v2573_v17 = vfloor.f32 %v5437_v12 }
0x187d   :  { %v2548_v50 = vmin.f32 %v2545_v40, 4.0 }
0x187e   :  { %v2546_v34 = vmin.f32 %v2543_v55, 4.0  ;;  %v2544_v63 = vmax.f32 %v2532_v14, -9.0  ;;  %v2606_v55 = vsel %vm2594_vm5, 1.0, %v6028_v30  ;;  %vm2585_vm2 = vcmp.eq.f32.partialorder %v2573_v17, %v6117_v21  ;;  %vm2599_vm5 = vmand %vm2587_vm9, %vm6144_vm6 }
0x187f   :  { %v2551_v3 = vsel %vm2542_vm12, %v2548_v50, %v2537_v20  ;;  %v2572_v20 = vfloor.f32 %v5416_v56  ;;  %vm2597_vm8 = vmand %vm2585_vm2, %vm6142_vm13  ;;  %v2611_v57 = vsel %vm2599_vm5, 1.0, %v6028_v30  ;;  %v2825_v50 = vpop.permute.xlu0 %2824 }
0x1880   :  { %v2547_v1 = vmin.f32 %v2544_v63, 4.0  ;;  %v2549_v45 = vsel %vm2542_vm12, %v2546_v34, %v2529_v41  ;;  %v5449_v41 = vmul.f32 0.125, %v4719_v9  ;;  %v2609_v33 = vsel %vm2597_vm8, 1.0, %v6028_v30 }
0x1881   :  { %vm2584_vm7 = vcmp.eq.f32.partialorder %v2572_v20, %v6117_v21 }
0x1882   :  { %v2550_v53 = vsel %vm2542_vm12, %v2547_v1, %v2532_v14  ;;  %vm5465_vm12 = vcmp.eq.f32.partialorder %v2571_v29, %v6117_v21  ;;  %v2574_v60 = vfloor.f32 %v5449_v41  ;;  %vm2596_vm1 = vmand %vm2584_vm7, %vm6141_vm15 }
0x1883   :  { %v3793_v5 = vpack.c.bf16 %v2550_v53, %v2549_v45  ;;  %vm2595_vm10 = vmand %vm5465_vm12, %vm6140_vm3  ;;  %v2608_v14 = vsel %vm2596_vm1, 1.0, %v6028_v30  ;;  %vm2930_vm12 = vcmask 31744   ;;  %v2827_v53 = vpop.permute.xlu1 %2826 }
0x1884   :  { %vm2586_vm11 = vcmp.eq.f32.partialorder %v2574_v60, %v6117_v21  ;;  %v2607_v8 = vsel %vm2595_vm10, 1.0, %v6028_v30 }
0x1885   :  { %3794 = vmatprep.subr.bf16.mxu1 %v3793_v5  ;;  %vm2598_vm4 = vmand %vm2586_vm11, %vm6143_vm0  ;;  %vm2991_vm11 = vcmask 48160  }
0x1886   :  { %3796 = vmatpush3.bf16.msra.mxu1 %v3793_v5  ;;  %v2610_v37 = vsel %vm2598_vm4, 1.0, %v6028_v30 }
0x1887   :  { %3727 = vmatprep.subr.mxu1 %v2551_v3 }
0x188a   :  { %3728 = vmatpush3.msra.mxu1 %v2551_v3 }
0x188b   :  { %3730 = vmatmul.mubr.msk.f32.vlgmr.msra.gmra.mrb[44].mxu1 %vm2612_vm14, %v2601_v47 }
0x188c   :  { %3732 = vmatprep.mubr.msk.f32.mxu1 %vm2612_vm14, %v2602_v26  ;;  %v2829_v26 = vpop.permute.xlu1 %2828 }
0x188f   :  { %3733 = vmatmul.mubr.msk.f32.gmra.mrb[46].mxu1 %vm2612_vm14, %v2603_v31 }
0x1890   :  { %3735 = vmatprep.mubr.msk.f32.mxu1 %vm2612_vm14, %v2604_v44 }
0x1893   :  { %3736 = vmatmul.mubr.msk.f32.gmra.mrb[48].mxu1 %vm2612_vm14, %v2605_v59 }
0x1894   :  { %3738 = vmatprep.mubr.msk.f32.mxu1 %vm2612_vm14, %v2606_v55 }
0x1897   :  { %3739 = vmatmul.mubr.msk.f32.gmra.mrb[50].mxu1 %vm2612_vm14, %v2607_v8 }
0x1898   :  { %3741 = vmatprep.mubr.msk.f32.mxu1 %vm2612_vm14, %v2608_v14 }
0x189b   :  { %3742 = vmatmul.mubr.msk.f32.gmra.mrb[52].mxu1 %vm2612_vm14, %v2609_v33 }
0x189c   :  { %3744 = vmatprep.mubr.msk.f32.mxu1 %vm2612_vm14, %v2610_v37 }
0x189f   :  { %3745 = vmatmul.mubr.msk.f32.gmra.mrb[54].mxu1 %vm2612_vm14, %v2611_v57  ;;  %vm6145_vm14 = vcmask 15360  }
0x18a0   :  { %vm6146_vm7 = vmmov %vm6145_vm14 }
0x18a1   :  { %vm6147_vm3 = vmmov %vm6146_vm7 }
0x18a2   :  { %vm6148_vm10 = vmmov %vm6147_vm3 }
0x18a3   :  { %vm6149_vm15 = vmmov %vm6147_vm3 }
0x18a4   :  { %vm6150_vm1 = vmmov %vm6147_vm3 }
0x18a5   :  { %vm6151_vm2 = vmmov %vm6150_vm1 }
0x18a6   :  { %vm6152_vm13 = vmmov %vm6150_vm1 }
0x18a7   :  { %vm6153_vm8 = vmmov %vm6150_vm1 }
0x18a8   :  { %vm6156_vm9 = vmmov %vm6150_vm1 }
0x18a9   :  { %vm6159_vm6 = vmmov %vm6150_vm1 }
0x195e   :  { %v5515_v2 = vpop.f32.mrb[44].mxu1 }
0x195f   :  { %v2776_v21 = vmul.f32 1.442695, %v5515_v2  ;;  %2932 = vst.msk [vmem:[%s5793_s6 + $0x8] sm:$0xff] %vm2930_vm12, %v5515_v2  ;;  %v5523_v7 = vpop.f32.mrb[45].mxu1 }
0x1960   :  { %v2774_v40 = vmul.f32 1.442695, %v5523_v7  ;;  %2931 = vst.msk [vmem:[%s5793_s6] sm:$0xff] %vm2930_vm12, %v5523_v7 }
0x1961   :  { %4005 = vpow2.f32 %v2776_v21 }
0x1962   :  { %4007 = vpow2.f32 %v2774_v40  ;;  %v5531_v30 = vpop.f32.mrb[46].mxu1  ;;  %v2833_v40 = vpop.permute.xlu1 %2832 }
0x1963   :  { %v2780_v34 = vmul.f32 1.442695, %v5531_v30  ;;  %2934 = vst.msk [vmem:[%s5793_s6 + $0x18] sm:$0xff] %vm2930_vm12, %v5531_v30  ;;  %v5539_v63 = vpop.f32.mrb[47].mxu1 }
0x1964   :  { %v2778_v22 = vmul.f32 1.442695, %v5539_v63  ;;  %2933 = vst.msk [vmem:[%s5793_s6 + $0x10] sm:$0xff] %vm2930_vm12, %v5539_v63 }
0x1965   :  { %4009 = vpow2.f32 %v2780_v34 }
0x1966   :  { %4011 = vpow2.f32 %v2778_v22  ;;  %v5547_v1 = vpop.f32.mrb[48].mxu1 }
0x1967   :  { %2936 = vst.msk [vmem:[%s5793_s6 + $0x28] sm:$0xff] %vm2930_vm12, %v5547_v1  ;;  %v5554_v49 = vpop.f32.mrb[49].mxu1  ;;  %v2784_v45 = vmul.f32 1.442695, %v5547_v1 }
0x1968   :  { %2935 = vst.msk [vmem:[%s5793_s6 + $0x20] sm:$0xff] %vm2930_vm12, %v5554_v49  ;;  %v2782_v35 = vmul.f32 1.442695, %v5554_v49 }
0x1969   :  { %4013 = vpow2.f32 %v2784_v45 }
0x196a   :  { %v5563_v5 = vpop.f32.mrb[50].mxu1  ;;  %4015 = vpow2.f32 %v2782_v35 }
0x196b   :  { %v4006_v11 = vpop.eup %4005  ;;  %2938 = vst.msk [vmem:[%s5793_s6 + $0x38] sm:$0xff] %vm2930_vm12, %v5563_v5  ;;  %v5570_v38 = vpop.f32.mrb[51].mxu1  ;;  %v2788_v9 = vmul.f32 1.442695, %v5563_v5 }
0x196c   :  { %v4008_v3 = vpop.eup %4007  ;;  %v2859_v0 = vmul.f32 %v4006_v11, %v2825_v50  ;;  %2937 = vst.msk [vmem:[%s5793_s6 + $0x30] sm:$0xff] %vm2930_vm12, %v5570_v38  ;;  %v2786_v55 = vmul.f32 1.442695, %v5570_v38 }
0x196d   :  { %v2858_v48 = vmul.f32 %v4008_v3, %v2823_v15  ;;  %4017 = vpow2.f32 %v2788_v9  ;;  %v2831_v15 = vpop.permute.xlu0 %2830 }
0x196e   :  { %2884 = vrot.lane.b32.xlu1 %v2859_v0, %s4062_s20  ;;  %v5578_v46 = vpop.f32.mrb[52].mxu1  ;;  %v3044_v31 = vmul.f32 %v2859_v0, %v2859_v0  ;;  %4019 = vpow2.f32 %v2786_v55  ;;  %v2837_v0 = vpop.permute.xlu1 %2836 }
0x196f   :  { %v4010_v47 = vpop.eup %4009  ;;  %2882 = vrot.lane.b32.xlu0 %v2858_v48, %s4062_s20  ;;  %2940 = vst.msk [vmem:[%s5793_s6 + $0x48] sm:$0xff] %vm2930_vm12, %v5578_v46  ;;  %v5586_v18 = vpop.f32.mrb[53].mxu1  ;;  %v3043_v44 = vmul.f32 %v2858_v48, %v2858_v48  ;;  %v2792_v22 = vmul.f32 1.442695, %v5578_v46 }
0x1970   :  { %v4012_v58 = vpop.eup %4011  ;;  %2939 = vst.msk [vmem:[%s5793_s6 + $0x40] sm:$0xff] %vm2930_vm12, %v5586_v18  ;;  %v2861_v59 = vmul.f32 %v4010_v47, %v2829_v26  ;;  %v2790_v45 = vmul.f32 1.442695, %v5586_v18 }
0x1971   :  { %v2860_v14 = vmul.f32 %v4012_v58, %v2827_v53  ;;  %4021 = vpow2.f32 %v2792_v22  ;;  %v2835_v47 = vpop.permute.xlu0 %2834 }
0x1972   :  { %3069 = vrot.lane.b32.xlu1 %v3044_v31, %s4062_s20  ;;  %v5596_v8 = vpop.f32.mrb[54].mxu1  ;;  %v3046_v37 = vmul.f32 %v2861_v59, %v2861_v59  ;;  %4023 = vpow2.f32 %v2790_v45 }
0x1973   :  { %3067 = vrot.lane.b32.xlu0 %v3043_v44, %s4062_s20  ;;  %2942 = vst.msk [vmem:[%s5793_s6 + $0x58] sm:$0xff] %vm2930_vm12, %v5596_v8  ;;  %v5604_v33 = vpop.f32.mrb[55].mxu1  ;;  %v4014_v57 = vpop.eup %4013  ;;  %v3045_v21 = vmul.f32 %v2860_v14, %v2860_v14  ;;  %v2796_v26 = vmul.f32 1.442695, %v5596_v8 }
0x1974   :  { %2941 = vst.msk [vmem:[%s5793_s6 + $0x50] sm:$0xff] %vm2930_vm12, %v5604_v33  ;;  %v4016_v34 = vpop.eup %4015  ;;  %v2863_v50 = vmul.f32 %v4014_v57, %v2833_v40  ;;  %v2794_v31 = vmul.f32 1.442695, %v5604_v33 }
0x1975   :  { %v2862_v53 = vmul.f32 %v4016_v34, %v2831_v15  ;;  %4025 = vpow2.f32 %v2796_v26  ;;  %v2839_v57 = vpop.permute.xlu0 %2838 }
0x1976   :  { %2888 = vrot.lane.b32.xlu1 %v2861_v59, %s4062_s20  ;;  %v3048_v35 = vmul.f32 %v2863_v50, %v2863_v50  ;;  %4027 = vpow2.f32 %v2794_v31 }
0x1977   :  { %2886 = vrot.lane.b32.xlu0 %v2860_v14, %s4062_s20  ;;  %v4018_v11 = vpop.eup %4017  ;;  %v3047_v3 = vmul.f32 %v2862_v53, %v2862_v53  ;;  %v2841_v14 = vpop.permute.xlu1 %2840 }
0x1978   :  { %v4020_v48 = vpop.eup %4019  ;;  %v2865_v58 = vmul.f32 %v4018_v11, %v2837_v0 }
0x1979   :  { %v2864_v44 = vmul.f32 %v4020_v48, %v2835_v47 }
0x197a   :  { %3073 = vrot.lane.b32.xlu1 %v3046_v37, %s4062_s20  ;;  %v3050_v9 = vmul.f32 %v2865_v58, %v2865_v58 }
0x197b   :  { %3071 = vrot.lane.b32.xlu0 %v3045_v21, %s4062_s20  ;;  %v4022_v59 = vpop.eup %4021  ;;  %v3049_v55 = vmul.f32 %v2864_v44, %v2864_v44 }
0x197c   :  { %v4024_v37 = vpop.eup %4023  ;;  %v2867_v21 = vmul.f32 %v4022_v59, %v2841_v14 }
0x197d   :  { %v2866_v40 = vmul.f32 %v4024_v37, %v2839_v57 }
0x197e   :  { %2892 = vrot.lane.b32.xlu1 %v2863_v50, %s4062_s20  ;;  %v3052_v34 = vmul.f32 %v2867_v21, %v2867_v21  ;;  %v2845_v50 = vpop.permute.xlu1 %2844 }
0x197f   :  { %2890 = vrot.lane.b32.xlu0 %v2862_v53, %s4062_s20  ;;  %v4026_v15 = vpop.eup %4025  ;;  %v3051_v22 = vmul.f32 %v2866_v40, %v2866_v40  ;;  %v2843_v53 = vpop.permute.xlu0 %2842 }
0x1980   :  { %v4028_v45 = vpop.eup %4027 }
0x1981   :  { %v2868_v11 = vmul.f32 %v4028_v45, %v2843_v53 }
0x1982   :  { %3077 = vrot.lane.b32.xlu1 %v3048_v35, %s4062_s20  ;;  %v2869_v35 = vmul.f32 %v4026_v15, %v2845_v50 }
0x1983   :  { %3075 = vrot.lane.b32.xlu0 %v3047_v3, %s4062_s20  ;;  %v3053_v0 = vmul.f32 %v2868_v11, %v2868_v11 }
0x1984   :  { %v3054_v3 = vmul.f32 %v2869_v35, %v2869_v35 }
0x1986   :  { %2896 = vrot.lane.b32.xlu1 %v2865_v58, %s4062_s20 }
0x1987   :  { %2894 = vrot.lane.b32.xlu0 %v2864_v44, %s4062_s20 }
0x198a   :  { %3081 = vrot.lane.b32.xlu1 %v3050_v9, %s4062_s20 }
0x198b   :  { %3079 = vrot.lane.b32.xlu0 %v3049_v55, %s4062_s20 }
0x198e   :  { %2900 = vrot.lane.b32.xlu1 %v2867_v21, %s4062_s20 }
0x198f   :  { %2898 = vrot.lane.b32.xlu0 %v2866_v40, %s4062_s20 }
0x1992   :  { %3085 = vrot.lane.b32.xlu1 %v3052_v34, %s4062_s20 }
0x1993   :  { %3083 = vrot.lane.b32.xlu0 %v3051_v22, %s4062_s20 }
0x1996   :  { %2904 = vrot.lane.b32.xlu1 %v2869_v35, %s4062_s20 }
0x1997   :  { %2902 = vrot.lane.b32.xlu0 %v2868_v11, %s4062_s20 }
0x199a   :  { %3089 = vrot.lane.b32.xlu1 %v3054_v3, %s4062_s20 }
0x199b   :  { %3087 = vrot.lane.b32.xlu0 %v3053_v0, %s4062_s20 }
0x19e0   :  { %v2885_v48 = vpop.permute.xlu1 %2884 }
0x19e1   :  { %v2919_v47 = vadd.f32 %v5515_v2, %v2885_v48  ;;  %v2883_v26 = vpop.permute.xlu0 %2882 }
0x19e2   :  { %v2918_v37 = vadd.f32 %v2883_v26, %v5523_v7 }
0x19e3   :  { %2957 = vrot.lane.b32.xlu0 %v2919_v47, %s4063_s3 }
0x19e4   :  { %v3070_v58 = vpop.permute.xlu1 %3069 }
0x19e5   :  { %v3106_v31 = vsel %vm6145_vm14, %v3070_v58, 0.0  ;;  %v3068_v44 = vpop.permute.xlu0 %3067  ;;  %vm6160_vm14 = vmmov %vm6150_vm1 }
0x19e6   :  { %3107 = vadd.xlane.f32.xlu1 %v3106_v31  ;;  %v3103_v50 = vsel %vm6146_vm7, %v3068_v44, 0.0 }
0x19e8   :  { %v2889_v14 = vpop.permute.xlu1 %2888 }
0x19e9   :  { %v2887_v9 = vpop.permute.xlu0 %2886  ;;  %v2921_v2 = vadd.f32 %v5531_v30, %v2889_v14 }
0x19ea   :  { %v2920_v34 = vadd.f32 %v2887_v9, %v5539_v63 }
0x19ec   :  { %v3074_v21 = vpop.permute.xlu1 %3073 }
0x19ed   :  { %v3072_v59 = vpop.permute.xlu0 %3071  ;;  %v3112_v30 = vsel %vm6147_vm3, %v3074_v21, 0.0 }
0x19ee   :  { %v3109_v63 = vsel %vm6148_vm10, %v3072_v59, 0.0 }
0x19f0   :  { %v2893_v22 = vpop.permute.xlu1 %2892 }
0x19f1   :  { %v2891_v55 = vpop.permute.xlu0 %2890  ;;  %v2923_v45 = vadd.f32 %v5547_v1, %v2893_v22  ;;  %v6154_v22 = vld [vmem:[#allocation10_spill] sm:$0xff] }
0x19f4   :  { %v3078_v0 = vpop.permute.xlu1 %3077 }
0x19f5   :  { %v3076_v57 = vpop.permute.xlu0 %3075  ;;  %v3118_v1 = vsel %vm6149_vm15, %v3078_v0, 0.0 }
0x19f6   :  { %v3115_v48 = vsel %vm6150_vm1, %v3076_v57, 0.0 }
0x19f7   :  { %2955 = vrot.lane.b32.xlu1 %v2918_v37, %s4063_s3 }
0x19f8   :  { %v2897_v47 = vpop.permute.xlu1 %2896 }
0x19f9   :  { %v2895_v40 = vpop.permute.xlu0 %2894  ;;  %v2925_v26 = vadd.f32 %v5563_v5, %v2897_v47 }
0x19fb   :  { %2961 = vrot.lane.b32.xlu1 %v2921_v2, %s4063_s3 }
0x19fc   :  { %v3082_v58 = vpop.permute.xlu1 %3081 }
0x19fd   :  { %v3080_v15 = vpop.permute.xlu0 %3079 }
0x19fe   :  { %v3121_v5 = vsel %vm6152_vm13, %v3080_v15, 0.0  ;;  %v3006_v15 = vmul.f32 8.0, %v2564_v25  ;;  %v3009_v25 = vmul.f32 8.0, %v2567_v39 }
0x19ff   :  { %2959 = vrot.lane.b32.xlu1 %v2920_v34, %s4063_s3  ;;  %v3007_v34 = vmul.f32 8.0, %v2565_v16 }
0x1a00   :  { %v2901_v9 = vpop.permute.xlu1 %2900 }
0x1a01   :  { %v2899_v7 = vpop.permute.xlu0 %2898 }
0x1a02   :  { %v2926_v53 = vadd.f32 %v2899_v7, %v5586_v18  ;;  %3104 = vadd.xlane.f32.xlu0 %v3103_v50  ;;  %v2922_v18 = vadd.f32 %v2891_v55, %v5554_v49  ;;  %v2924_v49 = vadd.f32 %v2895_v40, %v5570_v38  ;;  %v2927_v55 = vadd.f32 %v5578_v46, %v2901_v9  ;;  %v6161_v9 = vld [vmem:[#allocation8_spill] sm:$0xff] }
0x1a03   :  { %2965 = vrot.lane.b32.xlu1 %v2923_v45, %s4063_s3  ;;  %v3019_v50 = vsub.f32 %v6154_v22, %v3007_v34  ;;  %v6155_v45 = vld [vmem:[#allocation7_spill] sm:$0xff]  ;;  %v6164_v34 = vld [vmem:[#allocation13_spill] sm:$0xff] }
0x1a04   :  { %v3086_v59 = vpop.permute.xlu1 %3085  ;;  %v3018_v7 = vsub.f32 %v6155_v45, %v3006_v15 }
0x1a05   :  { %v3084_v35 = vpop.permute.xlu0 %3083  ;;  %v3130_v21 = vsel %vm6153_vm8, %v3086_v59, 0.0 }
0x1a06   :  { %3113 = vadd.xlane.f32.xlu0 %v3112_v30  ;;  %v5695_v30 = vstv %s3005_s9  ;;  %v3127_v16 = vsel %vm6156_vm9, %v3084_v35, 0.0 }
0x1a07   :  { %vm3032_vm0 = vcmp.eq.f32.partialorder %v3019_v50, %v5695_v30  ;;  %vm3031_vm4 = vcmp.eq.f32.partialorder %v3018_v7, %v5695_v30 }
0x1a08   :  { %v2905_v14 = vpop.permute.xlu1 %2904 }
0x1a09   :  { %v2903_v11 = vpop.permute.xlu0 %2902 }
0x1a0a   :  { %v5651_v3 = vadd.f32 %v2903_v11, %v5604_v33  ;;  %3110 = vadd.xlane.f32.xlu0 %v3109_v63  ;;  %v3124_v33 = vsel %vm6151_vm2, %v3082_v58, 0.0 }
0x1a0c   :  { %v3090_v37 = vpop.permute.xlu1 %3089 }
0x1a0d   :  { %v3088_v31 = vpop.permute.xlu0 %3087 }
0x1a0e   :  { %3119 = vadd.xlane.f32.xlu0 %v3118_v1  ;;  %v6157_v1 = vld [vmem:[#allocation19_spill] sm:$0xff]  ;;  %v3133_v62 = vsel %vm6159_vm6, %v3088_v31, 0.0  ;;  %v3010_v31 = vmul.f32 8.0, %v2568_v4 }
0x1a10   :  { %v3022_v59 = vsub.f32 %v6161_v9, %v3010_v31 }
0x1a12   :  { %vm3035_vm7 = vcmp.eq.f32.partialorder %v3022_v59, %v5695_v30 }
0x1a24   :  { %2963 = vrot.lane.b32.xlu0 %v2922_v18, %s4063_s3  ;;  %v3020_v18 = vsub.f32 %v6157_v1, %v3008_v10  ;;  %v3017_v1 = vmul.f32 8.0, %v2575_v27 }
0x1a26   :  { %vm3033_vm5 = vcmp.eq.f32.partialorder %v3020_v18, %v5695_v30 }
0x1a27   :  { %3116 = vadd.xlane.f32.xlu1 %v3115_v48  ;;  %v6158_v48 = vld [vmem:[#allocation20_spill] sm:$0xff] }
0x1a28   :  { %v3021_v47 = vsub.f32 %v6158_v48, %v3009_v25 }
0x1a2a   :  { %vm3034_vm12 = vcmp.eq.f32.partialorder %v3021_v47, %v5695_v30 }
0x1a38   :  { %2969 = vrot.lane.b32.xlu1 %v2925_v26, %s4063_s3 }
0x1a43   :  { %3125 = vadd.xlane.f32.xlu0 %v3124_v33 }
0x1a55   :  { %v2958_v44 = vpop.permute.xlu0 %2957 }
0x1a56   :  { %2993 = vst.msk [vmem:[%s5793_s6 + $0x8] sm:$0xff] %vm2991_vm11, %v2958_v44  ;;  %v2929_v44 = vadd.f32 %v5596_v8, %v2905_v14 }
0x1a59   :  { %2967 = vrot.lane.b32.xlu0 %v2924_v49, %s4063_s3  ;;  %v3136_v49 = vsel %vm6160_vm14, %v3090_v37, 0.0  ;;  %v3012_v37 = vmul.f32 8.0, %v2570_v42 }
0x1a5c   :  { %3122 = vadd.xlane.f32.xlu1 %v3121_v5  ;;  %v3011_v5 = vmul.f32 8.0, %v2569_v61 }
0x1a6d   :  { %2973 = vrot.lane.b32.xlu1 %v2927_v55, %s4063_s3  ;;  %v6162_v55 = vld [vmem:[#allocation9_spill] sm:$0xff] }
0x1a73   :  { %v3108_v57 = vpop.xlane.xlu1 %3107 }
0x1a74   :  { %v3140_v63 = vsel %vm3032_vm0, %v3108_v57, 0.0  ;;  %v3023_v57 = vsub.f32 %v6162_v55, %v3011_v5  ;;  %vm3168_vm0 = vcmask 0  }
0x1a76   :  { %vm3036_vm3 = vcmp.eq.f32.partialorder %v3023_v57, %v5695_v30 }
0x1a77   :  { %v2956_v2 = vpop.permute.xlu1 %2955 }
0x1a78   :  { %2992 = vst.msk [vmem:[%s5793_s6] sm:$0xff] %vm2991_vm11, %v2956_v2  ;;  %3131 = vadd.xlane.f32.xlu0 %v3130_v21 }
0x1a7b   :  { %v2962_v38 = vpop.permute.xlu1 %2961 }
0x1a7c   :  { %2995 = vst.msk [vmem:[%s5793_s6 + $0x18] sm:$0xff] %vm2991_vm11, %v2962_v38  ;;  %v3013_v38 = vmul.f32 8.0, %v2571_v29 }
0x1a7e   :  { %v3025_v15 = vsub.f32 %v6164_v34, %v3013_v38 }
0x1a7f   :  { %v2960_v46 = vpop.permute.xlu1 %2959 }
0x1a80   :  { %2994 = vst.msk [vmem:[%s5793_s6 + $0x10] sm:$0xff] %vm2991_vm11, %v2960_v46  ;;  %v6163_v46 = vld [vmem:[#allocation12_spill] sm:$0xff]  ;;  %vm3038_vm15 = vcmp.eq.f32.partialorder %v3025_v15, %v5695_v30 }
0x1a83   :  { %v2966_v40 = vpop.permute.xlu1 %2965 }
0x1a84   :  { %2997 = vst.msk [vmem:[%s5793_s6 + $0x28] sm:$0xff] %vm2991_vm11, %v2966_v40  ;;  %v3024_v40 = vsub.f32 %v6163_v46, %v3012_v37 }
0x1a86   :  { %vm3037_vm10 = vcmp.eq.f32.partialorder %v3024_v40, %v5695_v30 }
0x1a8e   :  { %2971 = vrot.lane.b32.xlu0 %v2926_v53, %s4063_s3 }
0x1a8f   :  { %v3105_v24 = vpop.xlane.xlu0 %3104 }
0x1a90   :  { %v3139_v11 = vsel %vm3031_vm4, %v3105_v24, 0.0  ;;  %v3014_v24 = vmul.f32 8.0, %v2572_v20 }
0x1a91   :  { %v3151_v0 = vadd.f32 %v3140_v63, %v3139_v11  ;;  %3128 = vadd.xlane.f32.xlu1 %v3127_v16  ;;  %v3015_v63 = vmul.f32 8.0, %v2573_v17  ;;  %v3016_v11 = vmul.f32 8.0, %v2574_v60 }
0x1a92   :  { %v3026_v16 = vsub.f32 %v4710_v19, %v3014_v24  ;;  %v3029_v19 = vsub.f32 %v4706_v43, %v3017_v1 }
0x1a93   :  { %v3114_v26 = vpop.xlane.xlu0 %3113  ;;  %v3028_v20 = vsub.f32 %v4704_v23, %v3016_v11 }
0x1a94   :  { %v3142_v53 = vsel %vm3034_vm12, %v3114_v26, 0.0  ;;  %vm3039_vm1 = vcmp.eq.f32.partialorder %v3026_v16, %v5695_v30  ;;  %vm3042_vm8 = vcmp.eq.f32.partialorder %v3029_v19, %v5695_v30 }
0x1a95   :  { %3134 = vadd.xlane.f32.xlu1 %v3133_v62  ;;  %vm3041_vm13 = vcmp.eq.f32.partialorder %v3028_v20, %v5695_v30 }
0x1a97   :  { %v3111_v28 = vpop.xlane.xlu0 %3110 }
0x1a98   :  { %v3141_v51 = vsel %vm3033_vm5, %v3111_v28, 0.0 }
0x1a99   :  { %v3152_v39 = vadd.f32 %v3151_v0, %v3141_v51  ;;  %v3027_v0 = vsub.f32 %v4712_v32, %v3015_v63 }
0x1a9b   :  { %v3120_v35 = vpop.xlane.xlu0 %3119  ;;  %v3153_v58 = vadd.f32 %v3152_v39, %v3142_v53  ;;  %vm3040_vm2 = vcmp.eq.f32.partialorder %v3027_v0, %v5695_v30 }
0x1a9c   :  { %v3144_v2 = vsel %vm3036_vm3, %v3120_v35, 0.0 }
0x1a9f   :  { %v2964_v33 = vpop.permute.xlu0 %2963 }
0x1aa0   :  { %2996 = vst.msk [vmem:[%s5793_s6 + $0x20] sm:$0xff] %vm2991_vm11, %v2964_v33 }
0x1aa6   :  { %2977 = vrot.lane.b32.xlu1 %v2929_v44, %s4063_s3 }
0x1aad   :  { %3137 = vadd.xlane.f32.xlu0 %v3136_v49 }
0x1ab4   :  { %v3117_v8 = vpop.xlane.xlu1 %3116 }
0x1ab5   :  { %v3143_v14 = vsel %vm3035_vm7, %v3117_v8, 0.0 }
0x1ab6   :  { %v3154_v21 = vadd.f32 %v3153_v58, %v3143_v14 }
0x1ab8   :  { %v2970_v54 = vpop.permute.xlu1 %2969  ;;  %v3155_v4 = vadd.f32 %v3154_v21, %v3144_v2 }
0x1ab9   :  { %2999 = vst.msk [vmem:[%s5793_s6 + $0x38] sm:$0xff] %vm2991_vm11, %v2970_v54 }
0x1ac3   :  { %2975 = vrot.lane.b32.xlu0 %v5651_v3, %s4063_s3  ;;  %s3178_s3 = sshll.u32 %s4064_s22, 4  ;;  %s3179_s3 = int_to_ptr.vmem [resolvable:$true] %s3178_s3 }
0x1ac4   :  { %s4029_s23 = scalar_lea.vmem %s3179_s3, 16  ;;  %s4033_s24 = scalar_lea.vmem %s3179_s3, 32 }
0x1ac5   :  { %p4030_p0 = scmp.ne.s32.totalorder %s3179_s3, %s4029_s23  ;;  %p4034_p1 = scmp.lt.s32.totalorder %s3179_s3, %s3179_s3 }
0x1ac6   :  { %p4035_p2 = scmp.lt.s32.totalorder %s4033_s24, %s4029_s23 }
0x1ac8   :  { %p4036_p3 = por %p4035_p2, %p4034_p1 }
0x1aca   :  { %p4037_p4 = pnand %p4036_p3, %p4030_p0 }
0x1ad0   :  { %v3126_v6 = vpop.xlane.xlu0 %3125 }
0x1ad1   :  { %v3146_v45 = vsel %vm3038_vm15, %v3126_v6, 0.0 }
0x1ad4   :  { %v2968_v61 = vpop.permute.xlu0 %2967 }
0x1ad5   :  { %2998 = vst.msk [vmem:[%s5793_s6 + $0x30] sm:$0xff] %vm2991_vm11, %v2968_v61 }
0x1ae9   :  { %v3123_v3 = vpop.xlane.xlu1 %3122 }
0x1aea   :  { %v3145_v22 = vsel %vm3037_vm10, %v3123_v3, 0.0 }
0x1aeb   :  { %v3156_v50 = vadd.f32 %v3155_v4, %v3145_v22 }
0x1aed   :  { %v2974_v7 = vpop.permute.xlu1 %2973  ;;  %v3157_v10 = vadd.f32 %v3156_v50, %v3146_v45 }
0x1aee   :  { %3001 = vst.msk [vmem:[%s5793_s6 + $0x48] sm:$0xff] %vm2991_vm11, %v2974_v7 }
0x1b05   :  { %v3132_v13 = vpop.xlane.xlu0 %3131 }
0x1b06   :  { %v3148_v12 = vsel %vm3040_vm2, %v3132_v13, 0.0 }
0x1b09   :  { %v2972_v52 = vpop.permute.xlu0 %2971 }
0x1b0a   :  { %3000 = vst.msk [vmem:[%s5793_s6 + $0x40] sm:$0xff] %vm2991_vm11, %v2972_v52 }
0x1b1e   :  { %v3129_v42 = vpop.xlane.xlu1 %3128 }
0x1b1f   :  { %v3147_v56 = vsel %vm3039_vm1, %v3129_v42, 0.0 }
0x1b20   :  { %v3158_v18 = vadd.f32 %v3157_v10, %v3147_v56 }
0x1b22   :  { %v3135_v29 = vpop.xlane.xlu1 %3134  ;;  %v3159_v17 = vadd.f32 %v3158_v18, %v3148_v12 }
0x1b23   :  { %v3149_v48 = vsel %vm3041_vm13, %v3135_v29, 0.0 }
0x1b24   :  { %v3160_v41 = vadd.f32 %v3159_v17, %v3149_v48 }
0x1b26   :  { %v2978_v25 = vpop.permute.xlu1 %2977 }
0x1b27   :  { %3003 = vst.msk [vmem:[%s5793_s6 + $0x58] sm:$0xff] %vm2991_vm11, %v2978_v25 }
0x1b3a   :  { %v3138_v32 = vpop.xlane.xlu0 %3137 }
0x1b3b   :  { %v3150_v60 = vsel %vm3042_vm8, %v3138_v32, 0.0 }
0x1b3c   :  { %v3161_v47 = vadd.f32 %v3160_v41, %v3150_v60 }
0x1b3e   :  { %v3162_v23 = vrot.slane %v3161_v47, 4  ;;  %v2976_v26 = vpop.permute.xlu0 %2975 }
0x1b3f   :  { %3002 = vst.msk [vmem:[%s5793_s6 + $0x50] sm:$0xff] %vm2991_vm11, %v2976_v26 }
0x1b40   :  { %v3163_v36 = vadd.f32 %v3162_v23, %v3161_v47 }
0x1b42   :  { %v3164_v27 = vrot.slane %v3163_v36, 2 }
0x1b44   :  { %v3165_v62 = vadd.f32 %v3164_v27, %v3163_v36 }
0x1b46   :  { %v3166_v43 = vrot.slane %v3165_v62, 1 }
0x1b48   :  { %v3167_v28 = vadd.f32 %v3166_v43, %v3165_v62 }
0x1b4a   :  { %3169 = vst.msk [vmem:[#allocation3] sm:$0x1] %vm3168_vm0, %v3167_v28 }
0x1b4b   :  { %4040 = shalt.err (!%p4037_p4)
}
0x1b4c   :  { %s4041_s4 = scalar_lea.hbm %s5794_s7, 16 }
0x1b4d   :  { %p4042_p5 = scmp.ne.s32.totalorder %s5794_s7, %s4041_s4  ;;  %p4045_p6 = scmp.lt.u32.totalorder %s4041_s4, %s5794_s7 }
0x1b4f   :  { %p4047_p7 = pnand %p4045_p6, %p4042_p5 }
0x1b51   :  { %4050 = shalt.err (!%p4047_p7)
}
0x1b52   :  { %3181 = dma.vmem_to_hbm [thread:$0]  %s3179_s3, 16, %s5794_s7, [#allocation4]  }
0x1b53   :  { %4051 = dma.done.wait [#allocation4], 16  }
0x1b54   :  { %4052 = vsyncadd [#allocation4], 4294967280 }
0x1b55   :  { %3187 = vsyncpa [#allocation4], 1 }

</bundles_post_ra>
